<compile_context>
chip_gen: v7x
topology: tpu7x:2x2x1
jax: 0.10.0
libtpu: 0.0.40
codegen_flags: <defaults>
</compile_context>

<pallas_src>
import jax
import jax.numpy as jnp
import numpy as np
from jax.experimental import pallas as pl
from jax.experimental.pallas import tpu as pltpu


def _round_up(x, m):
    return (x + m - 1) // m * m


def _dmc_kernel(val_ref, m1_ref, b1_ref, m2_ref, b2_ref, out_ref):
    # val_ref : (1, TB)              one batch tile, batch on lanes
    # m*_ref  : (depth, W, Hp, 1)    VMEM-resident parameters (slopes)
    # b*_ref  : (depth, W, Hp, 1)    VMEM-resident parameters (biases)
    # out_ref : (2, TB)              row 0 = q1, row 1 = q2 (lane-dense)
    tb = val_ref.shape[-1]
    depth = m1_ref.shape[0]

    v = val_ref[...]                                   # (1, TB)

    def mono_chain(m_ref, b_ref):
        q = v.reshape(1, 1, tb)                        # scalar per lane
        for l in range(depth):                         # static -> unrolled
            a = jnp.abs(m_ref[l])                      # (W, Hp, 1) slopes >= 0
            s = a * q + b_ref[l]                       # (W, Hp, TB)  VPU
            hmax = jnp.max(s, axis=1, keepdims=True)   # max over H -> (W, 1, TB)
            q = jnp.min(hmax, axis=0, keepdims=True)   # min over W -> (1, 1, TB)
        return q.reshape(1, tb)

    out_ref[0:1, :] = mono_chain(m1_ref, b1_ref)
    out_ref[1:2, :] = mono_chain(m2_ref, b2_ref)


def double_mono_critic_forward(val, M1, B1, M2, B2, *, tb=None):
    """Forward pass of DoubleMonoCritic.

    val         : (B, 1) or (B,) float32.
    M1,B1,M2,B2 : (depth, W, H) float32 (torch's per-layer (1, W, H) Parameters
                  stacked along a leading depth axis, leading 1 dropped).
    returns     : (q1, q2), each (B, 1) float32.
    """
    v_flat = jnp.asarray(val, jnp.float32).reshape(-1)
    B = v_flat.shape[0]
    depth, W, H = M1.shape
    Hp = _round_up(H, 8)          # pad H to the sublane tile for dense reduces

    def prep(m, b):
        m = jnp.asarray(m, jnp.float32)
        b = jnp.asarray(b, jnp.float32)
        if Hp != H:
            # padded (w, h) cells: slope 0, bias -1e30 -> never win the max-over-H
            m = jnp.pad(m, ((0, 0), (0, 0), (0, Hp - H)))
            b = jnp.pad(b, ((0, 0), (0, 0), (0, Hp - H)), constant_values=-1e30)
        return m[..., None], b[..., None]              # (depth, W, Hp, 1)

    m1, b1 = prep(M1, B1)
    m2, b2 = prep(M2, B2)

    if tb is None:
        # lane-dense batch tile; bigger tiles amortize per-grid-step overhead,
        # footprint stays tiny (s is W*Hp*tb f32 <= ~2 MiB) on all generations.
        tb = min(2048, _round_up(max(B, 1), 128))
    bpad = _round_up(B, tb)
    val_row = jnp.pad(v_flat, (0, bpad - B)).reshape(1, bpad)

    param_spec = pl.BlockSpec((depth, W, Hp, 1), lambda i: (0, 0, 0, 0))

    out = pl.pallas_call(
        _dmc_kernel,
        out_shape=jax.ShapeDtypeStruct((2, bpad), jnp.float32),
        grid_spec=pltpu.PrefetchScalarGridSpec(
            num_scalar_prefetch=0,
            grid=(bpad // tb,),
            in_specs=[
                pl.BlockSpec((1, tb), lambda i: (0, i)),   # batch tile on lanes
                param_spec, param_spec, param_spec, param_spec,
            ],
            out_specs=pl.BlockSpec((2, tb), lambda i: (0, i)),
        ),
        compiler_params=pltpu.CompilerParams(
            dimension_semantics=("parallel",)),            # megacore on v7x
    )(val_row, m1, b1, m2, b2)

    q1 = out[0, :B].reshape(B, 1)
    q2 = out[1, :B].reshape(B, 1)
    return q1, q2


def _reference_forward(val, M1, B1, M2, B2):
    """Pure-JAX reference mirroring the PyTorch forward exactly."""
    v = jnp.asarray(val, jnp.float32).reshape(-1, 1)
    q1 = q2 = v[:, :, None]                                # (B, 1, 1)
    for l in range(M1.shape[0]):
        q1 = jnp.min(jnp.max(jnp.abs(M1[l])[None] * q1 + B1[l][None], axis=-1),
                     axis=-1)[:, None, None]
        q2 = jnp.min(jnp.max(jnp.abs(M2[l])[None] * q2 + B2[l][None], axis=-1),
                     axis=-1)[:, None, None]
    return q1[:, :, 0], q2[:, :, 0]                        # each (B, 1)


if __name__ == "__main__":
    # synthetic sizes: width=16, height=16, depth=3, batch=2
    B, W, H, D = 2, 16, 16, 3

    key = jax.random.PRNGKey(0)
    kv, k1, k2, k3, k4 = jax.random.split(key, 5)

    val = jax.random.normal(kv, (B, 1), jnp.float32)
    # TODO(synk): torch's utils.weight_init is external/unknown; the test uses a
    # deterministic normal init instead (forward semantics are init-agnostic).
    M1 = jax.random.normal(k1, (D, W, H), jnp.float32)
    B1 = jax.random.normal(k2, (D, W, H), jnp.float32) * 0.1
    M2 = jax.random.normal(k3, (D, W, H), jnp.float32)
    B2 = jax.random.normal(k4, (D, W, H), jnp.float32) * 0.1

    q1, q2 = double_mono_critic_forward(val, M1, B1, M2, B2)
    q1 = jax.block_until_ready(q1)
    q2 = jax.block_until_ready(q2)

    q1_ref, q2_ref = _reference_forward(val, M1, B1, M2, B2)
    np.testing.assert_allclose(np.asarray(q1), np.asarray(q1_ref), rtol=1e-5, atol=1e-5)
    np.testing.assert_allclose(np.asarray(q2), np.asarray(q2_ref), rtol=1e-5, atol=1e-5)

    assert q1.shape == (B, 1) and q2.shape == (B, 1)
    print("KERNEL_OK")
</pallas_src>

<mosaic_0001>
module attributes {stable_mosaic.version = 11 : i64} {
  func.func @_dmc_kernel(%arg0: i32, %arg1: memref<1x128xf32, #tpu.memory_space<vmem>>, %arg2: memref<3x16x16x1xf32, #tpu.memory_space<vmem>>, %arg3: memref<3x16x16x1xf32, #tpu.memory_space<vmem>>, %arg4: memref<3x16x16x1xf32, #tpu.memory_space<vmem>>, %arg5: memref<3x16x16x1xf32, #tpu.memory_space<vmem>>, %arg6: memref<2x128xf32, #tpu.memory_space<vmem>>) attributes {dimension_semantics = [#tpu.dimension_semantics<parallel>], iteration_bounds = array<i64: 1>, scalar_prefetch = 0 : i64, scratch_operands = 0 : i64, tpu.core_type = #tpu.core_type<tc>, window_params = [{transform_indices = @transform_0, window_bounds = array<i64: 1, 128>}, {pipeline_mode = #tpu.pipeline_mode<synchronous>, transform_indices = @transform_1, window_bounds = array<i64: 3, 16, 16, 1>}, {pipeline_mode = #tpu.pipeline_mode<synchronous>, transform_indices = @transform_2, window_bounds = array<i64: 3, 16, 16, 1>}, {pipeline_mode = #tpu.pipeline_mode<synchronous>, transform_indices = @transform_3, window_bounds = array<i64: 3, 16, 16, 1>}, {pipeline_mode = #tpu.pipeline_mode<synchronous>, transform_indices = @transform_4, window_bounds = array<i64: 3, 16, 16, 1>}, {transform_indices = @transform_5, window_bounds = array<i64: 2, 128>}]} {
    %c0 = arith.constant 0 : index
    %c0_0 = arith.constant 0 : index
    %0 = vector.load %arg1[%c0, %c0_0] : memref<1x128xf32, #tpu.memory_space<vmem>>, vector<1x128xf32>
    %1 = vector.shape_cast %0 : vector<1x128xf32> to vector<1x1x128xf32>
    %c0_1 = arith.constant 0 : index
    %c0_2 = arith.constant 0 : index
    %c0_3 = arith.constant 0 : index
    %c0_4 = arith.constant 0 : index
    %2 = vector.load %arg2[%c0_1, %c0_2, %c0_3, %c0_4] : memref<3x16x16x1xf32, #tpu.memory_space<vmem>>, vector<1x16x16x1xf32>
    %3 = vector.shape_cast %2 : vector<1x16x16x1xf32> to vector<16x16x1xf32>
    %4 = math.absf %3 : vector<16x16x1xf32>
    %5 = vector.broadcast %4 : vector<16x16x1xf32> to vector<16x16x128xf32>
    %6 = vector.broadcast %1 : vector<1x1x128xf32> to vector<16x16x128xf32>
    %7 = arith.mulf %5, %6 : vector<16x16x128xf32>
    %c0_5 = arith.constant 0 : index
    %c0_6 = arith.constant 0 : index
    %c0_7 = arith.constant 0 : index
    %c0_8 = arith.constant 0 : index
    %8 = vector.load %arg3[%c0_5, %c0_6, %c0_7, %c0_8] : memref<3x16x16x1xf32, #tpu.memory_space<vmem>>, vector<1x16x16x1xf32>
    %9 = vector.shape_cast %8 : vector<1x16x16x1xf32> to vector<16x16x1xf32>
    %10 = vector.broadcast %9 : vector<16x16x1xf32> to vector<16x16x128xf32>
    %11 = arith.addf %7, %10 : vector<16x16x128xf32>
    %cst = arith.constant dense<0xFF800000> : vector<16x128xf32>
    %12 = vector.multi_reduction <maximumf>, %11, %cst [1] : vector<16x16x128xf32> to vector<16x128xf32>
    %13 = vector.shape_cast %12 : vector<16x128xf32> to vector<16x1x128xf32>
    %cst_9 = arith.constant dense<0x7F800000> : vector<1x128xf32>
    %14 = vector.multi_reduction <minimumf>, %13, %cst_9 [0] : vector<16x1x128xf32> to vector<1x128xf32>
    %15 = vector.shape_cast %14 : vector<1x128xf32> to vector<1x1x128xf32>
    %c1 = arith.constant 1 : index
    %c0_10 = arith.constant 0 : index
    %c0_11 = arith.constant 0 : index
    %c0_12 = arith.constant 0 : index
    %16 = vector.load %arg2[%c1, %c0_10, %c0_11, %c0_12] : memref<3x16x16x1xf32, #tpu.memory_space<vmem>>, vector<1x16x16x1xf32>
    %17 = vector.shape_cast %16 : vector<1x16x16x1xf32> to vector<16x16x1xf32>
    %18 = math.absf %17 : vector<16x16x1xf32>
    %19 = vector.broadcast %18 : vector<16x16x1xf32> to vector<16x16x128xf32>
    %20 = vector.broadcast %15 : vector<1x1x128xf32> to vector<16x16x128xf32>
    %21 = arith.mulf %19, %20 : vector<16x16x128xf32>
    %c1_13 = arith.constant 1 : index
    %c0_14 = arith.constant 0 : index
    %c0_15 = arith.constant 0 : index
    %c0_16 = arith.constant 0 : index
    %22 = vector.load %arg3[%c1_13, %c0_14, %c0_15, %c0_16] : memref<3x16x16x1xf32, #tpu.memory_space<vmem>>, vector<1x16x16x1xf32>
    %23 = vector.shape_cast %22 : vector<1x16x16x1xf32> to vector<16x16x1xf32>
    %24 = vector.broadcast %23 : vector<16x16x1xf32> to vector<16x16x128xf32>
    %25 = arith.addf %21, %24 : vector<16x16x128xf32>
    %cst_17 = arith.constant dense<0xFF800000> : vector<16x128xf32>
    %26 = vector.multi_reduction <maximumf>, %25, %cst_17 [1] : vector<16x16x128xf32> to vector<16x128xf32>
    %27 = vector.shape_cast %26 : vector<16x128xf32> to vector<16x1x128xf32>
    %cst_18 = arith.constant dense<0x7F800000> : vector<1x128xf32>
    %28 = vector.multi_reduction <minimumf>, %27, %cst_18 [0] : vector<16x1x128xf32> to vector<1x128xf32>
    %29 = vector.shape_cast %28 : vector<1x128xf32> to vector<1x1x128xf32>
    %c2 = arith.constant 2 : index
    %c0_19 = arith.constant 0 : index
    %c0_20 = arith.constant 0 : index
    %c0_21 = arith.constant 0 : index
    %30 = vector.load %arg2[%c2, %c0_19, %c0_20, %c0_21] : memref<3x16x16x1xf32, #tpu.memory_space<vmem>>, vector<1x16x16x1xf32>
    %31 = vector.shape_cast %30 : vector<1x16x16x1xf32> to vector<16x16x1xf32>
    %32 = math.absf %31 : vector<16x16x1xf32>
    %33 = vector.broadcast %32 : vector<16x16x1xf32> to vector<16x16x128xf32>
    %34 = vector.broadcast %29 : vector<1x1x128xf32> to vector<16x16x128xf32>
    %35 = arith.mulf %33, %34 : vector<16x16x128xf32>
    %c2_22 = arith.constant 2 : index
    %c0_23 = arith.constant 0 : index
    %c0_24 = arith.constant 0 : index
    %c0_25 = arith.constant 0 : index
    %36 = vector.load %arg3[%c2_22, %c0_23, %c0_24, %c0_25] : memref<3x16x16x1xf32, #tpu.memory_space<vmem>>, vector<1x16x16x1xf32>
    %37 = vector.shape_cast %36 : vector<1x16x16x1xf32> to vector<16x16x1xf32>
    %38 = vector.broadcast %37 : vector<16x16x1xf32> to vector<16x16x128xf32>
    %39 = arith.addf %35, %38 : vector<16x16x128xf32>
    %cst_26 = arith.constant dense<0xFF800000> : vector<16x128xf32>
    %40 = vector.multi_reduction <maximumf>, %39, %cst_26 [1] : vector<16x16x128xf32> to vector<16x128xf32>
    %41 = vector.shape_cast %40 : vector<16x128xf32> to vector<16x1x128xf32>
    %cst_27 = arith.constant dense<0x7F800000> : vector<1x128xf32>
    %42 = vector.multi_reduction <minimumf>, %41, %cst_27 [0] : vector<16x1x128xf32> to vector<1x128xf32>
    %43 = vector.shape_cast %42 : vector<1x128xf32> to vector<1x1x128xf32>
    %44 = vector.shape_cast %43 : vector<1x1x128xf32> to vector<1x128xf32>
    %c0_28 = arith.constant 0 : index
    %c0_29 = arith.constant 0 : index
    %45 = vector.load %arg6[%c0_28, %c0_29] : memref<2x128xf32, #tpu.memory_space<vmem>>, vector<1x128xf32>
    tpu.vector_store %arg6[%c0_28, %c0_29], %44 {strides = array<i32>} : memref<2x128xf32, #tpu.memory_space<vmem>>, vector<1x128xf32>,
    %46 = vector.shape_cast %0 : vector<1x128xf32> to vector<1x1x128xf32>
    %c0_30 = arith.constant 0 : index
    %c0_31 = arith.constant 0 : index
    %c0_32 = arith.constant 0 : index
    %c0_33 = arith.constant 0 : index
    %47 = vector.load %arg4[%c0_30, %c0_31, %c0_32, %c0_33] : memref<3x16x16x1xf32, #tpu.memory_space<vmem>>, vector<1x16x16x1xf32>
    %48 = vector.shape_cast %47 : vector<1x16x16x1xf32> to vector<16x16x1xf32>
    %49 = math.absf %48 : vector<16x16x1xf32>
    %50 = vector.broadcast %49 : vector<16x16x1xf32> to vector<16x16x128xf32>
    %51 = vector.broadcast %46 : vector<1x1x128xf32> to vector<16x16x128xf32>
    %52 = arith.mulf %50, %51 : vector<16x16x128xf32>
    %c0_34 = arith.constant 0 : index
    %c0_35 = arith.constant 0 : index
    %c0_36 = arith.constant 0 : index
    %c0_37 = arith.constant 0 : index
    %53 = vector.load %arg5[%c0_34, %c0_35, %c0_36, %c0_37] : memref<3x16x16x1xf32, #tpu.memory_space<vmem>>, vector<1x16x16x1xf32>
    %54 = vector.shape_cast %53 : vector<1x16x16x1xf32> to vector<16x16x1xf32>
    %55 = vector.broadcast %54 : vector<16x16x1xf32> to vector<16x16x128xf32>
    %56 = arith.addf %52, %55 : vector<16x16x128xf32>
    %cst_38 = arith.constant dense<0xFF800000> : vector<16x128xf32>
    %57 = vector.multi_reduction <maximumf>, %56, %cst_38 [1] : vector<16x16x128xf32> to vector<16x128xf32>
    %58 = vector.shape_cast %57 : vector<16x128xf32> to vector<16x1x128xf32>
    %cst_39 = arith.constant dense<0x7F800000> : vector<1x128xf32>
    %59 = vector.multi_reduction <minimumf>, %58, %cst_39 [0] : vector<16x1x128xf32> to vector<1x128xf32>
    %60 = vector.shape_cast %59 : vector<1x128xf32> to vector<1x1x128xf32>
    %c1_40 = arith.constant 1 : index
    %c0_41 = arith.constant 0 : index
    %c0_42 = arith.constant 0 : index
    %c0_43 = arith.constant 0 : index
    %61 = vector.load %arg4[%c1_40, %c0_41, %c0_42, %c0_43] : memref<3x16x16x1xf32, #tpu.memory_space<vmem>>, vector<1x16x16x1xf32>
    %62 = vector.shape_cast %61 : vector<1x16x16x1xf32> to vector<16x16x1xf32>
    %63 = math.absf %62 : vector<16x16x1xf32>
    %64 = vector.broadcast %63 : vector<16x16x1xf32> to vector<16x16x128xf32>
    %65 = vector.broadcast %60 : vector<1x1x128xf32> to vector<16x16x128xf32>
    %66 = arith.mulf %64, %65 : vector<16x16x128xf32>
    %c1_44 = arith.constant 1 : index
    %c0_45 = arith.constant 0 : index
    %c0_46 = arith.constant 0 : index
    %c0_47 = arith.constant 0 : index
    %67 = vector.load %arg5[%c1_44, %c0_45, %c0_46, %c0_47] : memref<3x16x16x1xf32, #tpu.memory_space<vmem>>, vector<1x16x16x1xf32>
    %68 = vector.shape_cast %67 : vector<1x16x16x1xf32> to vector<16x16x1xf32>
    %69 = vector.broadcast %68 : vector<16x16x1xf32> to vector<16x16x128xf32>
    %70 = arith.addf %66, %69 : vector<16x16x128xf32>
    %cst_48 = arith.constant dense<0xFF800000> : vector<16x128xf32>
    %71 = vector.multi_reduction <maximumf>, %70, %cst_48 [1] : vector<16x16x128xf32> to vector<16x128xf32>
    %72 = vector.shape_cast %71 : vector<16x128xf32> to vector<16x1x128xf32>
    %cst_49 = arith.constant dense<0x7F800000> : vector<1x128xf32>
    %73 = vector.multi_reduction <minimumf>, %72, %cst_49 [0] : vector<16x1x128xf32> to vector<1x128xf32>
    %74 = vector.shape_cast %73 : vector<1x128xf32> to vector<1x1x128xf32>
    %c2_50 = arith.constant 2 : index
    %c0_51 = arith.constant 0 : index
    %c0_52 = arith.constant 0 : index
    %c0_53 = arith.constant 0 : index
    %75 = vector.load %arg4[%c2_50, %c0_51, %c0_52, %c0_53] : memref<3x16x16x1xf32, #tpu.memory_space<vmem>>, vector<1x16x16x1xf32>
    %76 = vector.shape_cast %75 : vector<1x16x16x1xf32> to vector<16x16x1xf32>
    %77 = math.absf %76 : vector<16x16x1xf32>
    %78 = vector.broadcast %77 : vector<16x16x1xf32> to vector<16x16x128xf32>
    %79 = vector.broadcast %74 : vector<1x1x128xf32> to vector<16x16x128xf32>
    %80 = arith.mulf %78, %79 : vector<16x16x128xf32>
    %c2_54 = arith.constant 2 : index
    %c0_55 = arith.constant 0 : index
    %c0_56 = arith.constant 0 : index
    %c0_57 = arith.constant 0 : index
    %81 = vector.load %arg5[%c2_54, %c0_55, %c0_56, %c0_57] : memref<3x16x16x1xf32, #tpu.memory_space<vmem>>, vector<1x16x16x1xf32>
    %82 = vector.shape_cast %81 : vector<1x16x16x1xf32> to vector<16x16x1xf32>
    %83 = vector.broadcast %82 : vector<16x16x1xf32> to vector<16x16x128xf32>
    %84 = arith.addf %80, %83 : vector<16x16x128xf32>
    %cst_58 = arith.constant dense<0xFF800000> : vector<16x128xf32>
    %85 = vector.multi_reduction <maximumf>, %84, %cst_58 [1] : vector<16x16x128xf32> to vector<16x128xf32>
    %86 = vector.shape_cast %85 : vector<16x128xf32> to vector<16x1x128xf32>
    %cst_59 = arith.constant dense<0x7F800000> : vector<1x128xf32>
    %87 = vector.multi_reduction <minimumf>, %86, %cst_59 [0] : vector<16x1x128xf32> to vector<1x128xf32>
    %88 = vector.shape_cast %87 : vector<1x128xf32> to vector<1x1x128xf32>
    %89 = vector.shape_cast %88 : vector<1x1x128xf32> to vector<1x128xf32>
    %c1_60 = arith.constant 1 : index
    %c0_61 = arith.constant 0 : index
    %90 = vector.load %arg6[%c1_60, %c0_61] : memref<2x128xf32, #tpu.memory_space<vmem>>, vector<1x128xf32>
    tpu.vector_store %arg6[%c1_60, %c0_61], %89 {strides = array<i32>} : memref<2x128xf32, #tpu.memory_space<vmem>>, vector<1x128xf32>,
    return
  }
  func.func @transform_0(%arg0: i32) -> (i32, i32) {
    %c0_i32 = arith.constant 0 : i32
    %c0_i32_0 = arith.constant 0 : i32
    return %c0_i32, %arg0 : i32, i32
  }
  func.func @transform_1(%arg0: i32) -> (i32, i32, i32, i32) {
    %c0_i32 = arith.constant 0 : i32
    %c0_i32_0 = arith.constant 0 : i32
    %c0_i32_1 = arith.constant 0 : i32
    %c0_i32_2 = arith.constant 0 : i32
    %c0_i32_3 = arith.constant 0 : i32
    return %c0_i32, %c0_i32_0, %c0_i32_1, %c0_i32_2 : i32, i32, i32, i32
  }
  func.func @transform_2(%arg0: i32) -> (i32, i32, i32, i32) {
    %c0_i32 = arith.constant 0 : i32
    %c0_i32_0 = arith.constant 0 : i32
    %c0_i32_1 = arith.constant 0 : i32
    %c0_i32_2 = arith.constant 0 : i32
    %c0_i32_3 = arith.constant 0 : i32
    return %c0_i32, %c0_i32_0, %c0_i32_1, %c0_i32_2 : i32, i32, i32, i32
  }
  func.func @transform_3(%arg0: i32) -> (i32, i32, i32, i32) {
    %c0_i32 = arith.constant 0 : i32
    %c0_i32_0 = arith.constant 0 : i32
    %c0_i32_1 = arith.constant 0 : i32
    %c0_i32_2 = arith.constant 0 : i32
    %c0_i32_3 = arith.constant 0 : i32
    return %c0_i32, %c0_i32_0, %c0_i32_1, %c0_i32_2 : i32, i32, i32, i32
  }
  func.func @transform_4(%arg0: i32) -> (i32, i32, i32, i32) {
    %c0_i32 = arith.constant 0 : i32
    %c0_i32_0 = arith.constant 0 : i32
    %c0_i32_1 = arith.constant 0 : i32
    %c0_i32_2 = arith.constant 0 : i32
    %c0_i32_3 = arith.constant 0 : i32
    return %c0_i32, %c0_i32_0, %c0_i32_1, %c0_i32_2 : i32, i32, i32, i32
  }
  func.func @transform_5(%arg0: i32) -> (i32, i32) {
    %c0_i32 = arith.constant 0 : i32
    %c0_i32_0 = arith.constant 0 : i32
    return %c0_i32, %arg0 : i32, i32
  }
}

</mosaic_0001>

<bundles_post_ra>
// kernel: tpu_custom_call.1
= control target key start
LH: loop header
LB: loop body
LE: loop exit
PB: predicated region body
PF: predicated region fallthrough
CT: control target
= control target key end

     0   :  { %v3980_v3 = vmov 0   ;;  %s6735_s0 = inlined_call_operand.vmem [shape: f32[1,128], index: 0, kind: input, shape index: {}]   ;;  %s6736_s1 = inlined_call_operand.vmem [shape: f32[3,16,16,1], index: 1, kind: input, shape index: {}]   ;;  %s6737_s2 = inlined_call_operand.vmem [shape: f32[3,16,16,1], index: 2, kind: input, shape index: {}]   ;;  %s6738_s3 = inlined_call_operand.vmem [shape: f32[3,16,16,1], index: 3, kind: input, shape index: {}]   ;;  %s6739_s4 = inlined_call_operand.vmem [shape: f32[3,16,16,1], index: 4, kind: input, shape index: {}]   ;;  %s6740_s5 = inlined_call_operand.hbm [shape: f32[2,128], index: 5, kind: output, shape index: {}]  }
   0x1   :  { %v24_v0 = vld [vmem:[%s6736_s1 + $0x10] sm:$0xff]  ;;  %v22_v1 = vld [vmem:[%s6736_s1] sm:$0xff]  ;;  %v25_v2 = vld [vmem:[%s6736_s1 + $0x18] sm:$0xff]  ;;  %3954 = vset.pattern.permute.xlu1 %v3980_v3  ;;  %3953 = vset.pattern.permute.xlu0 %v3980_v3 }
   0x2   :  { %v56_v4 = vand.u32 2147483647, %v24_v0  ;;  %v54_v5 = vand.u32 2147483647, %v22_v1  ;;  %v23_v6 = vld [vmem:[%s6736_s1 + $0x8] sm:$0xff]  ;;  %v26_v10 = vld [vmem:[%s6736_s1 + $0x20] sm:$0xff] }
   0x3   :  { %v57_v7 = vand.u32 2147483647, %v25_v2  ;;  %v55_v8 = vand.u32 2147483647, %v23_v6  ;;  %v27_v9 = vld [vmem:[%s6736_s1 + $0x28] sm:$0xff]  ;;  %v29_v13 = vld [vmem:[%s6736_s1 + $0x38] sm:$0xff] }
   0x4   :  { %98 = vperm.xlu1 %3954, %v56_v4   ;;  %88 = vperm.xlu0 %3953, %v54_v5   ;;  %v59_v11 = vand.u32 2147483647, %v27_v9  ;;  %v58_v12 = vand.u32 2147483647, %v26_v10  ;;  %v28_v14 = vld [vmem:[%s6736_s1 + $0x30] sm:$0xff]  ;;  %v31_v17 = vld [vmem:[%s6736_s1 + $0x48] sm:$0xff] }
   0x5   :  { %v61_v15 = vand.u32 2147483647, %v29_v13  ;;  %v60_v16 = vand.u32 2147483647, %v28_v14  ;;  %v30_v18 = vld [vmem:[%s6736_s1 + $0x40] sm:$0xff]  ;;  %v33_v21 = vld [vmem:[%s6736_s1 + $0x58] sm:$0xff] }
   0x6   :  { %v63_v19 = vand.u32 2147483647, %v31_v17  ;;  %v62_v20 = vand.u32 2147483647, %v30_v18  ;;  %v32_v22 = vld [vmem:[%s6736_s1 + $0x50] sm:$0xff]  ;;  %v35_v25 = vld [vmem:[%s6736_s1 + $0x68] sm:$0xff] }
   0x7   :  { %v65_v23 = vand.u32 2147483647, %v33_v21  ;;  %v64_v24 = vand.u32 2147483647, %v32_v22  ;;  %v34_v26 = vld [vmem:[%s6736_s1 + $0x60] sm:$0xff]  ;;  %v37_v29 = vld [vmem:[%s6736_s1 + $0x78] sm:$0xff] }
   0x8   :  { %103 = vperm.xlu1 %3954, %v57_v7   ;;  %93 = vperm.xlu0 %3953, %v55_v8   ;;  %v67_v27 = vand.u32 2147483647, %v35_v25  ;;  %v66_v28 = vand.u32 2147483647, %v34_v26  ;;  %v36_v30 = vld [vmem:[%s6736_s1 + $0x70] sm:$0xff]  ;;  %v39_v33 = vld [vmem:[%s6736_s1 + $0x88] sm:$0xff] }
   0x9   :  { %v69_v31 = vand.u32 2147483647, %v37_v29  ;;  %v68_v32 = vand.u32 2147483647, %v36_v30  ;;  %v38_v34 = vld [vmem:[%s6736_s1 + $0x80] sm:$0xff]  ;;  %v41_v37 = vld [vmem:[%s6736_s1 + $0x98] sm:$0xff] }
   0xa   :  { %v71_v35 = vand.u32 2147483647, %v39_v33  ;;  %v70_v36 = vand.u32 2147483647, %v38_v34  ;;  %v40_v38 = vld [vmem:[%s6736_s1 + $0x90] sm:$0xff]  ;;  %v43_v41 = vld [vmem:[%s6736_s1 + $0xa8] sm:$0xff] }
   0xb   :  { %v73_v39 = vand.u32 2147483647, %v41_v37  ;;  %v72_v40 = vand.u32 2147483647, %v40_v38  ;;  %v42_v42 = vld [vmem:[%s6736_s1 + $0xa0] sm:$0xff]  ;;  %v45_v45 = vld [vmem:[%s6736_s1 + $0xb8] sm:$0xff] }
   0xc   :  { %113 = vperm.xlu1 %3954, %v59_v11   ;;  %108 = vperm.xlu0 %3953, %v58_v12   ;;  %v75_v43 = vand.u32 2147483647, %v43_v41  ;;  %v74_v44 = vand.u32 2147483647, %v42_v42  ;;  %v44_v46 = vld [vmem:[%s6736_s1 + $0xb0] sm:$0xff]  ;;  %v47_v49 = vld [vmem:[%s6736_s1 + $0xc8] sm:$0xff] }
   0xd   :  { %v77_v47 = vand.u32 2147483647, %v45_v45  ;;  %v76_v48 = vand.u32 2147483647, %v44_v46  ;;  %v46_v50 = vld [vmem:[%s6736_s1 + $0xc0] sm:$0xff]  ;;  %v49_v53 = vld [vmem:[%s6736_s1 + $0xd8] sm:$0xff] }
   0xe   :  { %v79_v51 = vand.u32 2147483647, %v47_v49  ;;  %v78_v52 = vand.u32 2147483647, %v46_v50  ;;  %v48_v54 = vld [vmem:[%s6736_s1 + $0xd0] sm:$0xff] }
  0x10   :  { %123 = vperm.xlu1 %3954, %v61_v15   ;;  %118 = vperm.xlu0 %3953, %v60_v16  }
  0x14   :  { %133 = vperm.xlu1 %3954, %v63_v19   ;;  %128 = vperm.xlu0 %3953, %v62_v20  }
  0x18   :  { %143 = vperm.xlu1 %3954, %v65_v23   ;;  %138 = vperm.xlu0 %3953, %v64_v24  }
  0x1c   :  { %153 = vperm.xlu1 %3954, %v67_v27   ;;  %148 = vperm.xlu0 %3953, %v66_v28  }
  0x20   :  { %163 = vperm.xlu1 %3954, %v69_v31   ;;  %158 = vperm.xlu0 %3953, %v68_v32  }
  0x24   :  { %173 = vperm.xlu1 %3954, %v71_v35   ;;  %168 = vperm.xlu0 %3953, %v70_v36  }
  0x28   :  { %183 = vperm.xlu1 %3954, %v73_v39   ;;  %178 = vperm.xlu0 %3953, %v72_v40  }
  0x2c   :  { %193 = vperm.xlu1 %3954, %v75_v43   ;;  %188 = vperm.xlu0 %3953, %v74_v44  }
  0x30   :  { %203 = vperm.xlu1 %3954, %v77_v47   ;;  %198 = vperm.xlu0 %3953, %v76_v48  }
  0x31   :  { %10 = vsyncpa [#allocation3], 0  ;;  %v81_v55 = vand.u32 2147483647, %v49_v53  ;;  %v80_v56 = vand.u32 2147483647, %v48_v54 }
  0x32   :  { %v51_v57 = vld [vmem:[%s6736_s1 + $0xe8] sm:$0xff]  ;;  %v50_v58 = vld [vmem:[%s6736_s1 + $0xe0] sm:$0xff]  ;;  %v53_v61 = vld [vmem:[%s6736_s1 + $0xf8] sm:$0xff] }
  0x33   :  { %v83_v59 = vand.u32 2147483647, %v51_v57  ;;  %v82_v60 = vand.u32 2147483647, %v50_v58  ;;  %v52_v62 = vld [vmem:[%s6736_s1 + $0xf0] sm:$0xff]  ;;  %v285_v1 = vld [vmem:[%s6737_s2 + $0x8] sm:$0xff] }
  0x34   :  { %213 = vperm.xlu1 %3954, %v79_v51   ;;  %208 = vperm.xlu0 %3953, %v78_v52   ;;  %v85_v63 = vand.u32 2147483647, %v53_v61  ;;  %v84_v0 = vand.u32 2147483647, %v52_v62  ;;  %v284_v2 = vld [vmem:[%s6737_s2] sm:$0xff]  ;;  %v287_v3 = vld [vmem:[%s6737_s2 + $0x18] sm:$0xff] }
  0x35   :  { %v286_v4 = vld [vmem:[%s6737_s2 + $0x10] sm:$0xff]  ;;  %v289_v5 = vld [vmem:[%s6737_s2 + $0x28] sm:$0xff]  ;;  %v288_v6 = vld [vmem:[%s6737_s2 + $0x20] sm:$0xff] }
  0x36   :  { %v291_v7 = vld [vmem:[%s6737_s2 + $0x38] sm:$0xff]  ;;  %v290_v8 = vld [vmem:[%s6737_s2 + $0x30] sm:$0xff]  ;;  %v293_v9 = vld [vmem:[%s6737_s2 + $0x48] sm:$0xff] }
  0x37   :  { %v292_v10 = vld [vmem:[%s6737_s2 + $0x40] sm:$0xff]  ;;  %v295_v11 = vld [vmem:[%s6737_s2 + $0x58] sm:$0xff]  ;;  %v294_v12 = vld [vmem:[%s6737_s2 + $0x50] sm:$0xff] }
  0x38   :  { %223 = vperm.xlu1 %3954, %v81_v55   ;;  %218 = vperm.xlu0 %3953, %v80_v56   ;;  %v297_v13 = vld [vmem:[%s6737_s2 + $0x68] sm:$0xff]  ;;  %v296_v14 = vld [vmem:[%s6737_s2 + $0x60] sm:$0xff]  ;;  %v299_v15 = vld [vmem:[%s6737_s2 + $0x78] sm:$0xff] }
  0x39   :  { %v298_v16 = vld [vmem:[%s6737_s2 + $0x70] sm:$0xff]  ;;  %v301_v17 = vld [vmem:[%s6737_s2 + $0x88] sm:$0xff]  ;;  %v300_v18 = vld [vmem:[%s6737_s2 + $0x80] sm:$0xff] }
  0x3a   :  { %v303_v19 = vld [vmem:[%s6737_s2 + $0x98] sm:$0xff]  ;;  %v302_v20 = vld [vmem:[%s6737_s2 + $0x90] sm:$0xff]  ;;  %v305_v21 = vld [vmem:[%s6737_s2 + $0xa8] sm:$0xff] }
  0x3b   :  { %v304_v22 = vld [vmem:[%s6737_s2 + $0xa0] sm:$0xff]  ;;  %v307_v23 = vld [vmem:[%s6737_s2 + $0xb8] sm:$0xff]  ;;  %v306_v24 = vld [vmem:[%s6737_s2 + $0xb0] sm:$0xff] }
  0x3c   :  { %233 = vperm.xlu1 %3954, %v83_v59   ;;  %228 = vperm.xlu0 %3953, %v82_v60   ;;  %v309_v25 = vld [vmem:[%s6737_s2 + $0xc8] sm:$0xff]  ;;  %v308_v26 = vld [vmem:[%s6737_s2 + $0xc0] sm:$0xff]  ;;  %v311_v27 = vld [vmem:[%s6737_s2 + $0xd8] sm:$0xff] }
  0x3d   :  { %v310_v28 = vld [vmem:[%s6737_s2 + $0xd0] sm:$0xff]  ;;  %v313_v29 = vld [vmem:[%s6737_s2 + $0xe8] sm:$0xff]  ;;  %v312_v30 = vld [vmem:[%s6737_s2 + $0xe0] sm:$0xff] }
  0x3e   :  { %v315_v31 = vld [vmem:[%s6737_s2 + $0xf8] sm:$0xff]  ;;  %v314_v32 = vld [vmem:[%s6737_s2 + $0xf0] sm:$0xff]  ;;  %v3696_v33 = vld [vmem:[%s6736_s1 + $0x108] sm:$0xff] }
  0x3f   :  { %v3695_v34 = vld [vmem:[%s6736_s1 + $0x100] sm:$0xff]  ;;  %v669_v35 = vand.u32 2147483647, %v3696_v33  ;;  %v3698_v37 = vld [vmem:[%s6736_s1 + $0x118] sm:$0xff]  ;;  %v3697_v38 = vld [vmem:[%s6736_s1 + $0x110] sm:$0xff] }
  0x40   :  { %243 = vperm.xlu1 %3954, %v85_v63   ;;  %238 = vperm.xlu0 %3953, %v84_v0   ;;  %v668_v36 = vand.u32 2147483647, %v3695_v34  ;;  %v671_v41 = vand.u32 2147483647, %v3698_v37  ;;  %v670_v42 = vand.u32 2147483647, %v3697_v38 }
  0x41   :  { %v3700_v43 = vld [vmem:[%s6736_s1 + $0x128] sm:$0xff]  ;;  %v3699_v44 = vld [vmem:[%s6736_s1 + $0x120] sm:$0xff]  ;;  %v3702_v49 = vld [vmem:[%s6736_s1 + $0x138] sm:$0xff] }
  0x42   :  { %v673_v47 = vand.u32 2147483647, %v3700_v43  ;;  %v672_v48 = vand.u32 2147483647, %v3699_v44  ;;  %v3701_v50 = vld [vmem:[%s6736_s1 + $0x130] sm:$0xff]  ;;  %v3704_v55 = vld [vmem:[%s6736_s1 + $0x148] sm:$0xff] }
  0x43   :  { %v675_v53 = vand.u32 2147483647, %v3702_v49  ;;  %v674_v54 = vand.u32 2147483647, %v3701_v50  ;;  %v3703_v56 = vld [vmem:[%s6736_s1 + $0x140] sm:$0xff]  ;;  %v3706_v61 = vld [vmem:[%s6736_s1 + $0x158] sm:$0xff] }
  0x44   :  { %323 = vperm.xlu1 %3954, %v285_v1   ;;  %318 = vperm.xlu0 %3953, %v284_v2   ;;  %v677_v59 = vand.u32 2147483647, %v3704_v55  ;;  %v676_v60 = vand.u32 2147483647, %v3703_v56  ;;  %v3705_v62 = vld [vmem:[%s6736_s1 + $0x150] sm:$0xff]  ;;  %v3718_v33 = vld [vmem:[%s6736_s1 + $0x1b8] sm:$0xff] }
  0x45   :  { %v679_v1 = vand.u32 2147483647, %v3706_v61  ;;  %v678_v2 = vand.u32 2147483647, %v3705_v62  ;;  %v3717_v34 = vld [vmem:[%s6736_s1 + $0x1b0] sm:$0xff]  ;;  %v3722_v49 = vld [vmem:[%s6736_s1 + $0x1d8] sm:$0xff] }
  0x46   :  { %v691_v37 = vand.u32 2147483647, %v3718_v33  ;;  %v690_v38 = vand.u32 2147483647, %v3717_v34  ;;  %v3721_v50 = vld [vmem:[%s6736_s1 + $0x1d0] sm:$0xff]  ;;  %v3734_v33 = vld [vmem:[%s6737_s2 + $0x138] sm:$0xff] }
  0x47   :  { %v695_v55 = vand.u32 2147483647, %v3722_v49  ;;  %v694_v56 = vand.u32 2147483647, %v3721_v50  ;;  %v3733_v34 = vld [vmem:[%s6737_s2 + $0x130] sm:$0xff]  ;;  %v3738_v49 = vld [vmem:[%s6737_s2 + $0x158] sm:$0xff] }
  0x48   :  { %333 = vperm.xlu1 %3954, %v287_v3   ;;  %328 = vperm.xlu0 %3953, %v286_v4   ;;  %v3708_v3 = vld [vmem:[%s6736_s1 + $0x168] sm:$0xff]  ;;  %v3707_v4 = vld [vmem:[%s6736_s1 + $0x160] sm:$0xff]  ;;  %v3737_v50 = vld [vmem:[%s6737_s2 + $0x150] sm:$0xff] }
  0x4c   :  { %343 = vperm.xlu1 %3954, %v289_v5   ;;  %338 = vperm.xlu0 %3953, %v288_v6  }
  0x50   :  { %353 = vperm.xlu1 %3954, %v291_v7   ;;  %348 = vperm.xlu0 %3953, %v290_v8   ;;  %v681_v7 = vand.u32 2147483647, %v3708_v3  ;;  %v680_v8 = vand.u32 2147483647, %v3707_v4  ;;  %v3726_v3 = vld [vmem:[%s6736_s1 + $0x1f8] sm:$0xff]  ;;  %v3725_v4 = vld [vmem:[%s6736_s1 + $0x1f0] sm:$0xff] }
  0x54   :  { %363 = vperm.xlu1 %3954, %v293_v9   ;;  %358 = vperm.xlu0 %3953, %v292_v10   ;;  %v3710_v9 = vld [vmem:[%s6736_s1 + $0x178] sm:$0xff]  ;;  %v3709_v10 = vld [vmem:[%s6736_s1 + $0x170] sm:$0xff] }
  0x58   :  { %373 = vperm.xlu1 %3954, %v295_v11   ;;  %368 = vperm.xlu0 %3953, %v294_v12  }
  0x5c   :  { %383 = vperm.xlu1 %3954, %v297_v13   ;;  %378 = vperm.xlu0 %3953, %v296_v14   ;;  %v683_v13 = vand.u32 2147483647, %v3710_v9  ;;  %v682_v14 = vand.u32 2147483647, %v3709_v10  ;;  %v699_v9 = vand.u32 2147483647, %v3726_v3 }
  0x5d   :  { %v698_v10 = vand.u32 2147483647, %v3725_v4  ;;  %v3742_v3 = vld [vmem:[%s6737_s2 + $0x178] sm:$0xff]  ;;  %v3741_v4 = vld [vmem:[%s6737_s2 + $0x170] sm:$0xff] }
  0x60   :  { %393 = vperm.xlu1 %3954, %v299_v15   ;;  %388 = vperm.xlu0 %3953, %v298_v16   ;;  %v3712_v15 = vld [vmem:[%s6736_s1 + $0x188] sm:$0xff]  ;;  %v3711_v16 = vld [vmem:[%s6736_s1 + $0x180] sm:$0xff] }
  0x64   :  { %403 = vperm.xlu1 %3954, %v301_v17   ;;  %398 = vperm.xlu0 %3953, %v300_v18  }
  0x68   :  { %413 = vperm.xlu1 %3954, %v303_v19   ;;  %408 = vperm.xlu0 %3953, %v302_v20   ;;  %v685_v19 = vand.u32 2147483647, %v3712_v15  ;;  %v684_v20 = vand.u32 2147483647, %v3711_v16  ;;  %v3728_v15 = vld [vmem:[%s6737_s2 + $0x108] sm:$0xff]  ;;  %v3727_v16 = vld [vmem:[%s6737_s2 + $0x100] sm:$0xff] }
  0x6c   :  { %423 = vperm.xlu1 %3954, %v305_v21   ;;  %418 = vperm.xlu0 %3953, %v304_v22   ;;  %v3714_v21 = vld [vmem:[%s6736_s1 + $0x198] sm:$0xff]  ;;  %v3713_v22 = vld [vmem:[%s6736_s1 + $0x190] sm:$0xff] }
  0x70   :  { %433 = vperm.xlu1 %3954, %v307_v23   ;;  %428 = vperm.xlu0 %3953, %v306_v24  }
  0x74   :  { %443 = vperm.xlu1 %3954, %v309_v25   ;;  %438 = vperm.xlu0 %3953, %v308_v26   ;;  %v687_v25 = vand.u32 2147483647, %v3714_v21  ;;  %v686_v26 = vand.u32 2147483647, %v3713_v22  ;;  %v3730_v21 = vld [vmem:[%s6737_s2 + $0x118] sm:$0xff]  ;;  %v3729_v22 = vld [vmem:[%s6737_s2 + $0x110] sm:$0xff] }
  0x78   :  { %453 = vperm.xlu1 %3954, %v311_v27   ;;  %448 = vperm.xlu0 %3953, %v310_v28   ;;  %v3716_v27 = vld [vmem:[%s6736_s1 + $0x1a8] sm:$0xff]  ;;  %v3715_v28 = vld [vmem:[%s6736_s1 + $0x1a0] sm:$0xff] }
  0x7c   :  { %463 = vperm.xlu1 %3954, %v313_v29   ;;  %458 = vperm.xlu0 %3953, %v312_v30  }
  0x80   :  { %473 = vperm.xlu1 %3954, %v315_v31   ;;  %468 = vperm.xlu0 %3953, %v314_v32   ;;  %v689_v31 = vand.u32 2147483647, %v3716_v27  ;;  %v688_v32 = vand.u32 2147483647, %v3715_v28  ;;  %v3732_v27 = vld [vmem:[%s6737_s2 + $0x128] sm:$0xff]  ;;  %v3731_v28 = vld [vmem:[%s6737_s2 + $0x120] sm:$0xff] }
  0x83   :  { %v4216_v39 = vpop.permute.xlu1 %98  ;;  %v4218_v40 = vpop.permute.xlu0 %88 }
  0x84   :  { %707 = vperm.xlu1 %3954, %v669_v35   ;;  %702 = vperm.xlu0 %3953, %v668_v36  }
  0x87   :  { %v4226_v45 = vpop.permute.xlu1 %103  ;;  %v4228_v46 = vpop.permute.xlu0 %93 }
  0x88   :  { %717 = vperm.xlu1 %3954, %v671_v41   ;;  %712 = vperm.xlu0 %3953, %v670_v42   ;;  %v3720_v41 = vld [vmem:[%s6736_s1 + $0x1c8] sm:$0xff]  ;;  %v3719_v42 = vld [vmem:[%s6736_s1 + $0x1c0] sm:$0xff] }
  0x8b   :  { %v4236_v51 = vpop.permute.xlu1 %113  ;;  %v4238_v52 = vpop.permute.xlu0 %108 }
  0x8c   :  { %727 = vperm.xlu1 %3954, %v673_v47   ;;  %722 = vperm.xlu0 %3953, %v672_v48   ;;  %v693_v47 = vand.u32 2147483647, %v3720_v41  ;;  %v692_v48 = vand.u32 2147483647, %v3719_v42  ;;  %v3736_v41 = vld [vmem:[%s6737_s2 + $0x148] sm:$0xff]  ;;  %v3735_v42 = vld [vmem:[%s6737_s2 + $0x140] sm:$0xff] }
  0x8f   :  { %v4246_v57 = vpop.permute.xlu1 %123  ;;  %v4248_v58 = vpop.permute.xlu0 %118 }
  0x90   :  { %737 = vperm.xlu1 %3954, %v675_v53   ;;  %732 = vperm.xlu0 %3953, %v674_v54  }
  0x93   :  { %v4256_v63 = vpop.permute.xlu1 %133  ;;  %v4258_v0 = vpop.permute.xlu0 %128 }
  0x94   :  { %747 = vperm.xlu1 %3954, %v677_v59   ;;  %742 = vperm.xlu0 %3953, %v676_v60   ;;  %v3724_v59 = vld [vmem:[%s6736_s1 + $0x1e8] sm:$0xff]  ;;  %v3723_v60 = vld [vmem:[%s6736_s1 + $0x1e0] sm:$0xff] }
  0x97   :  { %v4266_v5 = vpop.permute.xlu1 %143  ;;  %v4268_v6 = vpop.permute.xlu0 %138 }
  0x98   :  { %757 = vperm.xlu1 %3954, %v679_v1   ;;  %752 = vperm.xlu0 %3953, %v678_v2   ;;  %v697_v1 = vand.u32 2147483647, %v3724_v59  ;;  %v696_v2 = vand.u32 2147483647, %v3723_v60  ;;  %v3740_v59 = vld [vmem:[%s6737_s2 + $0x168] sm:$0xff]  ;;  %v3739_v60 = vld [vmem:[%s6737_s2 + $0x160] sm:$0xff] }
  0x9b   :  { %v4276_v11 = vpop.permute.xlu1 %153  ;;  %v4278_v12 = vpop.permute.xlu0 %148 }
  0x9c   :  { %767 = vperm.xlu1 %3954, %v681_v7   ;;  %762 = vperm.xlu0 %3953, %v680_v8  }
  0x9f   :  { %v4286_v17 = vpop.permute.xlu1 %163  ;;  %v4288_v18 = vpop.permute.xlu0 %158 }
  0xa0   :  { %777 = vperm.xlu1 %3954, %v683_v13   ;;  %772 = vperm.xlu0 %3953, %v682_v14  }
  0xa3   :  { %v4296_v23 = vpop.permute.xlu1 %173  ;;  %v4298_v24 = vpop.permute.xlu0 %168 }
  0xa4   :  { %787 = vperm.xlu1 %3954, %v685_v19   ;;  %782 = vperm.xlu0 %3953, %v684_v20  }
  0xa7   :  { %v4306_v29 = vpop.permute.xlu1 %183  ;;  %v4308_v30 = vpop.permute.xlu0 %178 }
  0xa8   :  { %797 = vperm.xlu1 %3954, %v687_v25   ;;  %792 = vperm.xlu0 %3953, %v686_v26  }
  0xab   :  { %v4316_v35 = vpop.permute.xlu1 %193  ;;  %v4318_v36 = vpop.permute.xlu0 %188 }
  0xac   :  { %807 = vperm.xlu1 %3954, %v689_v31   ;;  %802 = vperm.xlu0 %3953, %v688_v32  }
  0xaf   :  { %v4326_v43 = vpop.permute.xlu1 %203  ;;  %v4328_v44 = vpop.permute.xlu0 %198 }
  0xb0   :  { %817 = vperm.xlu1 %3954, %v691_v37   ;;  %812 = vperm.xlu0 %3953, %v690_v38  }
  0xb3   :  { %v4336_v53 = vpop.permute.xlu1 %213  ;;  %v4338_v54 = vpop.permute.xlu0 %208 }
  0xb4   :  { %827 = vperm.xlu1 %3954, %v693_v47   ;;  %822 = vperm.xlu0 %3953, %v692_v48  }
  0xb7   :  { %v4346_v61 = vpop.permute.xlu1 %223  ;;  %v4348_v62 = vpop.permute.xlu0 %218 }
  0xb8   :  { %837 = vperm.xlu1 %3954, %v695_v55   ;;  %832 = vperm.xlu0 %3953, %v694_v56  }
  0xbb   :  { %v4356_v7 = vpop.permute.xlu1 %233  ;;  %v4358_v8 = vpop.permute.xlu0 %228 }
  0xbc   :  { %847 = vperm.xlu1 %3954, %v697_v1   ;;  %842 = vperm.xlu0 %3953, %v696_v2  }
  0xbf   :  { %v4360_v13 = vpop.permute.xlu1 %243  ;;  %v4362_v14 = vpop.permute.xlu0 %238 }
  0xc0   :  { %857 = vperm.xlu1 %3954, %v699_v9   ;;  %852 = vperm.xlu0 %3953, %v698_v10  }
  0xc3   :  { %v4370_v19 = vpop.permute.xlu1 %323  ;;  %v4372_v20 = vpop.permute.xlu0 %318 }
  0xc4   :  { %932 = vperm.xlu1 %3954, %v3728_v15   ;;  %927 = vperm.xlu0 %3953, %v3727_v16   ;;  %v3744_v15 = vld [vmem:[%s6737_s2 + $0x188] sm:$0xff]  ;;  %v3743_v16 = vld [vmem:[%s6737_s2 + $0x180] sm:$0xff] }
  0xc7   :  { %v4380_v25 = vpop.permute.xlu1 %333  ;;  %v4382_v26 = vpop.permute.xlu0 %328 }
  0xc8   :  { %942 = vperm.xlu1 %3954, %v3730_v21   ;;  %937 = vperm.xlu0 %3953, %v3729_v22  }
  0xcb   :  { %v4390_v31 = vpop.permute.xlu1 %343  ;;  %v4392_v32 = vpop.permute.xlu0 %338 }
  0xcc   :  { %952 = vperm.xlu1 %3954, %v3732_v27   ;;  %947 = vperm.xlu0 %3953, %v3731_v28   ;;  %v3746_v27 = vld [vmem:[%s6737_s2 + $0x198] sm:$0xff]  ;;  %v3745_v28 = vld [vmem:[%s6737_s2 + $0x190] sm:$0xff] }
  0xcf   :  { %v4400_v37 = vpop.permute.xlu1 %353  ;;  %v4402_v38 = vpop.permute.xlu0 %348 }
  0xd0   :  { %962 = vperm.xlu1 %3954, %v3734_v33   ;;  %957 = vperm.xlu0 %3953, %v3733_v34  }
  0xd3   :  { %v4410_v47 = vpop.permute.xlu1 %363  ;;  %v4412_v48 = vpop.permute.xlu0 %358 }
  0xd4   :  { %972 = vperm.xlu1 %3954, %v3736_v41   ;;  %967 = vperm.xlu0 %3953, %v3735_v42   ;;  %v3748_v41 = vld [vmem:[%s6737_s2 + $0x1a8] sm:$0xff]  ;;  %v3747_v42 = vld [vmem:[%s6737_s2 + $0x1a0] sm:$0xff] }
  0xd7   :  { %v4420_v55 = vpop.permute.xlu1 %373  ;;  %v4422_v56 = vpop.permute.xlu0 %368 }
  0xd8   :  { %982 = vperm.xlu1 %3954, %v3738_v49   ;;  %977 = vperm.xlu0 %3953, %v3737_v50  }
  0xdb   :  { %v4430_v1 = vpop.permute.xlu1 %383  ;;  %v4432_v2 = vpop.permute.xlu0 %378 }
  0xdc   :  { %992 = vperm.xlu1 %3954, %v3740_v59   ;;  %987 = vperm.xlu0 %3953, %v3739_v60   ;;  %v3750_v59 = vld [vmem:[%s6737_s2 + $0x1b8] sm:$0xff]  ;;  %v3749_v60 = vld [vmem:[%s6737_s2 + $0x1b0] sm:$0xff] }
  0xdf   :  { %v4440_v9 = vpop.permute.xlu1 %393  ;;  %v4442_v10 = vpop.permute.xlu0 %388 }
  0xe0   :  { %1002 = vperm.xlu1 %3954, %v3742_v3   ;;  %997 = vperm.xlu0 %3953, %v3741_v4  }
  0xe3   :  { %v4450_v21 = vpop.permute.xlu1 %403  ;;  %v4452_v22 = vpop.permute.xlu0 %398 }
  0xe4   :  { %6759 = vst [vmem:[#allocation5_spill] sm:$0xff] %v4450_v21  ;;  %6760 = vst [vmem:[#allocation6_spill] sm:$0xff] %v4452_v22  ;;  %1012 = vperm.xlu1 %3954, %v3744_v15   ;;  %1007 = vperm.xlu0 %3953, %v3743_v16   ;;  %v3752_v15 = vld [vmem:[%s6737_s2 + $0x1c8] sm:$0xff]  ;;  %v3751_v16 = vld [vmem:[%s6737_s2 + $0x1c0] sm:$0xff] }
  0xe5   :  { %v3762_v22 = vld [vmem:[%s6736_s1 + $0x218] sm:$0xff]  ;;  %v3761_v21 = vld [vmem:[%s6736_s1 + $0x210] sm:$0xff] }
  0xe7   :  { %v4460_v33 = vpop.permute.xlu1 %413  ;;  %v4462_v34 = vpop.permute.xlu0 %408 }
  0xe8   :  { %1022 = vperm.xlu1 %3954, %v3746_v27   ;;  %1017 = vperm.xlu0 %3953, %v3745_v28  }
  0xeb   :  { %v4470_v49 = vpop.permute.xlu1 %423  ;;  %v4472_v50 = vpop.permute.xlu0 %418 }
  0xec   :  { %6761 = vst [vmem:[#allocation7_spill] sm:$0xff] %v4470_v49  ;;  %6762 = vst [vmem:[#allocation8_spill] sm:$0xff] %v4472_v50  ;;  %1032 = vperm.xlu1 %3954, %v3748_v41   ;;  %1027 = vperm.xlu0 %3953, %v3747_v42   ;;  %v3754_v41 = vld [vmem:[%s6737_s2 + $0x1d8] sm:$0xff]  ;;  %v3753_v42 = vld [vmem:[%s6737_s2 + $0x1d0] sm:$0xff] }
  0xef   :  { %v4480_v3 = vpop.permute.xlu1 %433  ;;  %v4482_v4 = vpop.permute.xlu0 %428 }
  0xf0   :  { %1042 = vperm.xlu1 %3954, %v3750_v59   ;;  %1037 = vperm.xlu0 %3953, %v3749_v60  }
  0xf3   :  { %v4490_v27 = vpop.permute.xlu1 %443  ;;  %v4492_v28 = vpop.permute.xlu0 %438 }
  0xf4   :  { %6763 = vst [vmem:[#allocation9_spill] sm:$0xff] %v4490_v27  ;;  %6764 = vst [vmem:[#allocation10_spill] sm:$0xff] %v4492_v28  ;;  %1052 = vperm.xlu1 %3954, %v3752_v15   ;;  %1047 = vperm.xlu0 %3953, %v3751_v16   ;;  %v3756_v28 = vld [vmem:[%s6737_s2 + $0x1e8] sm:$0xff]  ;;  %v3755_v15 = vld [vmem:[%s6737_s2 + $0x1e0] sm:$0xff] }
  0xf7   :  { %v4500_v59 = vpop.permute.xlu1 %453  ;;  %v4502_v60 = vpop.permute.xlu0 %448 }
  0xf8   :  { %6765 = vst [vmem:[#allocation11_spill] sm:$0xff] %v4500_v59  ;;  %6766 = vst [vmem:[#allocation12_spill] sm:$0xff] %v4502_v60  ;;  %1062 = vperm.xlu1 %3954, %v3754_v41   ;;  %1057 = vperm.xlu0 %3953, %v3753_v42   ;;  %v3758_v60 = vld [vmem:[%s6737_s2 + $0x1f8] sm:$0xff]  ;;  %v3757_v41 = vld [vmem:[%s6737_s2 + $0x1f0] sm:$0xff] }
  0xf9   :  { %v3760_v42 = vld [vmem:[%s6736_s1 + $0x208] sm:$0xff] }
  0xfb   :  { %v4510_v16 = vpop.permute.xlu1 %463  ;;  %v4512_v27 = vpop.permute.xlu0 %458 }
  0xfc   :  { %6767 = vst [vmem:[#allocation13_spill] sm:$0xff] %v4510_v16  ;;  %6768 = vst [vmem:[#allocation14_spill] sm:$0xff] %v4512_v27  ;;  %1072 = vperm.xlu1 %3954, %v3756_v28   ;;  %1067 = vperm.xlu0 %3953, %v3755_v15   ;;  %v3759_v16 = vld [vmem:[%s6736_s1 + $0x200] sm:$0xff]  ;;  %v1278_v15 = vand.u32 2147483647, %v3760_v42 }
  0xfd   :  { %v1277_v27 = vand.u32 2147483647, %v3759_v16  ;;  %v3763_v16 = vld [vmem:[%s6736_s1 + $0x220] sm:$0xff] }
  0xff   :  { %v4526_v59 = vpop.permute.xlu1 %473  ;;  %v4528_v28 = vpop.permute.xlu0 %468 }
 0x100   :  { %6769 = vst [vmem:[#allocation15_spill] sm:$0xff] %v4526_v59  ;;  %6770 = vst [vmem:[#allocation16_spill] sm:$0xff] %v4528_v28  ;;  %1082 = vperm.xlu1 %3954, %v3758_v60   ;;  %1077 = vperm.xlu0 %3953, %v3757_v41   ;;  %v1280_v59 = vand.u32 2147483647, %v3762_v22  ;;  %v1279_v28 = vand.u32 2147483647, %v3761_v21 }
 0x101   :  { %v3764_v60 = vld [vmem:[%s6736_s1 + $0x228] sm:$0xff]  ;;  %v3766_v21 = vld [vmem:[%s6736_s1 + $0x238] sm:$0xff]  ;;  %v3765_v22 = vld [vmem:[%s6736_s1 + $0x230] sm:$0xff] }
 0x103   :  { %v4536_v50 = vpop.permute.xlu1 %707  ;;  %v4538_v49 = vpop.permute.xlu0 %702 }
 0x104   :  { %6771 = vst [vmem:[#allocation17_spill] sm:$0xff] %v4536_v50  ;;  %6772 = vst [vmem:[#allocation18_spill] sm:$0xff] %v4538_v49  ;;  %1316 = vperm.xlu1 %3954, %v1278_v15   ;;  %1311 = vperm.xlu0 %3953, %v1277_v27   ;;  %v1282_v50 = vand.u32 2147483647, %v3764_v60  ;;  %v1281_v49 = vand.u32 2147483647, %v3763_v16 }
 0x107   :  { %v4546_v41 = vpop.permute.xlu1 %717  ;;  %v4548_v42 = vpop.permute.xlu0 %712 }
 0x108   :  { %6773 = vst [vmem:[#allocation19_spill] sm:$0xff] %v4546_v41  ;;  %6774 = vst [vmem:[#allocation20_spill] sm:$0xff] %v4548_v42  ;;  %1326 = vperm.xlu1 %3954, %v1280_v59   ;;  %1321 = vperm.xlu0 %3953, %v1279_v28   ;;  %v1284_v41 = vand.u32 2147483647, %v3766_v21  ;;  %v1283_v42 = vand.u32 2147483647, %v3765_v22 }
 0x109   :  { %v3768_v59 = vld [vmem:[%s6736_s1 + $0x248] sm:$0xff]  ;;  %v3767_v28 = vld [vmem:[%s6736_s1 + $0x240] sm:$0xff] }
 0x10b   :  { %v4556_v27 = vpop.permute.xlu1 %727  ;;  %v4558_v15 = vpop.permute.xlu0 %722 }
 0x10c   :  { %6775 = vst [vmem:[#allocation21_spill] sm:$0xff] %v4556_v27  ;;  %6776 = vst [vmem:[#allocation22_spill] sm:$0xff] %v4558_v15  ;;  %1336 = vperm.xlu1 %3954, %v1282_v50   ;;  %1331 = vperm.xlu0 %3953, %v1281_v49   ;;  %v1286_v27 = vand.u32 2147483647, %v3768_v59  ;;  %v1285_v15 = vand.u32 2147483647, %v3767_v28 }
 0x10d   :  { %v3770_v49 = vld [vmem:[%s6736_s1 + $0x258] sm:$0xff]  ;;  %v3769_v50 = vld [vmem:[%s6736_s1 + $0x250] sm:$0xff] }
 0x10f   :  { %v4566_v60 = vpop.permute.xlu1 %737  ;;  %v4568_v16 = vpop.permute.xlu0 %732 }
 0x110   :  { %6777 = vst [vmem:[#allocation23_spill] sm:$0xff] %v4566_v60  ;;  %6778 = vst [vmem:[#allocation24_spill] sm:$0xff] %v4568_v16  ;;  %1346 = vperm.xlu1 %3954, %v1284_v41   ;;  %1341 = vperm.xlu0 %3953, %v1283_v42   ;;  %v1288_v60 = vand.u32 2147483647, %v3770_v49  ;;  %v1287_v16 = vand.u32 2147483647, %v3769_v50 }
 0x111   :  { %v3772_v41 = vld [vmem:[%s6736_s1 + $0x268] sm:$0xff]  ;;  %v3771_v42 = vld [vmem:[%s6736_s1 + $0x260] sm:$0xff] }
 0x113   :  { %v4576_v21 = vpop.permute.xlu1 %747  ;;  %v4578_v22 = vpop.permute.xlu0 %742 }
 0x114   :  { %6779 = vst [vmem:[#allocation25_spill] sm:$0xff] %v4576_v21  ;;  %6780 = vst [vmem:[#allocation26_spill] sm:$0xff] %v4578_v22  ;;  %1356 = vperm.xlu1 %3954, %v1286_v27   ;;  %1351 = vperm.xlu0 %3953, %v1285_v15   ;;  %v1290_v21 = vand.u32 2147483647, %v3772_v41  ;;  %v1289_v22 = vand.u32 2147483647, %v3771_v42 }
 0x115   :  { %v3774_v27 = vld [vmem:[%s6736_s1 + $0x278] sm:$0xff]  ;;  %v3773_v15 = vld [vmem:[%s6736_s1 + $0x270] sm:$0xff] }
 0x117   :  { %v4586_v59 = vpop.permute.xlu1 %757  ;;  %v4588_v28 = vpop.permute.xlu0 %752 }
 0x118   :  { %6781 = vst [vmem:[#allocation27_spill] sm:$0xff] %v4586_v59  ;;  %6782 = vst [vmem:[#allocation28_spill] sm:$0xff] %v4588_v28  ;;  %1366 = vperm.xlu1 %3954, %v1288_v60   ;;  %1361 = vperm.xlu0 %3953, %v1287_v16   ;;  %v1292_v59 = vand.u32 2147483647, %v3774_v27  ;;  %v1291_v28 = vand.u32 2147483647, %v3773_v15 }
 0x119   :  { %v3776_v60 = vld [vmem:[%s6736_s1 + $0x288] sm:$0xff]  ;;  %v3775_v16 = vld [vmem:[%s6736_s1 + $0x280] sm:$0xff] }
 0x11b   :  { %v4596_v49 = vpop.permute.xlu1 %767  ;;  %v4598_v50 = vpop.permute.xlu0 %762 }
 0x11c   :  { %6783 = vst [vmem:[#allocation29_spill] sm:$0xff] %v4596_v49  ;;  %6784 = vst [vmem:[#allocation30_spill] sm:$0xff] %v4598_v50  ;;  %1376 = vperm.xlu1 %3954, %v1290_v21   ;;  %1371 = vperm.xlu0 %3953, %v1289_v22   ;;  %v1294_v49 = vand.u32 2147483647, %v3776_v60  ;;  %v1293_v50 = vand.u32 2147483647, %v3775_v16 }
 0x11d   :  { %v3778_v21 = vld [vmem:[%s6736_s1 + $0x298] sm:$0xff]  ;;  %v3777_v22 = vld [vmem:[%s6736_s1 + $0x290] sm:$0xff] }
 0x11f   :  { %v4606_v41 = vpop.permute.xlu1 %777  ;;  %v4608_v42 = vpop.permute.xlu0 %772 }
 0x120   :  { %6785 = vst [vmem:[#allocation31_spill] sm:$0xff] %v4606_v41  ;;  %6786 = vst [vmem:[#allocation32_spill] sm:$0xff] %v4608_v42  ;;  %1386 = vperm.xlu1 %3954, %v1292_v59   ;;  %1381 = vperm.xlu0 %3953, %v1291_v28   ;;  %v1296_v41 = vand.u32 2147483647, %v3778_v21  ;;  %v1295_v42 = vand.u32 2147483647, %v3777_v22 }
 0x121   :  { %v3780_v59 = vld [vmem:[%s6736_s1 + $0x2a8] sm:$0xff]  ;;  %v3779_v28 = vld [vmem:[%s6736_s1 + $0x2a0] sm:$0xff] }
 0x123   :  { %v4616_v27 = vpop.permute.xlu1 %787  ;;  %v4618_v15 = vpop.permute.xlu0 %782 }
 0x124   :  { %6787 = vst [vmem:[#allocation33_spill] sm:$0xff] %v4616_v27  ;;  %6788 = vst [vmem:[#allocation34_spill] sm:$0xff] %v4618_v15  ;;  %1396 = vperm.xlu1 %3954, %v1294_v49   ;;  %1391 = vperm.xlu0 %3953, %v1293_v50   ;;  %v1298_v27 = vand.u32 2147483647, %v3780_v59  ;;  %v1297_v15 = vand.u32 2147483647, %v3779_v28 }
 0x125   :  { %v3782_v49 = vld [vmem:[%s6736_s1 + $0x2b8] sm:$0xff]  ;;  %v3781_v50 = vld [vmem:[%s6736_s1 + $0x2b0] sm:$0xff] }
 0x127   :  { %v4626_v60 = vpop.permute.xlu1 %797  ;;  %v4628_v16 = vpop.permute.xlu0 %792 }
 0x128   :  { %6789 = vst [vmem:[#allocation35_spill] sm:$0xff] %v4626_v60  ;;  %6790 = vst [vmem:[#allocation36_spill] sm:$0xff] %v4628_v16  ;;  %1406 = vperm.xlu1 %3954, %v1296_v41   ;;  %1401 = vperm.xlu0 %3953, %v1295_v42   ;;  %v1300_v60 = vand.u32 2147483647, %v3782_v49  ;;  %v1299_v16 = vand.u32 2147483647, %v3781_v50 }
 0x129   :  { %v3784_v41 = vld [vmem:[%s6736_s1 + $0x2c8] sm:$0xff]  ;;  %v3783_v42 = vld [vmem:[%s6736_s1 + $0x2c0] sm:$0xff] }
 0x12b   :  { %v4636_v21 = vpop.permute.xlu1 %807  ;;  %v4638_v22 = vpop.permute.xlu0 %802 }
 0x12c   :  { %6791 = vst [vmem:[#allocation37_spill] sm:$0xff] %v4636_v21  ;;  %6792 = vst [vmem:[#allocation38_spill] sm:$0xff] %v4638_v22  ;;  %1416 = vperm.xlu1 %3954, %v1298_v27   ;;  %1411 = vperm.xlu0 %3953, %v1297_v15   ;;  %v1302_v21 = vand.u32 2147483647, %v3784_v41  ;;  %v1301_v22 = vand.u32 2147483647, %v3783_v42 }
 0x12d   :  { %v3786_v27 = vld [vmem:[%s6736_s1 + $0x2d8] sm:$0xff]  ;;  %v3785_v15 = vld [vmem:[%s6736_s1 + $0x2d0] sm:$0xff] }
 0x12f   :  { %v4646_v59 = vpop.permute.xlu1 %817  ;;  %v4648_v28 = vpop.permute.xlu0 %812 }
 0x130   :  { %6793 = vst [vmem:[#allocation39_spill] sm:$0xff] %v4646_v59  ;;  %6794 = vst [vmem:[#allocation40_spill] sm:$0xff] %v4648_v28  ;;  %1426 = vperm.xlu1 %3954, %v1300_v60   ;;  %1421 = vperm.xlu0 %3953, %v1299_v16   ;;  %v1304_v59 = vand.u32 2147483647, %v3786_v27  ;;  %v1303_v28 = vand.u32 2147483647, %v3785_v15 }
 0x131   :  { %v3788_v60 = vld [vmem:[%s6736_s1 + $0x2e8] sm:$0xff]  ;;  %v3787_v16 = vld [vmem:[%s6736_s1 + $0x2e0] sm:$0xff] }
 0x133   :  { %v4656_v49 = vpop.permute.xlu1 %827  ;;  %v4658_v50 = vpop.permute.xlu0 %822 }
 0x134   :  { %6795 = vst [vmem:[#allocation41_spill] sm:$0xff] %v4656_v49  ;;  %6796 = vst [vmem:[#allocation42_spill] sm:$0xff] %v4658_v50  ;;  %1436 = vperm.xlu1 %3954, %v1302_v21   ;;  %1431 = vperm.xlu0 %3953, %v1301_v22   ;;  %v1306_v49 = vand.u32 2147483647, %v3788_v60  ;;  %v1305_v50 = vand.u32 2147483647, %v3787_v16 }
 0x135   :  { %v3790_v21 = vld [vmem:[%s6736_s1 + $0x2f8] sm:$0xff]  ;;  %v3789_v22 = vld [vmem:[%s6736_s1 + $0x2f0] sm:$0xff]  ;;  %v3792_v60 = vld [vmem:[%s6737_s2 + $0x208] sm:$0xff] }
 0x136   :  { %v3791_v16 = vld [vmem:[%s6737_s2 + $0x200] sm:$0xff] }
 0x137   :  { %v4666_v41 = vpop.permute.xlu1 %837  ;;  %v4668_v42 = vpop.permute.xlu0 %832 }
 0x138   :  { %6797 = vst [vmem:[#allocation43_spill] sm:$0xff] %v4666_v41  ;;  %6798 = vst [vmem:[#allocation44_spill] sm:$0xff] %v4668_v42  ;;  %1446 = vperm.xlu1 %3954, %v1304_v59   ;;  %1441 = vperm.xlu0 %3953, %v1303_v28   ;;  %v1308_v41 = vand.u32 2147483647, %v3790_v21  ;;  %v1307_v42 = vand.u32 2147483647, %v3789_v22 }
 0x139   :  { %v3796_v22 = vld [vmem:[%s6737_s2 + $0x228] sm:$0xff] }
 0x13b   :  { %v4676_v27 = vpop.permute.xlu1 %847  ;;  %v4678_v15 = vpop.permute.xlu0 %842 }
 0x13c   :  { %6799 = vst [vmem:[#allocation45_spill] sm:$0xff] %v4676_v27  ;;  %6800 = vst [vmem:[#allocation46_spill] sm:$0xff] %v4678_v15  ;;  %1456 = vperm.xlu1 %3954, %v1306_v49   ;;  %1451 = vperm.xlu0 %3953, %v1305_v50   ;;  %v3794_v50 = vld [vmem:[%s6737_s2 + $0x218] sm:$0xff] }
 0x13f   :  { %v4680_v59 = vpop.permute.xlu1 %857  ;;  %v4682_v28 = vpop.permute.xlu0 %852 }
 0x140   :  { %6801 = vst [vmem:[#allocation47_spill] sm:$0xff] %v4680_v59  ;;  %6802 = vst [vmem:[#allocation48_spill] sm:$0xff] %v4682_v28  ;;  %1466 = vperm.xlu1 %3954, %v1308_v41   ;;  %1461 = vperm.xlu0 %3953, %v1307_v42   ;;  %v3793_v41 = vld [vmem:[%s6737_s2 + $0x210] sm:$0xff] }
 0x143   :  { %v4690_v27 = vpop.permute.xlu1 %932  ;;  %v4692_v49 = vpop.permute.xlu0 %927 }
 0x144   :  { %6803 = vst [vmem:[#allocation49_spill] sm:$0xff] %v4690_v27  ;;  %6804 = vst [vmem:[#allocation50_spill] sm:$0xff] %v4692_v49  ;;  %1541 = vperm.xlu1 %3954, %v3792_v60   ;;  %1536 = vperm.xlu0 %3953, %v3791_v16   ;;  %v3795_v60 = vld [vmem:[%s6737_s2 + $0x220] sm:$0xff]  ;;  %v3798_v27 = vld [vmem:[%s6737_s2 + $0x238] sm:$0xff] }
 0x147   :  { %v4700_v42 = vpop.permute.xlu1 %942  ;;  %v4702_v21 = vpop.permute.xlu0 %937 }
 0x148   :  { %6805 = vst [vmem:[#allocation51_spill] sm:$0xff] %v4700_v42  ;;  %6806 = vst [vmem:[#allocation52_spill] sm:$0xff] %v4702_v21  ;;  %1551 = vperm.xlu1 %3954, %v3794_v50   ;;  %1546 = vperm.xlu0 %3953, %v3793_v41   ;;  %v3797_v50 = vld [vmem:[%s6737_s2 + $0x230] sm:$0xff] }
 0x14b   :  { %v4710_v16 = vpop.permute.xlu1 %952  ;;  %v4712_v49 = vpop.permute.xlu0 %947 }
 0x14c   :  { %6807 = vst [vmem:[#allocation53_spill] sm:$0xff] %v4710_v16  ;;  %6808 = vst [vmem:[#allocation54_spill] sm:$0xff] %v4712_v49  ;;  %1561 = vperm.xlu1 %3954, %v3796_v22   ;;  %1556 = vperm.xlu0 %3953, %v3795_v60   ;;  %v3800_v49 = vld [vmem:[%s6737_s2 + $0x248] sm:$0xff]  ;;  %v3799_v22 = vld [vmem:[%s6737_s2 + $0x240] sm:$0xff] }
 0x14f   :  { %v4720_v41 = vpop.permute.xlu1 %962  ;;  %v4722_v28 = vpop.permute.xlu0 %957 }
 0x150   :  { %6809 = vst [vmem:[#allocation55_spill] sm:$0xff] %v4720_v41  ;;  %6810 = vst [vmem:[#allocation56_spill] sm:$0xff] %v4722_v28  ;;  %1571 = vperm.xlu1 %3954, %v3798_v27   ;;  %1566 = vperm.xlu0 %3953, %v3797_v50   ;;  %v3802_v28 = vld [vmem:[%s6737_s2 + $0x258] sm:$0xff]  ;;  %v3801_v27 = vld [vmem:[%s6737_s2 + $0x250] sm:$0xff] }
 0x153   :  { %v4730_v60 = vpop.permute.xlu1 %972  ;;  %v4732_v16 = vpop.permute.xlu0 %967 }
 0x154   :  { %6811 = vst [vmem:[#allocation57_spill] sm:$0xff] %v4730_v60  ;;  %6812 = vst [vmem:[#allocation58_spill] sm:$0xff] %v4732_v16  ;;  %1581 = vperm.xlu1 %3954, %v3800_v49   ;;  %1576 = vperm.xlu0 %3953, %v3799_v22   ;;  %v4747_v60 = vld [vmem:[%s6735_s0] ss:$0 sm:$0xff]  ;;  %v3804_v49 = vld [vmem:[%s6737_s2 + $0x268] sm:$0xff] }
 0x155   :  { %v3803_v22 = vld [vmem:[%s6737_s2 + $0x260] sm:$0xff]  ;;  %v254_v16 = vmul.f32 %v4747_v60, %v4216_v39 }
 0x157   :  { %v4740_v50 = vpop.permute.xlu1 %982  ;;  %v4742_v41 = vpop.permute.xlu0 %977  ;;  %v478_v15 = vadd.f32 %v4382_v26, %v254_v16  ;;  %v259_v26 = vmul.f32 %v4747_v60, %v4246_v57  ;;  %v258_v16 = vmul.f32 %v4747_v60, %v4248_v58  ;;  %v3808_v57 = vld [vmem:[%s6737_s2 + $0x288] sm:$0xff]  ;;  %v265_v58 = vmul.f32 %v4747_v60, %v4276_v11 }
 0x158   :  { %6813 = vst [vmem:[#allocation59_spill] sm:$0xff] %v4740_v50  ;;  %6814 = vst [vmem:[#allocation60_spill] sm:$0xff] %v4742_v41  ;;  %1591 = vperm.xlu1 %3954, %v3802_v28   ;;  %1586 = vperm.xlu0 %3953, %v3801_v27   ;;  %v252_v41 = vmul.f32 %v4747_v60, %v4218_v40  ;;  %v255_v50 = vmul.f32 %v4747_v60, %v4226_v45  ;;  %v3806_v40 = vld [vmem:[%s6737_s2 + $0x278] sm:$0xff]  ;;  %v3805_v45 = vld [vmem:[%s6737_s2 + $0x270] sm:$0xff] }
 0x159   :  { %v253_v28 = vmul.f32 %v4747_v60, %v4228_v46  ;;  %v257_v46 = vmul.f32 %v4747_v60, %v4236_v51  ;;  %v263_v51 = vmul.f32 %v4747_v60, %v4266_v5  ;;  %v266_v5 = vmul.f32 %v4747_v60, %v4288_v18 }
 0x15a   :  { %v476_v42 = vadd.f32 %v4372_v20, %v252_v41  ;;  %v479_v39 = vadd.f32 %v4380_v25, %v255_v50  ;;  %v261_v41 = vmul.f32 %v4747_v60, %v4256_v63  ;;  %v260_v50 = vmul.f32 %v4747_v60, %v4258_v0 }
 0x15b   :  { %v4763_v27 = vpop.permute.xlu1 %992  ;;  %v4765_v59 = vpop.permute.xlu0 %987  ;;  %v477_v21 = vadd.f32 %v4370_v19, %v253_v28  ;;  %v256_v19 = vmul.f32 %v4747_v60, %v4238_v52  ;;  %v262_v52 = vmul.f32 %v4747_v60, %v4268_v6  ;;  %v264_v63 = vmul.f32 %v4747_v60, %v4278_v12  ;;  %v3807_v6 = vld [vmem:[%s6737_s2 + $0x280] sm:$0xff] }
 0x15c   :  { %6815 = vst [vmem:[#allocation61_spill] sm:$0xff] %v4765_v59  ;;  %1601 = vperm.xlu1 %3954, %v3804_v49   ;;  %1596 = vperm.xlu0 %3953, %v3803_v22   ;;  %v515_v22 = vmax.f32 %v478_v15, %v479_v39  ;;  %v267_v0 = vmul.f32 %v4747_v60, %v4286_v17 }
 0x15d   :  { %v508_v49 = vmax.f32 %v476_v42, %v477_v21  ;;  %v269_v15 = vmul.f32 %v4747_v60, %v4296_v23  ;;  %v268_v42 = vmul.f32 %v4747_v60, %v4298_v24  ;;  %v271_v11 = vmul.f32 %v4747_v60, %v4306_v29 }
 0x15e   :  { %v270_v12 = vmul.f32 %v4747_v60, %v4308_v30  ;;  %v273_v18 = vmul.f32 %v4747_v60, %v4316_v35  ;;  %v272_v28 = vmul.f32 %v4747_v60, %v4318_v36  ;;  %v275_v23 = vmul.f32 %v4747_v60, %v4326_v43  ;;  %v3810_v36 = vld [vmem:[%s6737_s2 + $0x298] sm:$0xff] }
 0x15f   :  { %v4781_v20 = vpop.permute.xlu1 %1002  ;;  %v4783_v25 = vpop.permute.xlu0 %997  ;;  %v274_v24 = vmul.f32 %v4747_v60, %v4328_v44  ;;  %v4833_v29 = vmul.f32 %v4747_v60, %v4336_v53  ;;  %v4837_v30 = vmul.f32 %v4747_v60, %v4338_v54  ;;  %v509_v39 = vrot.slane %v508_v49, 4 }
 0x160   :  { %1611 = vperm.xlu1 %3954, %v3806_v40   ;;  %1606 = vperm.xlu0 %3953, %v3805_v45   ;;  %v516_v35 = vrot.slane %v515_v22, 4  ;;  %v279_v43 = vmul.f32 %v4747_v60, %v4346_v61  ;;  %v278_v44 = vmul.f32 %v4747_v60, %v4348_v62  ;;  %v281_v53 = vmul.f32 %v4747_v60, %v4356_v7  ;;  %v3809_v40 = vld [vmem:[%s6737_s2 + $0x290] sm:$0xff] }
 0x161   :  { %v280_v54 = vmul.f32 %v4747_v60, %v4358_v8  ;;  %v481_v45 = vadd.f32 %v4390_v31, %v257_v46  ;;  %v482_v61 = vadd.f32 %v4402_v38, %v258_v16  ;;  %v487_v7 = vadd.f32 %v4420_v55, %v263_v51  ;;  %v3812_v55 = vld [vmem:[%s6737_s2 + $0x2a8] sm:$0xff] }
 0x162   :  { %v486_v8 = vadd.f32 %v4422_v56, %v262_v52  ;;  %v490_v59 = vadd.f32 %v4442_v10, %v266_v5  ;;  %v283_v31 = vmul.f32 %v4747_v60, %v4360_v13  ;;  %v4871_v38 = vmax.f32 %v515_v22, %v516_v35  ;;  %v6818_v52 = vld [vmem:[#allocation7_spill] sm:$0xff]  ;;  %v6819_v22 = vld [vmem:[#allocation8_spill] sm:$0xff]  ;;  %v6827_v35 = vld [vmem:[#allocation14_spill] sm:$0xff] }
 0x163   :  { %v4819_v17 = vpop.permute.xlu1 %1012  ;;  %v4821_v21 = vpop.permute.xlu0 %1007  ;;  %v489_v56 = vadd.f32 %v4430_v1, %v265_v58  ;;  %v499_v10 = vadd.f32 %v4480_v3, %v275_v23  ;;  %v498_v13 = vadd.f32 %v4482_v4, %v274_v24  ;;  %v495_v3 = vadd.f32 %v4460_v33, %v271_v11  ;;  %v6823_v33 = vld [vmem:[#allocation6_spill] sm:$0xff]  ;;  %v6826_v24 = vld [vmem:[#allocation13_spill] sm:$0xff] }
 0x164   :  { %6816 = vst [vmem:[#allocation62_spill] sm:$0xff] %v4819_v17  ;;  %6817 = vst [vmem:[#allocation63_spill] sm:$0xff] %v4821_v21  ;;  %1621 = vperm.xlu1 %3954, %v3808_v57   ;;  %1616 = vperm.xlu0 %3953, %v3807_v6   ;;  %v480_v57 = vadd.f32 %v4392_v32, %v256_v19  ;;  %v483_v6 = vadd.f32 %v4400_v37, %v259_v26 }
 0x165   :  { %v491_v17 = vadd.f32 %v4440_v9, %v267_v0  ;;  %v282_v32 = vmul.f32 %v4747_v60, %v4362_v14  ;;  %v4869_v37 = vmax.f32 %v508_v49, %v509_v39  ;;  %v488_v9 = vadd.f32 %v4432_v2, %v264_v63  ;;  %v3811_v14 = vld [vmem:[%s6737_s2 + $0x2a0] sm:$0xff]  ;;  %v6820_v63 = vld [vmem:[#allocation15_spill] sm:$0xff] }
 0x166   :  { %v522_v60 = vmax.f32 %v480_v57, %v481_v45  ;;  %v529_v46 = vmax.f32 %v482_v61, %v483_v6  ;;  %v485_v19 = vadd.f32 %v4410_v47, %v261_v41  ;;  %v484_v26 = vadd.f32 %v4412_v48, %v260_v50  ;;  %v6821_v47 = vld [vmem:[#allocation16_spill] sm:$0xff] }
 0x167   :  { %v4857_v21 = vpop.permute.xlu1 %1022  ;;  %v4859_v62 = vpop.permute.xlu0 %1017  ;;  %v543_v1 = vmax.f32 %v486_v8, %v487_v7  ;;  %v557_v2 = vmax.f32 %v490_v59, %v491_v17  ;;  %v494_v4 = vadd.f32 %v4462_v34, %v270_v12  ;;  %v497_v49 = vadd.f32 %v6818_v52, %v273_v18  ;;  %v3814_v48 = vld [vmem:[%s6737_s2 + $0x2b8] sm:$0xff]  ;;  %v6822_v59 = vld [vmem:[#allocation5_spill] sm:$0xff]  ;;  %v3813_v12 = vld [vmem:[%s6737_s2 + $0x2b0] sm:$0xff] }
 0x168   :  { %1631 = vperm.xlu1 %3954, %v3810_v36   ;;  %1626 = vperm.xlu0 %3953, %v3809_v40   ;;  %v496_v58 = vadd.f32 %v6819_v22, %v272_v28  ;;  %v507_v0 = vadd.f32 %v6820_v63, %v283_v31  ;;  %v506_v41 = vadd.f32 %v6821_v47, %v282_v32  ;;  %v6824_v17 = vld [vmem:[#allocation11_spill] sm:$0xff]  ;;  %v6825_v28 = vld [vmem:[#allocation12_spill] sm:$0xff]  ;;  %v6828_v7 = vld [vmem:[#allocation9_spill] sm:$0xff]  ;;  %v523_v31 = vrot.slane %v522_v60, 4 }
 0x169   :  { %v550_v50 = vmax.f32 %v488_v9, %v489_v56  ;;  %v493_v5 = vadd.f32 %v6822_v59, %v269_v15  ;;  %v492_v11 = vadd.f32 %v6823_v33, %v268_v42  ;;  %v585_v34 = vmax.f32 %v498_v13, %v499_v10  ;;  %v3815_v9 = vld [vmem:[%s6737_s2 + $0x2c0] sm:$0xff] }
 0x16a   :  { %v503_v18 = vadd.f32 %v6824_v17, %v279_v43  ;;  %v502_v23 = vadd.f32 %v6825_v28, %v278_v44  ;;  %v505_v39 = vadd.f32 %v6826_v24, %v281_v53  ;;  %v504_v36 = vadd.f32 %v6827_v35, %v280_v54  ;;  %v6829_v44 = vld [vmem:[#allocation10_spill] sm:$0xff] }
 0x16b   :  { %v4885_v16 = vpop.permute.xlu1 %1032  ;;  %v4887_v51 = vpop.permute.xlu0 %1027  ;;  %v518_v15 = vrot.slane %v4871_v38, 2  ;;  %v536_v42 = vmax.f32 %v484_v26, %v485_v19  ;;  %v558_v57 = vrot.slane %v557_v2, 4  ;;  %v571_v6 = vmax.f32 %v494_v4, %v495_v3  ;;  %v3816_v54 = vld [vmem:[%s6737_s2 + $0x2c8] sm:$0xff] }
 0x16c   :  { %1641 = vperm.xlu1 %3954, %v3812_v55   ;;  %1636 = vperm.xlu0 %3953, %v3811_v14   ;;  %v578_v61 = vmax.f32 %v496_v58, %v497_v49  ;;  %v501_v43 = vadd.f32 %v6828_v7, %v4833_v29  ;;  %v500_v8 = vadd.f32 %v6829_v44, %v4837_v30  ;;  %v530_v32 = vrot.slane %v529_v46, 4 }
 0x16d   :  { %v613_v53 = vmax.f32 %v506_v41, %v507_v0  ;;  %v544_v55 = vrot.slane %v543_v1, 4  ;;  %v551_v56 = vrot.slane %v550_v50, 4  ;;  %v564_v10 = vmax.f32 %v492_v11, %v493_v5  ;;  %v3818_v0 = vld [vmem:[%s6737_s2 + $0x2d8] sm:$0xff] }
 0x16e   :  { %v586_v13 = vrot.slane %v585_v34, 4  ;;  %v599_v29 = vmax.f32 %v502_v23, %v503_v18  ;;  %v606_v14 = vmax.f32 %v504_v36, %v505_v39  ;;  %v511_v26 = vrot.slane %v4869_v37, 2 }
 0x16f   :  { %v4907_v40 = vpop.permute.xlu1 %1042  ;;  %v4909_v45 = vpop.permute.xlu0 %1037  ;;  %v537_v3 = vrot.slane %v536_v42, 4  ;;  %v559_v4 = vmax.f32 %v557_v2, %v558_v57  ;;  %v572_v52 = vrot.slane %v571_v6, 4  ;;  %v519_v49 = vmax.f32 %v4871_v38, %v518_v15  ;;  %v3817_v2 = vld [vmem:[%s6737_s2 + $0x2d0] sm:$0xff] }
 0x170   :  { %1651 = vperm.xlu1 %3954, %v3814_v48   ;;  %1646 = vperm.xlu0 %3953, %v3813_v12   ;;  %v579_v22 = vrot.slane %v578_v61, 4  ;;  %v592_v58 = vmax.f32 %v500_v8, %v501_v43  ;;  %v614_v63 = vrot.slane %v613_v53, 4  ;;  %v524_v47 = vmax.f32 %v522_v60, %v523_v31 }
 0x171   :  { %v531_v41 = vmax.f32 %v529_v46, %v530_v32  ;;  %v545_v48 = vmax.f32 %v543_v1, %v544_v55  ;;  %v552_v59 = vmax.f32 %v550_v50, %v551_v56  ;;  %v565_v5 = vrot.slane %v564_v10, 4 }
 0x172   :  { %v587_v33 = vmax.f32 %v585_v34, %v586_v13  ;;  %v600_v11 = vrot.slane %v599_v29, 4  ;;  %v607_v38 = vrot.slane %v606_v14, 4  ;;  %v4939_v18 = vmax.f32 %v4869_v37, %v511_v26  ;;  %v3820_v34 = vld [vmem:[%s6737_s2 + $0x2e8] sm:$0xff]  ;;  %v3819_v37 = vld [vmem:[%s6737_s2 + $0x2e0] sm:$0xff] }
 0x173   :  { %v4922_v19 = vpop.permute.xlu1 %1052  ;;  %v4924_v30 = vpop.permute.xlu0 %1047  ;;  %v538_v28 = vmax.f32 %v536_v42, %v537_v3  ;;  %v560_v60 = vrot.slane %v559_v4, 2  ;;  %v573_v46 = vmax.f32 %v571_v6, %v572_v52  ;;  %v520_v1 = vrot.slane %v519_v49, 1  ;;  %v3821_v3 = vld [vmem:[%s6737_s2 + $0x2f0] sm:$0xff] }
 0x174   :  { %6830 = vst [vmem:[#allocation7_spill] sm:$0xff] %v4922_v19  ;;  %6831 = vst [vmem:[#allocation8_spill] sm:$0xff] %v4924_v30  ;;  %1661 = vperm.xlu1 %3954, %v3816_v54   ;;  %1656 = vperm.xlu0 %3953, %v3815_v9   ;;  %v580_v50 = vmax.f32 %v578_v61, %v579_v22  ;;  %v593_v23 = vrot.slane %v592_v58, 4  ;;  %v615_v24 = vmax.f32 %v613_v53, %v614_v63  ;;  %v3822_v9 = vld [vmem:[%s6737_s2 + $0x2f8] sm:$0xff] }
 0x175   :  { %v525_v39 = vrot.slane %v524_v47, 2  ;;  %v532_v35 = vrot.slane %v531_v41, 2  ;;  %v546_v36 = vrot.slane %v545_v48, 2  ;;  %v553_v15 = vrot.slane %v552_v59, 2 }
 0x176   :  { %v566_v42 = vmax.f32 %v564_v10, %v565_v5  ;;  %v588_v57 = vrot.slane %v587_v33, 2  ;;  %v601_v6 = vmax.f32 %v599_v29, %v600_v11  ;;  %v608_v7 = vmax.f32 %v606_v14, %v607_v38  ;;  %v1855_v10 = vld [vmem:[%s6738_s3 + $0x8] sm:$0xff] }
 0x177   :  { %v4934_v12 = vpop.permute.xlu1 %1062  ;;  %v4936_v17 = vpop.permute.xlu0 %1057  ;;  %v513_v44 = vrot.slane %v4939_v18, 1  ;;  %v539_v8 = vrot.slane %v538_v28, 2  ;;  %v561_v53 = vmax.f32 %v559_v4, %v560_v60  ;;  %v574_v54 = vrot.slane %v573_v46, 2  ;;  %v1854_v4 = vld [vmem:[%s6738_s3] sm:$0xff] }
 0x178   :  { %1671 = vperm.xlu1 %3954, %v3818_v0   ;;  %1666 = vperm.xlu0 %3953, %v3817_v2   ;;  %v4952_v31 = vmax.f32 %v519_v49, %v520_v1  ;;  %v581_v32 = vrot.slane %v580_v50, 2  ;;  %v594_v55 = vmax.f32 %v592_v58, %v593_v23  ;;  %v616_v56 = vrot.slane %v615_v24, 2 }
 0x179   :  { %v526_v13 = vmax.f32 %v524_v47, %v525_v39  ;;  %v533_v29 = vmax.f32 %v531_v41, %v532_v35  ;;  %v547_v14 = vmax.f32 %v545_v48, %v546_v36  ;;  %v554_v26 = vmax.f32 %v552_v59, %v553_v15 }
 0x17a   :  { %v567_v52 = vrot.slane %v566_v42, 2  ;;  %v589_v49 = vmax.f32 %v587_v33, %v588_v57  ;;  %v602_v22 = vrot.slane %v601_v6, 2  ;;  %v609_v58 = vrot.slane %v608_v7, 2  ;;  %v1857_v33 = vld [vmem:[%s6738_s3 + $0x18] sm:$0xff] }
 0x17b   :  { %v4947_v61 = vpop.permute.xlu1 %1072  ;;  %v4949_v43 = vpop.permute.xlu0 %1067  ;;  %v540_v47 = vmax.f32 %v538_v28, %v539_v8  ;;  %v562_v41 = vrot.slane %v561_v53, 1  ;;  %v575_v48 = vmax.f32 %v573_v46, %v574_v54  ;;  %v1887_v59 = vand.u32 2147483647, %v1855_v10  ;;  %v1856_v28 = vld [vmem:[%s6738_s3 + $0x10] sm:$0xff] }
 0x17c   :  { %6832 = vst [vmem:[#allocation15_spill] sm:$0xff] %v4947_v61  ;;  %6833 = vst [vmem:[#allocation16_spill] sm:$0xff] %v4949_v43  ;;  %1681 = vperm.xlu1 %3954, %v3820_v34   ;;  %1676 = vperm.xlu0 %3953, %v3819_v37   ;;  %v582_v2 = vmax.f32 %v580_v50, %v581_v32  ;;  %v595_v5 = vrot.slane %v594_v55, 2  ;;  %v617_v11 = vmax.f32 %v615_v24, %v616_v56  ;;  %v6894_v61 = vld [vmem:[#allocation55_spill] sm:$0xff] }
 0x17d   :  { %v1886_v38 = vand.u32 2147483647, %v1854_v4  ;;  %v527_v60 = vrot.slane %v526_v13, 1  ;;  %v534_v1 = vrot.slane %v533_v29, 1  ;;  %v548_v23 = vrot.slane %v547_v14, 1 }
 0x17e   :  { %v555_v34 = vrot.slane %v554_v26, 1  ;;  %v568_v46 = vmax.f32 %v566_v42, %v567_v52  ;;  %v590_v39 = vrot.slane %v589_v49, 1  ;;  %v603_v35 = vmax.f32 %v601_v6, %v602_v22  ;;  %v1859_v42 = vld [vmem:[%s6738_s3 + $0x28] sm:$0xff] }
 0x17f   :  { %v4966_v63 = vpop.permute.xlu1 %1082  ;;  %v4968_v0 = vpop.permute.xlu0 %1077  ;;  %v610_v50 = vmax.f32 %v608_v7, %v609_v58  ;;  %v541_v15 = vrot.slane %v540_v47, 1  ;;  %v563_v37 = vmax.f32 %v561_v53, %v562_v41  ;;  %v576_v57 = vrot.slane %v575_v48, 1  ;;  %v1858_v53 = vld [vmem:[%s6738_s3 + $0x20] sm:$0xff] }
 0x180   :  { %1691 = vperm.xlu1 %3954, %v3822_v9   ;;  %1686 = vperm.xlu0 %3953, %v3821_v3   ;;  %v1889_v8 = vand.u32 2147483647, %v1857_v33  ;;  %v583_v54 = vrot.slane %v582_v2, 1  ;;  %v596_v32 = vmax.f32 %v594_v55, %v595_v5  ;;  %v618_v56 = vrot.slane %v617_v11, 1 }
 0x181   :  { %v1888_v9 = vand.u32 2147483647, %v1856_v28  ;;  %v528_v6 = vmax.f32 %v526_v13, %v527_v60  ;;  %v535_v7 = vmax.f32 %v533_v29, %v534_v1  ;;  %v549_v10 = vmax.f32 %v547_v14, %v548_v23 }
 0x182   :  { %v556_v3 = vmax.f32 %v554_v26, %v555_v34  ;;  %v569_v4 = vrot.slane %v568_v46, 1  ;;  %v591_v52 = vmax.f32 %v589_v49, %v590_v39  ;;  %v604_v22 = vrot.slane %v603_v35, 1  ;;  %v1861_v49 = vld [vmem:[%s6738_s3 + $0x38] sm:$0xff] }
 0x183   :  { %v4976_v36 = vpop.permute.xlu1 %1316  ;;  %v4978_v24 = vpop.permute.xlu0 %1311  ;;  %v611_v58 = vrot.slane %v610_v50, 1  ;;  %v623_v5 = vmin.f32 %v535_v7, %v563_v37  ;;  %v1891_v13 = vand.u32 2147483647, %v1859_v42  ;;  %v584_v29 = vmax.f32 %v582_v2, %v583_v54 }
 0x184   :  { %6834 = vst [vmem:[#allocation5_spill] sm:$0xff] %v4976_v36  ;;  %6835 = vst [vmem:[#allocation6_spill] sm:$0xff] %v4978_v24  ;;  %1925 = vperm.xlu1 %3954, %v1887_v59   ;;  %1920 = vperm.xlu0 %3953, %v1886_v38   ;;  %v542_v59 = vmax.f32 %v540_v47, %v541_v15  ;;  %v577_v38 = vmax.f32 %v575_v48, %v576_v57  ;;  %v597_v14 = vrot.slane %v596_v32, 1  ;;  %v1860_v48 = vld [vmem:[%s6738_s3 + $0x30] sm:$0xff]  ;;  %v6890_v36 = vld [vmem:[#allocation52_spill] sm:$0xff] }
 0x185   :  { %v619_v26 = vmax.f32 %v617_v11, %v618_v56  ;;  %v1890_v33 = vand.u32 2147483647, %v1858_v53  ;;  %v514_v60 = vmax.f32 %v4939_v18, %v513_v44  ;;  %v621_v1 = vmin.f32 %v4952_v31, %v549_v10  ;;  %v1864_v53 = vld [vmem:[%s6738_s3 + $0x50] sm:$0xff] }
 0x186   :  { %v622_v47 = vmin.f32 %v528_v6, %v556_v3  ;;  %v570_v2 = vmax.f32 %v568_v46, %v569_v4  ;;  %v627_v23 = vmin.f32 %v623_v5, %v591_v52  ;;  %v605_v11 = vmax.f32 %v603_v35, %v604_v22  ;;  %v1863_v46 = vld [vmem:[%s6738_s3 + $0x48] sm:$0xff]  ;;  %v1862_v35 = vld [vmem:[%s6738_s3 + $0x40] sm:$0xff]  ;;  %v1865_v3 = vld [vmem:[%s6738_s3 + $0x58] sm:$0xff] }
 0x187   :  { %v4986_v55 = vpop.permute.xlu1 %1326  ;;  %v4988_v41 = vpop.permute.xlu0 %1321  ;;  %v612_v34 = vmax.f32 %v610_v50, %v611_v58  ;;  %v620_v15 = vmin.f32 %v514_v60, %v542_v59  ;;  %v625_v37 = vmin.f32 %v621_v1, %v577_v38  ;;  %v1893_v57 = vand.u32 2147483647, %v1861_v49  ;;  %v1867_v38 = vld [vmem:[%s6738_s3 + $0x68] sm:$0xff] }
 0x188   :  { %6836 = vst [vmem:[#allocation11_spill] sm:$0xff] %v4986_v55  ;;  %6837 = vst [vmem:[#allocation12_spill] sm:$0xff] %v4988_v41  ;;  %1935 = vperm.xlu1 %3954, %v1889_v8   ;;  %1930 = vperm.xlu0 %3953, %v1888_v9   ;;  %v626_v18 = vmin.f32 %v622_v47, %v584_v29  ;;  %v598_v44 = vmax.f32 %v596_v32, %v597_v14  ;;  %v1892_v8 = vand.u32 2147483647, %v1860_v48  ;;  %v6847_v60 = vld [vmem:[#allocation18_spill] sm:$0xff]  ;;  %v1869_v48 = vld [vmem:[%s6738_s3 + $0x78] sm:$0xff] }
 0x189   :  { %v631_v31 = vmin.f32 %v627_v23, %v619_v26  ;;  %v624_v50 = vmin.f32 %v620_v15, %v570_v2  ;;  %v629_v54 = vmin.f32 %v625_v37, %v605_v11  ;;  %v1895_v32 = vand.u32 2147483647, %v1863_v46  ;;  %v6848_v2 = vld [vmem:[#allocation19_spill] sm:$0xff]  ;;  %v6849_v11 = vld [vmem:[#allocation20_spill] sm:$0xff]  ;;  %v6850_v15 = vld [vmem:[#allocation21_spill] sm:$0xff] }
 0x18a   :  { %v630_v56 = vmin.f32 %v626_v18, %v612_v34  ;;  %v1894_v10 = vand.u32 2147483647, %v1862_v35  ;;  %v1897_v58 = vand.u32 2147483647, %v1865_v3  ;;  %v1896_v5 = vand.u32 2147483647, %v1864_v53 }
 0x18b   :  { %v5000_v28 = vpop.permute.xlu1 %1336  ;;  %v5002_v39 = vpop.permute.xlu0 %1331  ;;  %v628_v6 = vmin.f32 %v624_v50, %v598_v44  ;;  %v1899_v26 = vand.u32 2147483647, %v1867_v38  ;;  %v1868_v44 = vld [vmem:[%s6738_s3 + $0x70] sm:$0xff]  ;;  %v6853_v46 = vld [vmem:[#allocation24_spill] sm:$0xff]  ;;  %v6854_v50 = vld [vmem:[#allocation25_spill] sm:$0xff] }
 0x18c   :  { %6838 = vst [vmem:[#allocation13_spill] sm:$0xff] %v5000_v28  ;;  %6839 = vst [vmem:[#allocation14_spill] sm:$0xff] %v5002_v39  ;;  %1945 = vperm.xlu1 %3954, %v1891_v13   ;;  %1940 = vperm.xlu0 %3953, %v1890_v33   ;;  %v633_v7 = vmin.f32 %v630_v56, %v631_v31  ;;  %v1866_v13 = vld [vmem:[%s6738_s3 + $0x60] sm:$0xff]  ;;  %v6852_v31 = vld [vmem:[#allocation23_spill] sm:$0xff] }
 0x18d   :  { %v632_v4 = vmin.f32 %v628_v6, %v629_v54  ;;  %v6846_v33 = vld [vmem:[#allocation17_spill] sm:$0xff]  ;;  %v1898_v47 = vand.u32 2147483647, %v1866_v13  ;;  %v6855_v56 = vld [vmem:[#allocation26_spill] sm:$0xff]  ;;  %v6857_v3 = vld [vmem:[#allocation27_spill] sm:$0xff] }
 0x18e   :  { %v6880_v28 = vld [vmem:[#allocation41_spill] sm:$0xff]  ;;  %v6882_v55 = vld [vmem:[#allocation42_spill] sm:$0xff] }
 0x18f   :  { %v5010_v9 = vpop.permute.xlu1 %1346  ;;  %v5012_v42 = vpop.permute.xlu0 %1341  ;;  %v5024_v59 = vmin.f32 %v632_v4, %v633_v7  ;;  %v1871_v7 = vld [vmem:[%s6738_s3 + $0x88] sm:$0xff]  ;;  %v6858_v4 = vld [vmem:[#allocation28_spill] sm:$0xff] }
 0x190   :  { %6840 = vst [vmem:[#allocation9_spill] sm:$0xff] %v5010_v9  ;;  %6841 = vst [vmem:[#allocation10_spill] sm:$0xff] %v5012_v42  ;;  %1955 = vperm.xlu1 %3954, %v1893_v57   ;;  %1950 = vperm.xlu0 %3953, %v1892_v8   ;;  %v6851_v57 = vld [vmem:[#allocation22_spill] sm:$0xff]  ;;  %v5190_v9 = vld [vmem:[%s6738_s3 + $0xd8] sm:$0xff] }
 0x191   :  { %v5038_v49 = vmul.f32 %v6846_v33, %v5024_v59  ;;  %v5042_v1 = vmul.f32 %v6847_v60, %v5024_v59  ;;  %v5049_v23 = vmul.f32 %v6848_v2, %v5024_v59  ;;  %v5053_v34 = vmul.f32 %v6849_v11, %v5024_v59  ;;  %v5109_v60 = vld [vmem:[%s6738_s3 + $0x98] sm:$0xff]  ;;  %v5114_v2 = vld [vmem:[%s6738_s3 + $0x90] sm:$0xff]  ;;  %6876 = vst [vmem:[#allocation25_spill] sm:$0xff] %v5190_v9 }
 0x192   :  { %v5057_v37 = vmul.f32 %v6850_v15, %v5024_v59  ;;  %v5061_v18 = vmul.f32 %v6851_v57, %v5024_v59  ;;  %v5068_v8 = vmul.f32 %v6852_v31, %v5024_v59  ;;  %v5072_v35 = vmul.f32 %v6853_v46, %v5024_v59  ;;  %v6861_v11 = vld [vmem:[#allocation30_spill] sm:$0xff]  ;;  %v6862_v57 = vld [vmem:[#allocation31_spill] sm:$0xff] }
 0x193   :  { %v5020_v52 = vpop.permute.xlu1 %1356  ;;  %v5022_v22 = vpop.permute.xlu0 %1351  ;;  %v5076_v54 = vmul.f32 %v6854_v50, %v5024_v59  ;;  %v5094_v53 = vmul.f32 %v6857_v3, %v5024_v59  ;;  %v1901_v33 = vand.u32 2147483647, %v1869_v48  ;;  %v5118_v15 = vmul.f32 %v6861_v11, %v5024_v59  ;;  %v5127_v50 = vld [vmem:[%s6738_s3 + $0xa8] sm:$0xff] }
 0x194   :  { %6842 = vst [vmem:[#allocation64_spill] sm:$0xff] %v5020_v52  ;;  %6843 = vst [vmem:[#allocation65_spill] sm:$0xff] %v5022_v22  ;;  %1965 = vperm.xlu1 %3954, %v1895_v32   ;;  %1960 = vperm.xlu0 %3953, %v1894_v10   ;;  %v5080_v32 = vmul.f32 %v6855_v56, %v5024_v59  ;;  %v5090_v10 = vld [vmem:[%s6738_s3 + $0x80] sm:$0xff]  ;;  %v875_v31 = vmul.f32 %v6862_v57, %v5024_v59  ;;  %v1900_v46 = vand.u32 2147483647, %v1868_v44  ;;  %v5146_v57 = vld [vmem:[%s6738_s3 + $0xb8] sm:$0xff] }
 0x195   :  { %v5132_v56 = vld [vmem:[%s6738_s3 + $0xa0] sm:$0xff]  ;;  %v1902_v44 = vand.u32 2147483647, %v5090_v10  ;;  %6866 = vst [vmem:[#allocation19_spill] sm:$0xff] %v5146_v57  ;;  %v1905_v10 = vand.u32 2147483647, %v5109_v60  ;;  %v5205_v41 = vmul.f32 %v6880_v28, %v5024_v59  ;;  %v5209_v24 = vmul.f32 %v6882_v55, %v5024_v59 }
 0x196   :  { %v6864_v3 = vld [vmem:[#allocation33_spill] sm:$0xff]  ;;  %v6884_v28 = vld [vmem:[#allocation43_spill] sm:$0xff]  ;;  %v6885_v55 = vld [vmem:[#allocation44_spill] sm:$0xff] }
 0x197   :  { %v5032_v29 = vpop.permute.xlu1 %1366  ;;  %v5034_v14 = vpop.permute.xlu0 %1361  ;;  %v6873_v22 = vld [vmem:[#allocation37_spill] sm:$0xff]  ;;  %6881 = vst [vmem:[#allocation27_spill] sm:$0xff] %v5205_v41  ;;  %6883 = vst [vmem:[#allocation28_spill] sm:$0xff] %v5209_v24  ;;  %v887_v42 = vmul.f32 %v6884_v28, %v5024_v59  ;;  %v6892_v24 = vld [vmem:[#allocation47_spill] sm:$0xff] }
 0x198   :  { %6844 = vst [vmem:[#allocation66_spill] sm:$0xff] %v5032_v29  ;;  %6845 = vst [vmem:[#allocation67_spill] sm:$0xff] %v5034_v14  ;;  %1975 = vperm.xlu1 %3954, %v1897_v58   ;;  %1970 = vperm.xlu0 %3953, %v1896_v5   ;;  %v5098_v58 = vmul.f32 %v6858_v4, %v5024_v59  ;;  %v6859_v5 = vld [vmem:[#allocation29_spill] sm:$0xff]  ;;  %v5136_v4 = vmul.f32 %v6864_v3, %v5024_v59  ;;  %v6868_v3 = vld [vmem:[#allocation35_spill] sm:$0xff]  ;;  %v1904_v14 = vand.u32 2147483647, %v5114_v2 }
 0x199   :  { %v5102_v38 = vmul.f32 %v6859_v5, %v5024_v59  ;;  %v6865_v5 = vld [vmem:[#allocation34_spill] sm:$0xff]  ;;  %v886_v2 = vmul.f32 %v6885_v55, %v5024_v59  ;;  %v6887_v28 = vld [vmem:[#allocation45_spill] sm:$0xff]  ;;  %v891_v19 = vmul.f32 %v6892_v24, %v5024_v59  ;;  %v6893_v41 = vld [vmem:[#allocation48_spill] sm:$0xff] }
 0x19a   :  { %v5140_v11 = vmul.f32 %v6865_v5, %v5024_v59  ;;  %v6869_v5 = vld [vmem:[#allocation36_spill] sm:$0xff]  ;;  %v5168_v29 = vld [vmem:[%s6738_s3 + $0xc8] sm:$0xff]  ;;  %v889_v57 = vmul.f32 %v6887_v28, %v5024_v59  ;;  %v890_v43 = vmul.f32 %v6893_v41, %v5024_v59  ;;  %v6896_v24 = vld [vmem:[#allocation59_spill] sm:$0xff] }
 0x19b   :  { %v5082_v6 = vpop.permute.xlu1 %1376  ;;  %v5104_v13 = vpop.permute.xlu0 %1371  ;;  %6871 = vst [vmem:[#allocation22_spill] sm:$0xff] %v5168_v29  ;;  %v5239_v29 = vld [vmem:[%s6738_s3 + $0xf0] sm:$0xff]  ;;  %v6897_v41 = vld [vmem:[#allocation60_spill] sm:$0xff] }
 0x19c   :  { %6856 = vst [vmem:[#allocation17_spill] sm:$0xff] %v5082_v6  ;;  %6860 = vst [vmem:[#allocation18_spill] sm:$0xff] %v5104_v13  ;;  %1985 = vperm.xlu1 %3954, %v1899_v26   ;;  %v6863_v26 = vld [vmem:[#allocation32_spill] sm:$0xff]  ;;  %1980 = vperm.xlu0 %3953, %v1898_v47   ;;  %v1903_v47 = vand.u32 2147483647, %v1871_v7  ;;  %v5155_v13 = vmul.f32 %v6868_v3, %v5024_v59  ;;  %v5159_v6 = vmul.f32 %v6869_v5, %v5024_v59  ;;  %v6888_v55 = vld [vmem:[#allocation46_spill] sm:$0xff] }
 0x19d   :  { %v874_v48 = vmul.f32 %v6863_v26, %v5024_v59  ;;  %v5151_v26 = vld [vmem:[%s6738_s3 + $0xb0] sm:$0xff]  ;;  %v5173_v3 = vld [vmem:[%s6738_s3 + $0xc0] sm:$0xff]  ;;  %v5177_v5 = vmul.f32 %v6873_v22, %v5024_v59 }
 0x19e   :  { %6867 = vst [vmem:[#allocation20_spill] sm:$0xff] %v5151_v26  ;;  %6872 = vst [vmem:[#allocation23_spill] sm:$0xff] %v5173_v3  ;;  %v5195_v22 = vld [vmem:[%s6738_s3 + $0xd0] sm:$0xff]  ;;  %v5234_v3 = vld [vmem:[%s6738_s3 + $0xf8] sm:$0xff] }
 0x19f   :  { %v5161_v7 = vpop.permute.xlu1 %1386  ;;  %v5183_v60 = vpop.permute.xlu0 %1381  ;;  %6877 = vst [vmem:[#allocation26_spill] sm:$0xff] %v5195_v22  ;;  %v1087_v22 = vadd.f32 %v6890_v36, %v5053_v34 }
 0x1a0   :  { %6870 = vst [vmem:[#allocation21_spill] sm:$0xff] %v5161_v7  ;;  %v6874_v7 = vld [vmem:[#allocation38_spill] sm:$0xff]  ;;  %6875 = vst [vmem:[#allocation24_spill] sm:$0xff] %v5183_v60  ;;  %1995 = vperm.xlu1 %3954, %v1901_v33   ;;  %v6879_v60 = vld [vmem:[#allocation40_spill] sm:$0xff]  ;;  %1990 = vperm.xlu0 %3953, %v1900_v46  }
 0x1a1   :  { %v5181_v52 = vmul.f32 %v6874_v7, %v5024_v59  ;;  %v6878_v7 = vld [vmem:[#allocation39_spill] sm:$0xff]  ;;  %v882_v33 = vmul.f32 %v6879_v60, %v5024_v59  ;;  %v5216_v46 = vld [vmem:[%s6738_s3 + $0xe8] sm:$0xff]  ;;  %v5221_v60 = vld [vmem:[%s6738_s3 + $0xe0] sm:$0xff] }
 0x1a2   :  { %v883_v39 = vmul.f32 %v6878_v7, %v5024_v59  ;;  %v6889_v7 = vld [vmem:[#allocation51_spill] sm:$0xff] }
 0x1a3   :  { %v5227_v26 = vpop.permute.xlu1 %1396  ;;  %v1088_v9 = vadd.f32 %v6889_v7, %v5049_v23  ;;  %v5249_v30 = vpop.permute.xlu0 %1391  ;;  %v1092_v23 = vadd.f32 %v6894_v61, %v5068_v8  ;;  %v6895_v7 = vld [vmem:[#allocation56_spill] sm:$0xff]  ;;  %v6898_v61 = vld [vmem:[#allocation49_spill] sm:$0xff] }
 0x1a4   :  { %6886 = vst [vmem:[#allocation29_spill] sm:$0xff] %v5227_v26  ;;  %v888_v26 = vmul.f32 %v6888_v55, %v5024_v59  ;;  %6891 = vst [vmem:[#allocation30_spill] sm:$0xff] %v5249_v30  ;;  %2005 = vperm.xlu1 %3954, %v1903_v47   ;;  %2000 = vperm.xlu0 %3953, %v1902_v44   ;;  %v1091_v36 = vadd.f32 %v6895_v7, %v5072_v35  ;;  %v6899_v35 = vld [vmem:[#allocation50_spill] sm:$0xff]  ;;  %v6900_v47 = vld [vmem:[#allocation53_spill] sm:$0xff] }
 0x1a5   :  { %v1096_v30 = vadd.f32 %v6896_v24, %v5094_v53  ;;  %v1095_v59 = vadd.f32 %v6897_v41, %v5098_v58  ;;  %v1100_v44 = vadd.f32 %v4781_v20, %v875_v31  ;;  %v1099_v55 = vadd.f32 %v4783_v25, %v874_v48  ;;  %v6901_v25 = vld [vmem:[#allocation61_spill] sm:$0xff] }
 0x1a6   :  { %v1086_v8 = vadd.f32 %v6898_v61, %v5038_v49  ;;  %v1085_v7 = vadd.f32 %v6899_v35, %v5042_v1  ;;  %v5275_v34 = vmax.f32 %v1087_v22, %v1088_v9  ;;  %v1090_v53 = vadd.f32 %v6900_v47, %v5057_v37  ;;  %v6902_v9 = vld [vmem:[#allocation54_spill] sm:$0xff]  ;;  %v6903_v37 = vld [vmem:[#allocation57_spill] sm:$0xff]  ;;  %v6914_v61 = vld [vmem:[#allocation8_spill] sm:$0xff] }
 0x1a7   :  { %v5269_v28 = vpop.permute.xlu1 %1406  ;;  %v5279_v24 = vpop.permute.xlu0 %1401  ;;  %v1098_v20 = vadd.f32 %v4763_v27, %v5102_v38  ;;  %v1097_v58 = vadd.f32 %v6901_v25, %v5118_v15  ;;  %v1108_v31 = vadd.f32 %v4907_v40, %v883_v39  ;;  %v1107_v49 = vadd.f32 %v4909_v45, %v882_v33  ;;  %v6917_v25 = vld [vmem:[#allocation20_spill] sm:$0xff] }
 0x1a8   :  { %2015 = vperm.xlu1 %3954, %v1905_v10   ;;  %2010 = vperm.xlu0 %3953, %v1904_v14   ;;  %v1089_v1 = vadd.f32 %v6902_v9, %v5061_v18  ;;  %v1138_v48 = vmax.f32 %v1091_v36, %v1092_v23  ;;  %v1094_v22 = vadd.f32 %v6903_v37, %v5076_v54  ;;  %v6904_v10 = vld [vmem:[#allocation58_spill] sm:$0xff]  ;;  %v1125_v37 = vrot.slane %v5275_v34, 4 }
 0x1a9   :  { %v1093_v47 = vadd.f32 %v6904_v10, %v5080_v32  ;;  %v1152_v41 = vmax.f32 %v1095_v59, %v1096_v30  ;;  %v1166_v27 = vmax.f32 %v1099_v55, %v1100_v44  ;;  %v1104_v38 = vadd.f32 %v4857_v21, %v5155_v13  ;;  %v6907_v13 = vld [vmem:[#allocation63_spill] sm:$0xff] }
 0x1aa   :  { %v1103_v40 = vadd.f32 %v4859_v62, %v5159_v6  ;;  %v1106_v39 = vadd.f32 %v4885_v16, %v5177_v5  ;;  %v1105_v14 = vadd.f32 %v4887_v51, %v5181_v52  ;;  %v1116_v18 = vadd.f32 %v4966_v63, %v891_v19  ;;  %v6906_v62 = vld [vmem:[#allocation62_spill] sm:$0xff]  ;;  %v6912_v59 = vld [vmem:[#allocation7_spill] sm:$0xff] }
 0x1ab   :  { %v5297_v45 = vpop.permute.xlu1 %1416  ;;  %v1115_v54 = vadd.f32 %v4968_v0, %v890_v43  ;;  %v5305_v30 = vpop.permute.xlu0 %1411  ;;  %v6905_v32 = vand.u32 2147483647, %v5127_v50  ;;  %v1159_v21 = vmax.f32 %v1097_v58, %v1098_v20  ;;  %v1102_v6 = vadd.f32 %v6906_v62, %v5136_v4  ;;  %v6909_v43 = vld [vmem:[#allocation15_spill] sm:$0xff]  ;;  %v6910_v0 = vld [vmem:[#allocation16_spill] sm:$0xff] }
 0x1ac   :  { %v1101_v15 = vadd.f32 %v6907_v13, %v5140_v11  ;;  %v1194_v16 = vmax.f32 %v1107_v49, %v1108_v31  ;;  %v6908_v5 = vand.u32 2147483647, %v5132_v56  ;;  %v1112_v51 = vadd.f32 %v4934_v12, %v887_v42  ;;  %v6911_v11 = vld [vmem:[#allocation27_spill] sm:$0xff]  ;;  %v6913_v56 = vld [vmem:[#allocation28_spill] sm:$0xff] }
 0x1ad   :  { %2025 = vperm.xlu1 %3954, %v6905_v32   ;;  %v1111_v19 = vadd.f32 %v4936_v17, %v886_v2  ;;  %v1114_v63 = vadd.f32 %v6909_v43, %v889_v57  ;;  %v1113_v52 = vadd.f32 %v6910_v0, %v888_v26  ;;  %v1131_v50 = vmax.f32 %v1089_v1, %v1090_v53  ;;  %v6915_v17 = vld [vmem:[#allocation19_spill] sm:$0xff] }
 0x1ae   :  { %2020 = vperm.xlu0 %3953, %v6908_v5   ;;  %v1145_v33 = vmax.f32 %v1093_v47, %v1094_v22  ;;  %v1167_v55 = vrot.slane %v1166_v27, 4  ;;  %v1180_v23 = vmax.f32 %v1103_v40, %v1104_v38  ;;  %v1187_v36 = vmax.f32 %v1105_v14, %v1106_v39 }
 0x1af   :  { %v5319_v4 = vpop.permute.xlu1 %1426  ;;  %v1110_v44 = vadd.f32 %v6912_v59, %v6911_v11  ;;  %v1109_v35 = vadd.f32 %v6914_v61, %v6913_v56  ;;  %v1222_v12 = vmax.f32 %v1115_v54, %v1116_v18  ;;  %v5325_v42 = vpop.permute.xlu0 %1421  ;;  %v6916_v57 = vand.u32 2147483647, %v6915_v17  ;;  %v6919_v18 = vld [vmem:[#allocation22_spill] sm:$0xff] }
 0x1b0   :  { %v1117_v26 = vmax.f32 %v1085_v7, %v1086_v8  ;;  %v1139_v2 = vrot.slane %v1138_v48, 4  ;;  %v1153_v53 = vrot.slane %v1152_v41, 4  ;;  %v1160_v20 = vrot.slane %v1159_v21, 4 }
 0x1b1   :  { %2035 = vperm.xlu1 %3954, %v6916_v57   ;;  %v6918_v58 = vand.u32 2147483647, %v6917_v25  ;;  %v1173_v31 = vmax.f32 %v1101_v15, %v1102_v6  ;;  %v1195_v49 = vrot.slane %v1194_v16, 4  ;;  %v1208_v9 = vmax.f32 %v1111_v19, %v1112_v51  ;;  %v6921_v15 = vld [vmem:[#allocation23_spill] sm:$0xff] }
 0x1b2   :  { %v1215_v1 = vmax.f32 %v1113_v52, %v1114_v63  ;;  %v1132_v22 = vrot.slane %v1131_v50, 4  ;;  %v1146_v10 = vrot.slane %v1145_v33, 4  ;;  %v1168_v47 = vmax.f32 %v1166_v27, %v1167_v55 }
 0x1b3   :  { %2030 = vperm.xlu0 %3953, %v6918_v58   ;;  %v5332_v38 = vpop.permute.xlu1 %1436  ;;  %v1181_v40 = vrot.slane %v1180_v23, 4  ;;  %v1188_v39 = vrot.slane %v1187_v36, 4  ;;  %v1201_v8 = vmax.f32 %v1109_v35, %v1110_v44  ;;  %v1223_v7 = vrot.slane %v1222_v12, 4  ;;  %v5334_v14 = vpop.permute.xlu0 %1431 }
 0x1b4   :  { %v6920_v54 = vand.u32 2147483647, %v6919_v18  ;;  %v1118_v32 = vrot.slane %v1117_v26, 4  ;;  %v1140_v62 = vmax.f32 %v1138_v48, %v1139_v2  ;;  %v1154_v6 = vmax.f32 %v1152_v41, %v1153_v53  ;;  %v6925_v2 = vld [vmem:[#allocation26_spill] sm:$0xff] }
 0x1b5   :  { %v1161_v13 = vmax.f32 %v1159_v21, %v1160_v20  ;;  %v6922_v5 = vand.u32 2147483647, %v6921_v15  ;;  %v1174_v51 = vrot.slane %v1173_v31, 4  ;;  %v1196_v27 = vmax.f32 %v1194_v16, %v1195_v49  ;;  %v6923_v21 = vld [vmem:[#allocation25_spill] sm:$0xff] }
 0x1b6   :  { %2045 = vperm.xlu1 %3954, %v6920_v54   ;;  %v1209_v19 = vrot.slane %v1208_v9, 4  ;;  %v1216_v43 = vrot.slane %v1215_v1, 4  ;;  %v1126_v63 = vmax.f32 %v5275_v34, %v1125_v37  ;;  %v1133_v0 = vmax.f32 %v1131_v50, %v1132_v22 }
 0x1b7   :  { %2040 = vperm.xlu0 %3953, %v6922_v5   ;;  %v1147_v52 = vmax.f32 %v1145_v33, %v1146_v10  ;;  %v1169_v55 = vrot.slane %v1168_v47, 2  ;;  %v5341_v11 = vpop.permute.xlu1 %1446  ;;  %v1182_v59 = vmax.f32 %v1180_v23, %v1181_v40  ;;  %v1189_v44 = vmax.f32 %v1187_v36, %v1188_v39  ;;  %v5343_v41 = vpop.permute.xlu0 %1441 }
 0x1b8   :  { %v1202_v56 = vrot.slane %v1201_v8, 4  ;;  %v1224_v48 = vmax.f32 %v1222_v12, %v1223_v7  ;;  %v6924_v61 = vand.u32 2147483647, %v6923_v21  ;;  %v1119_v35 = vmax.f32 %v1117_v26, %v1118_v32 }
 0x1b9   :  { %v1141_v16 = vrot.slane %v1140_v62, 2  ;;  %v1155_v17 = vrot.slane %v1154_v6, 2  ;;  %v1162_v57 = vrot.slane %v1161_v13, 2  ;;  %v6926_v34 = vand.u32 2147483647, %v6925_v2 }
 0x1ba   :  { %2055 = vperm.xlu1 %3954, %v6924_v61   ;;  %v1175_v50 = vmax.f32 %v1173_v31, %v1174_v51  ;;  %v1197_v33 = vrot.slane %v1196_v27, 2  ;;  %v1210_v53 = vmax.f32 %v1208_v9, %v1209_v19  ;;  %v1217_v20 = vmax.f32 %v1215_v1, %v1216_v43 }
 0x1bb   :  { %2050 = vperm.xlu0 %3953, %v6926_v34   ;;  %v1127_v23 = vrot.slane %v1126_v63, 2  ;;  %v1134_v36 = vrot.slane %v1133_v0, 2  ;;  %v1148_v25 = vrot.slane %v1147_v52, 2  ;;  %v1170_v12 = vmax.f32 %v1168_v47, %v1169_v55  ;;  %v5349_v58 = vpop.permute.xlu1 %1456  ;;  %v5351_v10 = vpop.permute.xlu0 %1451 }
 0x1bc   :  { %v1183_v49 = vrot.slane %v1182_v59, 2  ;;  %v1190_v37 = vrot.slane %v1189_v44, 2  ;;  %v1203_v22 = vmax.f32 %v1201_v8, %v1202_v56  ;;  %v1225_v26 = vrot.slane %v1224_v48, 2 }
 0x1bd   :  { %v6927_v40 = vand.u32 2147483647, %v5216_v46  ;;  %v1120_v39 = vrot.slane %v1119_v35, 2  ;;  %v1142_v31 = vmax.f32 %v1140_v62, %v1141_v16  ;;  %v1156_v7 = vmax.f32 %v1154_v6, %v1155_v17 }
 0x1be   :  { %v1163_v9 = vmax.f32 %v1161_v13, %v1162_v57  ;;  %v6928_v1 = vand.u32 2147483647, %v5221_v60  ;;  %v1176_v18 = vrot.slane %v1175_v50, 2  ;;  %v1198_v47 = vmax.f32 %v1196_v27, %v1197_v33 }
 0x1bf   :  { %2065 = vperm.xlu1 %3954, %v6927_v40   ;;  %v1211_v54 = vrot.slane %v1210_v53, 2  ;;  %v1218_v32 = vrot.slane %v1217_v20, 2  ;;  %v1128_v15 = vmax.f32 %v1126_v63, %v1127_v23  ;;  %v1135_v5 = vmax.f32 %v1133_v0, %v1134_v36  ;;  %v5357_v19 = vpop.permute.xlu1 %1466  ;;  %v5359_v62 = vpop.permute.xlu0 %1461  ;;  %v2111_v0 = vld [vmem:[%s6739_s4 + $0x8] sm:$0xff] }
 0x1c0   :  { %2060 = vperm.xlu0 %3953, %v6928_v1   ;;  %v1149_v8 = vmax.f32 %v1147_v52, %v1148_v25  ;;  %v1171_v51 = vrot.slane %v1170_v12, 1  ;;  %v1184_v43 = vmax.f32 %v1182_v59, %v1183_v49  ;;  %v1191_v46 = vmax.f32 %v1189_v44, %v1190_v37  ;;  %v2113_v25 = vld [vmem:[%s6739_s4 + $0x18] sm:$0xff] }
 0x1c1   :  { %v1204_v55 = vrot.slane %v1203_v22, 2  ;;  %v1226_v56 = vmax.f32 %v1224_v48, %v1225_v26  ;;  %v6929_v6 = vand.u32 2147483647, %v5234_v3  ;;  %v1121_v60 = vmax.f32 %v1119_v35, %v1120_v39  ;;  %v2110_v3 = vld [vmem:[%s6739_s4] sm:$0xff] }
 0x1c2   :  { %v1143_v13 = vrot.slane %v1142_v31, 1  ;;  %v1157_v27 = vrot.slane %v1156_v7, 1  ;;  %v1164_v21 = vrot.slane %v1163_v9, 1  ;;  %v6930_v63 = vand.u32 2147483647, %v5239_v29 }
 0x1c3   :  { %2075 = vperm.xlu1 %3954, %v6929_v6   ;;  %v1177_v52 = vmax.f32 %v1175_v50, %v1176_v18  ;;  %v1199_v59 = vrot.slane %v1198_v47, 1  ;;  %v1212_v44 = vmax.f32 %v1210_v53, %v1211_v54  ;;  %v1219_v48 = vmax.f32 %v1217_v20, %v1218_v32  ;;  %v5371_v57 = vpop.permute.xlu1 %1541  ;;  %v5373_v23 = vpop.permute.xlu0 %1536 }
 0x1c4   :  { %2070 = vperm.xlu0 %3953, %v6930_v63   ;;  %v1129_v61 = vrot.slane %v1128_v15, 1  ;;  %v1136_v35 = vrot.slane %v1135_v5, 1  ;;  %v1150_v16 = vrot.slane %v1149_v8, 1  ;;  %v1172_v17 = vmax.f32 %v1170_v12, %v1171_v51 }
 0x1c5   :  { %v1185_v29 = vrot.slane %v1184_v43, 1  ;;  %v1192_v2 = vrot.slane %v1191_v46, 1  ;;  %v1205_v34 = vmax.f32 %v1203_v22, %v1204_v55  ;;  %v1227_v33 = vrot.slane %v1226_v56, 1  ;;  %v2112_v22 = vld [vmem:[%s6739_s4 + $0x10] sm:$0xff] }
 0x1c6   :  { %v1122_v50 = vrot.slane %v1121_v60, 1  ;;  %v1144_v53 = vmax.f32 %v1142_v31, %v1143_v13  ;;  %v1158_v20 = vmax.f32 %v1156_v7, %v1157_v27  ;;  %v1165_v36 = vmax.f32 %v1163_v9, %v1164_v21 }
 0x1c7   :  { %2149 = vperm.xlu1 %3954, %v2111_v0   ;;  %v1178_v49 = vrot.slane %v1177_v52, 1  ;;  %v1200_v12 = vmax.f32 %v1198_v47, %v1199_v59  ;;  %v1213_v37 = vrot.slane %v1212_v44, 1  ;;  %v1220_v26 = vrot.slane %v1219_v48, 1  ;;  %v5381_v31 = vpop.permute.xlu1 %1551  ;;  %v5383_v51 = vpop.permute.xlu0 %1546 }
 0x1c8   :  { %2144 = vperm.xlu0 %3953, %v2110_v3   ;;  %v1130_v40 = vmax.f32 %v1128_v15, %v1129_v61  ;;  %v1137_v39 = vmax.f32 %v1135_v5, %v1136_v35  ;;  %v1151_v1 = vmax.f32 %v1149_v8, %v1150_v16  ;;  %v1232_v18 = vmin.f32 %v1144_v53, %v1172_v17  ;;  %v2115_v15 = vld [vmem:[%s6739_s4 + $0x28] sm:$0xff]  ;;  %v2116_v61 = vld [vmem:[%s6739_s4 + $0x30] sm:$0xff] }
 0x1c9   :  { %v1186_v7 = vmax.f32 %v1184_v43, %v1185_v29  ;;  %v1193_v9 = vmax.f32 %v1191_v46, %v1192_v2  ;;  %v1206_v54 = vrot.slane %v1205_v34, 1  ;;  %v1228_v32 = vmax.f32 %v1226_v56, %v1227_v33  ;;  %v2114_v43 = vld [vmem:[%s6739_s4 + $0x20] sm:$0xff]  ;;  %v2119_v2 = vld [vmem:[%s6739_s4 + $0x48] sm:$0xff] }
 0x1ca   :  { %v1123_v47 = vmax.f32 %v1121_v60, %v1122_v50  ;;  %v1230_v55 = vmin.f32 %v1130_v40, %v1158_v20  ;;  %v1231_v6 = vmin.f32 %v1137_v39, %v1165_v36  ;;  %v1179_v5 = vmax.f32 %v1177_v52, %v1178_v49  ;;  %v2117_v52 = vld [vmem:[%s6739_s4 + $0x38] sm:$0xff]  ;;  %v2118_v33 = vld [vmem:[%s6739_s4 + $0x40] sm:$0xff]  ;;  %v2123_v39 = vld [vmem:[%s6739_s4 + $0x68] sm:$0xff] }
 0x1cb   :  { %2159 = vperm.xlu1 %3954, %v2113_v25   ;;  %v1236_v8 = vmin.f32 %v1232_v18, %v1200_v12  ;;  %v1214_v13 = vmax.f32 %v1212_v44, %v1213_v37  ;;  %v1221_v27 = vmax.f32 %v1219_v48, %v1220_v26  ;;  %v5391_v56 = vpop.permute.xlu1 %1561  ;;  %v1207_v63 = vmax.f32 %v1205_v34, %v1206_v54  ;;  %v5393_v59 = vpop.permute.xlu0 %1556  ;;  %v2121_v36 = vld [vmem:[%s6739_s4 + $0x58] sm:$0xff]  ;;  %v2120_v25 = vld [vmem:[%s6739_s4 + $0x50] sm:$0xff]  ;;  %v6931_v12 = vld [vmem:[#allocation5_spill] sm:$0xff] }
 0x1cc   :  { %2154 = vperm.xlu0 %3953, %v2112_v22   ;;  %v1229_v46 = vmin.f32 %v1123_v47, %v1151_v1  ;;  %v1234_v21 = vmin.f32 %v1230_v55, %v1186_v7  ;;  %v1235_v60 = vmin.f32 %v1231_v6, %v1193_v9  ;;  %v6932_v26 = vld [vmem:[#allocation6_spill] sm:$0xff]  ;;  %v2122_v7 = vld [vmem:[%s6739_s4 + $0x60] sm:$0xff]  ;;  %v5462_v6 = vld [vmem:[%s6738_s3 + $0x118] sm:$0xff] }
 0x1cd   :  { %v1240_v0 = vmin.f32 %v1236_v8, %v1228_v32  ;;  %v2125_v32 = vld [vmem:[%s6739_s4 + $0x78] sm:$0xff]  ;;  %v5457_v47 = vld [vmem:[%s6738_s3 + $0x100] sm:$0xff] }
 0x1ce   :  { %v1233_v44 = vmin.f32 %v1229_v46, %v1179_v5  ;;  %v1238_v48 = vmin.f32 %v1234_v21, %v1214_v13  ;;  %v1239_v3 = vmin.f32 %v1235_v60, %v1221_v27  ;;  %v5472_v5 = vld [vmem:[%s6738_s3 + $0x128] sm:$0xff]  ;;  %v5479_v13 = vld [vmem:[%s6738_s3 + $0x120] sm:$0xff]  ;;  %v6934_v27 = vld [vmem:[#allocation11_spill] sm:$0xff] }
 0x1cf   :  { %2169 = vperm.xlu1 %3954, %v2115_v15   ;;  %v5401_v35 = vpop.permute.xlu1 %1571  ;;  %v5403_v29 = vpop.permute.xlu0 %1566  ;;  %v5467_v15 = vld [vmem:[%s6738_s3 + $0x110] sm:$0xff]  ;;  %6933 = vst [vmem:[#allocation31_spill] sm:$0xff] %v5479_v13  ;;  %v6935_v46 = vld [vmem:[#allocation12_spill] sm:$0xff] }
 0x1d0   :  { %2164 = vperm.xlu0 %3953, %v2114_v43   ;;  %v1237_v16 = vmin.f32 %v1233_v44, %v1207_v63  ;;  %v1242_v17 = vmin.f32 %v1239_v3, %v1240_v0  ;;  %v2127_v63 = vld [vmem:[%s6739_s4 + $0x88] sm:$0xff]  ;;  %v5495_v44 = vld [vmem:[%s6738_s3 + $0x138] sm:$0xff] }
 0x1d1   :  { %6936 = vst [vmem:[#allocation32_spill] sm:$0xff] %v5495_v44 }
 0x1d2   :  { %v1241_v34 = vmin.f32 %v1237_v16, %v1238_v48 }
 0x1d3   :  { %2179 = vperm.xlu1 %3954, %v2117_v52   ;;  %v5411_v50 = vpop.permute.xlu1 %1581  ;;  %v5415_v20 = vpop.permute.xlu0 %1576 }
 0x1d4   :  { %2174 = vperm.xlu0 %3953, %v2116_v61   ;;  %v5413_v53 = vmin.f32 %v1241_v34, %v1242_v17  ;;  %v2126_v34 = vld [vmem:[%s6739_s4 + $0x80] sm:$0xff] }
 0x1d5   :  { %v6949_v61 = vld [vmem:[#allocation29_spill] sm:$0xff] }
 0x1d6   :  { %v1470_v37 = vmul.f32 %v6931_v12, %v5413_v53  ;;  %v1469_v22 = vmul.f32 %v6932_v26, %v5413_v53  ;;  %v1472_v43 = vmul.f32 %v6934_v27, %v5413_v53  ;;  %v1471_v21 = vmul.f32 %v6935_v46, %v5413_v53  ;;  %v6938_v12 = vld [vmem:[#allocation14_spill] sm:$0xff]  ;;  %v6939_v26 = vld [vmem:[#allocation9_spill] sm:$0xff] }
 0x1d7   :  { %2189 = vperm.xlu1 %3954, %v2119_v2   ;;  %v5423_v49 = vpop.permute.xlu1 %1591  ;;  %v5429_v40 = vpop.permute.xlu0 %1586  ;;  %v6943_v27 = vld [vmem:[#allocation66_spill] sm:$0xff]  ;;  %v1487_v52 = vmul.f32 %v5279_v24, %v5413_v53 }
 0x1d8   :  { %2184 = vperm.xlu0 %3953, %v2118_v33   ;;  %v1695_v1 = vadd.f32 %v5371_v57, %v1470_v37  ;;  %v1694_v18 = vadd.f32 %v5373_v23, %v1469_v22  ;;  %v2124_v57 = vld [vmem:[%s6739_s4 + $0x70] sm:$0xff]  ;;  %v5452_v23 = vld [vmem:[%s6738_s3 + $0x108] sm:$0xff]  ;;  %v1697_v17 = vadd.f32 %v5381_v31, %v1472_v43  ;;  %v1696_v2 = vadd.f32 %v5383_v51, %v1471_v21 }
 0x1d9   :  { %v1473_v37 = vmul.f32 %v6938_v12, %v5413_v53  ;;  %v1476_v22 = vmul.f32 %v6939_v26, %v5413_v53  ;;  %v6940_v51 = vld [vmem:[#allocation10_spill] sm:$0xff]  ;;  %v1480_v43 = vmul.f32 %v6943_v27, %v5413_v53  ;;  %v6944_v21 = vld [vmem:[#allocation67_spill] sm:$0xff]  ;;  %v6945_v12 = vld [vmem:[#allocation17_spill] sm:$0xff] }
 0x1da   :  { %v1726_v55 = vmax.f32 %v1694_v18, %v1695_v1  ;;  %v1475_v1 = vmul.f32 %v6940_v51, %v5413_v53  ;;  %v6941_v18 = vld [vmem:[#allocation64_spill] sm:$0xff]  ;;  %v1482_v26 = vmul.f32 %v6945_v12, %v5413_v53  ;;  %v6946_v31 = vld [vmem:[#allocation18_spill] sm:$0xff]  ;;  %v6947_v33 = vld [vmem:[#allocation21_spill] sm:$0xff]  ;;  %v1733_v48 = vmax.f32 %v1696_v2, %v1697_v17 }
 0x1db   :  { %2199 = vperm.xlu1 %3954, %v2121_v36   ;;  %v5439_v9 = vpop.permute.xlu1 %1601  ;;  %v5441_v54 = vpop.permute.xlu0 %1596  ;;  %v6937_v36 = vld [vmem:[#allocation13_spill] sm:$0xff]  ;;  %v1481_v51 = vmul.f32 %v6946_v31, %v5413_v53  ;;  %v6948_v27 = vld [vmem:[#allocation24_spill] sm:$0xff]  ;;  %v2128_v31 = vld [vmem:[%s6739_s4 + $0x90] sm:$0xff]  ;;  %v5555_v17 = vmul.f32 %v5332_v38, %v5413_v53  ;;  %v1705_v2 = vadd.f32 %v5423_v49, %v1480_v43  ;;  %v5570_v38 = vmul.f32 %v5341_v11, %v5413_v53 }
 0x1dc   :  { %2194 = vperm.xlu0 %3953, %v2120_v25   ;;  %v1727_v16 = vrot.slane %v1726_v55, 4  ;;  %v1474_v25 = vmul.f32 %v6937_v36, %v5413_v53  ;;  %v1479_v36 = vmul.f32 %v6944_v21, %v5413_v53  ;;  %v1486_v21 = vmul.f32 %v6949_v61, %v5413_v53  ;;  %v6950_v12 = vld [vmem:[#allocation30_spill] sm:$0xff] }
 0x1dd   :  { %v1492_v61 = vmul.f32 %v5319_v4, %v5413_v53  ;;  %v2131_v4 = vld [vmem:[%s6739_s4 + $0xa8] sm:$0xff]  ;;  %v1706_v43 = vadd.f32 %v5441_v54, %v1481_v51  ;;  %v1701_v13 = vadd.f32 %v5401_v35, %v1476_v22  ;;  %v5593_v35 = vmul.f32 %v5349_v58, %v5413_v53 }
 0x1de   :  { %v1728_v3 = vmax.f32 %v1726_v55, %v1727_v16  ;;  %v1489_v55 = vmul.f32 %v5305_v30, %v5413_v53  ;;  %v1491_v16 = vmul.f32 %v5325_v42, %v5413_v53  ;;  %v1699_v24 = vadd.f32 %v5391_v56, %v1474_v25  ;;  %v2135_v58 = vld [vmem:[%s6739_s4 + $0xc8] sm:$0xff] }
 0x1df   :  { %2209 = vperm.xlu1 %3954, %v2123_v39   ;;  %v5474_v8 = vpop.permute.xlu1 %1611  ;;  %v5485_v60 = vpop.permute.xlu0 %1606  ;;  %v1704_v30 = vadd.f32 %v5429_v40, %v1479_v36  ;;  %v5566_v42 = vmul.f32 %v5334_v14, %v5413_v53  ;;  %v1734_v25 = vrot.slane %v1733_v48, 4 }
 0x1e0   :  { %2204 = vperm.xlu0 %3953, %v2122_v7   ;;  %v1478_v7 = vmul.f32 %v6941_v18, %v5413_v53  ;;  %v1484_v18 = vmul.f32 %v6947_v33, %v5413_v53  ;;  %v1485_v33 = vmul.f32 %v6950_v12, %v5413_v53  ;;  %v1729_v56 = vrot.slane %v1728_v3, 2 }
 0x1e2   :  { %v1703_v49 = vadd.f32 %v5411_v50, %v1478_v7  ;;  %v1709_v36 = vadd.f32 %v5474_v8, %v1484_v18  ;;  %v1700_v50 = vadd.f32 %v5403_v29, %v1475_v1  ;;  %v1761_v7 = vmax.f32 %v1704_v30, %v1705_v2 }
 0x1e3   :  { %2219 = vperm.xlu1 %3954, %v2125_v32   ;;  %v1622_v39 = vpop.permute.xlu1 %1621  ;;  %v6942_v32 = vld [vmem:[#allocation65_spill] sm:$0xff]  ;;  %v1617_v46 = vpop.permute.xlu0 %1616  ;;  %v1735_v29 = vmax.f32 %v1733_v48, %v1734_v25  ;;  %v5597_v18 = vmul.f32 %v5351_v10, %v5413_v53  ;;  %v5607_v10 = vmul.f32 %v5357_v19, %v5413_v53 }
 0x1e4   :  { %2214 = vperm.xlu0 %3953, %v2124_v57   ;;  %v1477_v57 = vmul.f32 %v6942_v32, %v5413_v53  ;;  %v2129_v32 = vld [vmem:[%s6739_s4 + $0x98] sm:$0xff]  ;;  %v1710_v54 = vadd.f32 %v1617_v46, %v1485_v33  ;;  %v1747_v48 = vmax.f32 %v1700_v50, %v1701_v13  ;;  %v1762_v33 = vrot.slane %v1761_v7, 4 }
 0x1e6   :  { %v1702_v40 = vadd.f32 %v5415_v20, %v1477_v57  ;;  %v2133_v20 = vld [vmem:[%s6739_s4 + $0xb8] sm:$0xff] }
 0x1e7   :  { %2229 = vperm.xlu1 %3954, %v2127_v63   ;;  %v1483_v63 = vmul.f32 %v6948_v27, %v5413_v53  ;;  %v1490_v27 = vmul.f32 %v5297_v45, %v5413_v53  ;;  %v1632_v0 = vpop.permute.xlu1 %1631  ;;  %v1698_v45 = vadd.f32 %v5393_v59, %v1473_v37  ;;  %v2130_v59 = vld [vmem:[%s6739_s4 + $0xa0] sm:$0xff]  ;;  %v1707_v37 = vadd.f32 %v5439_v9, %v1482_v26 }
 0x1e8   :  { %2224 = vperm.xlu0 %3953, %v2126_v34   ;;  %v1488_v34 = vmul.f32 %v5269_v28, %v5413_v53  ;;  %v1627_v28 = vpop.permute.xlu0 %1626  ;;  %v1711_v9 = vadd.f32 %v1622_v39, %v1486_v21 }
 0x1e9   :  { %v1708_v11 = vadd.f32 %v5485_v60, %v1483_v63  ;;  %v1740_v44 = vmax.f32 %v1698_v45, %v1699_v24  ;;  %v2132_v60 = vld [vmem:[%s6739_s4 + $0xb0] sm:$0xff]  ;;  %v1768_v1 = vmax.f32 %v1706_v43, %v1707_v37  ;;  %v1730_v63 = vmax.f32 %v1728_v3, %v1729_v56 }
 0x1ea   :  { %v1736_v3 = vrot.slane %v1735_v29, 2 }
 0x1eb   :  { %2239 = vperm.xlu1 %3954, %v2129_v32   ;;  %v1642_v14 = vpop.permute.xlu1 %1641  ;;  %v1713_v32 = vadd.f32 %v1632_v0, %v1488_v34  ;;  %v1495_v0 = vmul.f32 %v5343_v41, %v5413_v53  ;;  %v1775_v26 = vmax.f32 %v1708_v11, %v1709_v36  ;;  %v1741_v21 = vrot.slane %v1740_v44, 4 }
 0x1ec   :  { %2234 = vperm.xlu0 %3953, %v2128_v31   ;;  %v1712_v31 = vadd.f32 %v1627_v28, %v1487_v52  ;;  %v1637_v12 = vpop.permute.xlu0 %1636  ;;  %v1715_v8 = vadd.f32 %v1642_v14, %v1490_v27  ;;  %v1754_v52 = vmax.f32 %v1702_v40, %v1703_v49  ;;  %v1782_v34 = vmax.f32 %v1710_v54, %v1711_v9  ;;  %v2139_v54 = vld [vmem:[%s6739_s4 + $0xe8] sm:$0xff] }
 0x1ed   :  { %v1714_v57 = vadd.f32 %v1637_v12, %v1489_v55  ;;  %v2134_v55 = vld [vmem:[%s6739_s4 + $0xc0] sm:$0xff]  ;;  %v1769_v24 = vrot.slane %v1768_v1, 4  ;;  %v1776_v45 = vrot.slane %v1775_v26, 4  ;;  %v1731_v56 = vrot.slane %v1730_v63, 1 }
 0x1ee   :  { %v1789_v39 = vmax.f32 %v1712_v31, %v1713_v32  ;;  %v1742_v25 = vmax.f32 %v1740_v44, %v1741_v21  ;;  %v1748_v49 = vrot.slane %v1747_v48, 4  ;;  %v1763_v40 = vmax.f32 %v1761_v7, %v1762_v33 }
 0x1ef   :  { %2249 = vperm.xlu1 %3954, %v2131_v4   ;;  %v1652_v22 = vpop.permute.xlu1 %1651  ;;  %v1796_v27 = vmax.f32 %v1714_v57, %v1715_v8  ;;  %v5612_v4 = vmul.f32 %v5359_v62, %v5413_v53  ;;  %v1783_v37 = vrot.slane %v1782_v34, 4  ;;  %v5621_v14 = vmax.f32 %v1735_v29, %v1736_v3 }
 0x1f0   :  { %2244 = vperm.xlu0 %3953, %v2130_v59   ;;  %v1717_v46 = vadd.f32 %v1652_v22, %v1492_v61  ;;  %v1647_v51 = vpop.permute.xlu0 %1646  ;;  %v1755_v61 = vrot.slane %v1754_v52, 4  ;;  %v1790_v2 = vrot.slane %v1789_v39, 4  ;;  %v2137_v59 = vld [vmem:[%s6739_s4 + $0xd8] sm:$0xff]  ;;  %v1777_v11 = vmax.f32 %v1775_v26, %v1776_v45 }
 0x1f1   :  { %v1716_v41 = vadd.f32 %v1647_v51, %v1491_v16  ;;  %v1797_v43 = vrot.slane %v1796_v27, 4  ;;  %v5624_v50 = vmax.f32 %v1730_v63, %v1731_v56  ;;  %v1743_v7 = vrot.slane %v1742_v25, 2 }
 0x1f2   :  { %v1756_v62 = vmax.f32 %v1754_v52, %v1755_v61  ;;  %v1791_v32 = vmax.f32 %v1789_v39, %v1790_v2  ;;  %v1749_v8 = vmax.f32 %v1747_v48, %v1748_v49  ;;  %v1764_v57 = vrot.slane %v1763_v40, 2 }
 0x1f3   :  { %2259 = vperm.xlu1 %3954, %v2133_v20   ;;  %v1803_v16 = vmax.f32 %v1716_v41, %v1717_v46  ;;  %v1662_v28 = vpop.permute.xlu1 %1661  ;;  %v1798_v29 = vmax.f32 %v1796_v27, %v1797_v43  ;;  %v1738_v52 = vrot.slane %v5621_v14, 1  ;;  %v1778_v46 = vrot.slane %v1777_v11, 2 }
 0x1f4   :  { %2254 = vperm.xlu0 %3953, %v2132_v60   ;;  %v1719_v13 = vadd.f32 %v1662_v28, %v5555_v17  ;;  %v1657_v30 = vpop.permute.xlu0 %1656  ;;  %v2136_v17 = vld [vmem:[%s6739_s4 + $0xd0] sm:$0xff]  ;;  %v1784_v60 = vmax.f32 %v1782_v34, %v1783_v37  ;;  %v1757_v22 = vrot.slane %v1756_v62, 2  ;;  %v1792_v51 = vrot.slane %v1791_v32, 2  ;;  %v2141_v34 = vld [vmem:[%s6739_s4 + $0xf8] sm:$0xff] }
 0x1f5   :  { %v1718_v19 = vadd.f32 %v1657_v30, %v5566_v42  ;;  %v1804_v53 = vrot.slane %v1803_v16, 4  ;;  %v1770_v42 = vmax.f32 %v1768_v1, %v1769_v24  ;;  %v5634_v41 = vmax.f32 %v1742_v25, %v1743_v7 }
 0x1f6   :  { %v1750_v27 = vrot.slane %v1749_v8, 2  ;;  %v1785_v3 = vrot.slane %v1784_v60, 2  ;;  %v1799_v61 = vrot.slane %v1798_v29, 2  ;;  %v1793_v30 = vmax.f32 %v1791_v32, %v1792_v51 }
 0x1f7   :  { %2269 = vperm.xlu1 %3954, %v2135_v58   ;;  %v1810_v44 = vmax.f32 %v1718_v19, %v1719_v13  ;;  %v1672_v36 = vpop.permute.xlu1 %1671  ;;  %v1805_v1 = vmax.f32 %v1803_v16, %v1804_v53  ;;  %v1758_v16 = vmax.f32 %v1756_v62, %v1757_v22 }
 0x1f8   :  { %2264 = vperm.xlu0 %3953, %v2134_v55   ;;  %v1721_v31 = vadd.f32 %v1672_v36, %v5570_v38  ;;  %v1667_v12 = vpop.permute.xlu0 %1666  ;;  %v2138_v38 = vld [vmem:[%s6739_s4 + $0xe0] sm:$0xff]  ;;  %v1765_v55 = vmax.f32 %v1763_v40, %v1764_v57  ;;  %v1751_v37 = vmax.f32 %v1749_v8, %v1750_v27  ;;  %v1800_v62 = vmax.f32 %v1798_v29, %v1799_v61 }
 0x1f9   :  { %v1811_v20 = vrot.slane %v1810_v44, 4  ;;  %v1720_v9 = vadd.f32 %v1667_v12, %v1495_v0  ;;  %v1771_v0 = vrot.slane %v1770_v42, 2  ;;  %v1806_v28 = vrot.slane %v1805_v1, 2 }
 0x1fa   :  { %v1766_v43 = vrot.slane %v1765_v55, 1  ;;  %v1759_v32 = vrot.slane %v1758_v16, 1  ;;  %v6952_v57 = vand.u32 2147483647, %v5457_v47  ;;  %v1801_v22 = vrot.slane %v1800_v62, 1 }
 0x1fb   :  { %2279 = vperm.xlu1 %3954, %v2137_v59   ;;  %v1817_v26 = vmax.f32 %v1720_v9, %v1721_v31  ;;  %v1682_v39 = vpop.permute.xlu1 %1681  ;;  %v1812_v58 = vmax.f32 %v1810_v44, %v1811_v20  ;;  %v1772_v13 = vmax.f32 %v1770_v42, %v1771_v0  ;;  %v1807_v53 = vmax.f32 %v1805_v1, %v1806_v28 }
 0x1fc   :  { %2274 = vperm.xlu0 %3953, %v2136_v17   ;;  %v1723_v63 = vadd.f32 %v1682_v39, %v5593_v35  ;;  %v1677_v21 = vpop.permute.xlu0 %1676  ;;  %v2140_v35 = vld [vmem:[%s6739_s4 + $0xf0] sm:$0xff]  ;;  %v1786_v17 = vmax.f32 %v1784_v60, %v1785_v3  ;;  %v1794_v20 = vrot.slane %v1793_v30, 1  ;;  %v1752_v60 = vrot.slane %v1751_v37, 1 }
 0x1fd   :  { %v1818_v48 = vrot.slane %v1817_v26, 4  ;;  %v1722_v33 = vadd.f32 %v1677_v21, %v5597_v18  ;;  %v1779_v18 = vmax.f32 %v1777_v11, %v1778_v46  ;;  %v1813_v19 = vrot.slane %v1812_v58, 2  ;;  %v3829_v3 = vld [vmem:[%s6738_s3 + $0x130] sm:$0xff] }
 0x1fe   :  { %v1773_v31 = vrot.slane %v1772_v13, 1  ;;  %v1767_v29 = vmax.f32 %v1765_v55, %v1766_v43  ;;  %v1808_v1 = vrot.slane %v1807_v53, 1  ;;  %v1760_v51 = vmax.f32 %v1758_v16, %v1759_v32 }
 0x1ff   :  { %2289 = vperm.xlu1 %3954, %v2139_v54   ;;  %v1819_v24 = vmax.f32 %v1817_v26, %v1818_v48  ;;  %v1824_v45 = vmax.f32 %v1722_v33, %v1723_v63  ;;  %v1692_v2 = vpop.permute.xlu1 %1691  ;;  %v1780_v12 = vrot.slane %v1779_v18, 1  ;;  %v1814_v9 = vmax.f32 %v1812_v58, %v1813_v19 }
 0x200   :  { %2284 = vperm.xlu0 %3953, %v2138_v38   ;;  %v1725_v56 = vadd.f32 %v1692_v2, %v5607_v10  ;;  %v1687_v25 = vpop.permute.xlu0 %1686  ;;  %v1745_v10 = vrot.slane %v5634_v41, 1  ;;  %v1787_v38 = vrot.slane %v1786_v17, 1  ;;  %v1774_v63 = vmax.f32 %v1772_v13, %v1773_v31 }
 0x201   :  { %v1820_v59 = vrot.slane %v1819_v24, 2  ;;  %v1825_v49 = vrot.slane %v1824_v45, 4  ;;  %v1724_v40 = vadd.f32 %v1687_v25, %v5612_v4  ;;  %v6951_v4 = vand.u32 2147483647, %v5452_v23 }
 0x202   :  { %v1739_v23 = vmax.f32 %v5621_v14, %v1738_v52  ;;  %v1781_v21 = vmax.f32 %v1779_v18, %v1780_v12  ;;  %v6953_v47 = vand.u32 2147483647, %v5462_v6  ;;  %v1795_v48 = vmax.f32 %v1793_v30, %v1794_v20  ;;  %v3834_v12 = vld [vmem:[%s6738_s3 + $0x158] sm:$0xff] }
 0x203   :  { %2299 = vperm.xlu1 %3954, %v2141_v34   ;;  %v1821_v44 = vmax.f32 %v1819_v24, %v1820_v59  ;;  %v1826_v36 = vmax.f32 %v1824_v45, %v1825_v49  ;;  %v1831_v42 = vmax.f32 %v1724_v40, %v1725_v56  ;;  %v5645_v11 = vpop.permute.xlu1 %1925  ;;  %v1815_v33 = vrot.slane %v1814_v9, 1  ;;  %v6956_v59 = vld [vmem:[#allocation31_spill] sm:$0xff]  ;;  %v3832_v40 = vld [vmem:[%s6738_s3 + $0x148] sm:$0xff] }
 0x204   :  { %2294 = vperm.xlu0 %3953, %v2140_v35   ;;  %v5648_v7 = vpop.permute.xlu0 %1920  ;;  %v6954_v55 = vand.u32 2147483647, %v5467_v15  ;;  %v1746_v14 = vmax.f32 %v5634_v41, %v1745_v10  ;;  %v1753_v52 = vmax.f32 %v1751_v37, %v1752_v60  ;;  %v1839_v61 = vmin.f32 %v1739_v23, %v1767_v29 }
 0x205   :  { %v1827_v54 = vrot.slane %v1826_v36, 2  ;;  %v1832_v8 = vrot.slane %v1831_v42, 4  ;;  %v1822_v26 = vrot.slane %v1821_v44, 1  ;;  %v1788_v35 = vmax.f32 %v1786_v17, %v1787_v38 }
 0x206   :  { %v1802_v16 = vmax.f32 %v1800_v62, %v1801_v22  ;;  %v1809_v28 = vmax.f32 %v1807_v53, %v1808_v1  ;;  %v1838_v2 = vmin.f32 %v5624_v50, %v1760_v51  ;;  %v1840_v13 = vmin.f32 %v1746_v14, %v1774_v63  ;;  %v3831_v50 = vld [vmem:[%s6738_s3 + $0x140] sm:$0xff]  ;;  %v3836_v1 = vld [vmem:[%s6738_s3 + $0x168] sm:$0xff] }
 0x207   :  { %2533 = vperm.xlu1 %3954, %v6951_v4   ;;  %v1828_v39 = vmax.f32 %v1826_v36, %v1827_v54  ;;  %v1833_v0 = vmax.f32 %v1831_v42, %v1832_v8  ;;  %v5654_v46 = vpop.permute.xlu1 %1935  ;;  %v1823_v6 = vmax.f32 %v1821_v44, %v1822_v26  ;;  %v1841_v15 = vmin.f32 %v1753_v52, %v1781_v21  ;;  %v6958_v42 = vld [vmem:[#allocation32_spill] sm:$0xff]  ;;  %v3833_v54 = vld [vmem:[%s6738_s3 + $0x150] sm:$0xff] }
 0x208   :  { %2528 = vperm.xlu0 %3953, %v6952_v57   ;;  %v5659_v58 = vpop.permute.xlu0 %1930  ;;  %v6955_v30 = vand.u32 2147483647, %v5472_v5  ;;  %v2500_v56 = vand.u32 2147483647, %v3829_v3  ;;  %v1816_v41 = vmax.f32 %v1814_v9, %v1815_v33  ;;  %v6957_v49 = vand.u32 2147483647, %v6956_v59 }
 0x209   :  { %v1829_v34 = vrot.slane %v1828_v39, 1  ;;  %v1834_v27 = vrot.slane %v1833_v0, 2  ;;  %v1843_v37 = vmin.f32 %v1839_v61, %v1795_v48  ;;  %v1842_v43 = vmin.f32 %v1838_v2, %v1788_v35  ;;  %v3838_v21 = vld [vmem:[%s6738_s3 + $0x178] sm:$0xff]  ;;  %v3839_v3 = vld [vmem:[%s6738_s3 + $0x180] sm:$0xff] }
 0x20a   :  { %v1844_v62 = vmin.f32 %v1840_v13, %v1802_v16  ;;  %v1845_v53 = vmin.f32 %v1841_v15, %v1809_v28  ;;  %v6959_v10 = vand.u32 2147483647, %v6958_v42  ;;  %v2503_v32 = vand.u32 2147483647, %v3832_v40  ;;  %v3842_v16 = vld [vmem:[%s6738_s3 + $0x198] sm:$0xff]  ;;  %v3841_v28 = vld [vmem:[%s6738_s3 + $0x190] sm:$0xff] }
 0x20b   :  { %2543 = vperm.xlu1 %3954, %v6953_v47   ;;  %v1835_v24 = vmax.f32 %v1833_v0, %v1834_v27  ;;  %v5669_v45 = vpop.permute.xlu1 %1945  ;;  %v1830_v25 = vmax.f32 %v1828_v39, %v1829_v34  ;;  %v1847_v44 = vmin.f32 %v1843_v37, %v1823_v6  ;;  %v2502_v31 = vand.u32 2147483647, %v3831_v50  ;;  %v3835_v39 = vld [vmem:[%s6738_s3 + $0x160] sm:$0xff]  ;;  %v3837_v47 = vld [vmem:[%s6738_s3 + $0x170] sm:$0xff]  ;;  %v3844_v15 = vld [vmem:[%s6738_s3 + $0x1a8] sm:$0xff] }
 0x20c   :  { %2538 = vperm.xlu0 %3953, %v6954_v55   ;;  %v5672_v18 = vpop.permute.xlu0 %1940  ;;  %v1846_v4 = vmin.f32 %v1842_v43, %v1816_v41  ;;  %v2505_v38 = vand.u32 2147483647, %v3834_v12  ;;  %v2504_v22 = vand.u32 2147483647, %v3833_v54  ;;  %v2507_v51 = vand.u32 2147483647, %v3836_v1 }
 0x20d   :  { %v1836_v19 = vrot.slane %v1835_v24, 1  ;;  %v1848_v20 = vmin.f32 %v1844_v62, %v1830_v25  ;;  %v2506_v63 = vand.u32 2147483647, %v3835_v39  ;;  %v2509_v34 = vand.u32 2147483647, %v3838_v21  ;;  %v3840_v55 = vld [vmem:[%s6738_s3 + $0x188] sm:$0xff] }
 0x20e   :  { %v1850_v57 = vmin.f32 %v1846_v4, %v1847_v44  ;;  %v2508_v27 = vand.u32 2147483647, %v3837_v47  ;;  %v2511_v61 = vand.u32 2147483647, %v3840_v55  ;;  %v2510_v35 = vand.u32 2147483647, %v3839_v3 }
 0x20f   :  { %2553 = vperm.xlu1 %3954, %v6955_v30   ;;  %v1837_v17 = vmax.f32 %v1835_v24, %v1836_v19  ;;  %v5684_v5 = vpop.permute.xlu1 %1955  ;;  %v2513_v2 = vand.u32 2147483647, %v3842_v16  ;;  %v2512_v13 = vand.u32 2147483647, %v3841_v28  ;;  %v3843_v30 = vld [vmem:[%s6738_s3 + $0x1a0] sm:$0xff]  ;;  %v3846_v59 = vld [vmem:[%s6738_s3 + $0x1b8] sm:$0xff] }
 0x210   :  { %2548 = vperm.xlu0 %3953, %v6957_v49   ;;  %v5686_v36 = vpop.permute.xlu0 %1950  ;;  %v2515_v25 = vand.u32 2147483647, %v3844_v15  ;;  %v2514_v19 = vand.u32 2147483647, %v3843_v30  ;;  %v3845_v49 = vld [vmem:[%s6738_s3 + $0x1b0] sm:$0xff]  ;;  %v3847_v62 = vld [vmem:[%s6738_s3 + $0x1c0] sm:$0xff] }
 0x211   :  { %v1849_v9 = vmin.f32 %v1845_v53, %v1837_v17  ;;  %v2517_v50 = vand.u32 2147483647, %v3846_v59  ;;  %v2516_v43 = vand.u32 2147483647, %v3845_v49  ;;  %v3848_v17 = vld [vmem:[%s6738_s3 + $0x1c8] sm:$0xff]  ;;  %v3853_v39 = vld [vmem:[%s6738_s3 + $0x1f0] sm:$0xff] }
 0x212   :  { %v2519_v42 = vand.u32 2147483647, %v3848_v17  ;;  %v3852_v54 = vld [vmem:[%s6738_s3 + $0x1e8] sm:$0xff]  ;;  %v2524_v47 = vand.u32 2147483647, %v3853_v39  ;;  %v3855_v3 = vld [vmem:[%s6739_s4 + $0x100] sm:$0xff] }
 0x213   :  { %2563 = vperm.xlu1 %3954, %v6959_v10   ;;  %v5696_v8 = vpop.permute.xlu1 %1965  ;;  %v1851_v60 = vmin.f32 %v1848_v20, %v1849_v9  ;;  %v2518_v10 = vand.u32 2147483647, %v3847_v62  ;;  %v3856_v55 = vld [vmem:[%s6739_s4 + $0x108] sm:$0xff]  ;;  %v3858_v16 = vld [vmem:[%s6739_s4 + $0x118] sm:$0xff]  ;;  %v3857_v28 = vld [vmem:[%s6739_s4 + $0x110] sm:$0xff] }
 0x214   :  { %2558 = vperm.xlu0 %3953, %v2500_v56   ;;  %v5698_v29 = vpop.permute.xlu0 %1960  ;;  %v3860_v15 = vld [vmem:[%s6739_s4 + $0x128] sm:$0xff]  ;;  %v3859_v30 = vld [vmem:[%s6739_s4 + $0x120] sm:$0xff]  ;;  %v3862_v59 = vld [vmem:[%s6739_s4 + $0x138] sm:$0xff] }
 0x215   :  { %v1852_v26 = vmin.f32 %v1850_v57, %v1851_v60  ;;  %v3851_v57 = vld [vmem:[%s6738_s3 + $0x1e0] sm:$0xff]  ;;  %v3861_v49 = vld [vmem:[%s6739_s4 + $0x130] sm:$0xff]  ;;  %v3864_v17 = vld [vmem:[%s6739_s4 + $0x148] sm:$0xff] }
 0x216   :  { %v2522_v1 = vand.u32 2147483647, %v3851_v57  ;;  %v3863_v62 = vld [vmem:[%s6739_s4 + $0x140] sm:$0xff]  ;;  %v3869_v39 = vld [vmem:[%s6739_s4 + $0x170] sm:$0xff] }
 0x217   :  { %2573 = vperm.xlu1 %3954, %v2503_v32   ;;  %v5706_v0 = vpop.permute.xlu1 %1975  ;;  %1853 = vst [vmem:[#allocation2] sm:$0x1] %v1852_v26  ;;  %v3850_v32 = vld [vmem:[%s6738_s3 + $0x1d8] sm:$0xff]  ;;  %v3867_v57 = vld [vmem:[%s6739_s4 + $0x160] sm:$0xff] }
 0x218   :  { %2568 = vperm.xlu0 %3953, %v2502_v31   ;;  %v5708_v23 = vpop.permute.xlu0 %1970  ;;  %v3849_v31 = vld [vmem:[%s6738_s3 + $0x1d0] sm:$0xff]  ;;  %v2521_v20 = vand.u32 2147483647, %v3850_v32  ;;  %v3854_v26 = vld [vmem:[%s6738_s3 + $0x1f8] sm:$0xff] }
 0x219   :  { %v2520_v9 = vand.u32 2147483647, %v3849_v31  ;;  %v2525_v21 = vand.u32 2147483647, %v3854_v26  ;;  %v3866_v32 = vld [vmem:[%s6739_s4 + $0x158] sm:$0xff]  ;;  %v3865_v31 = vld [vmem:[%s6739_s4 + $0x150] sm:$0xff] }
 0x21a   :  { %v3870_v26 = vld [vmem:[%s6739_s4 + $0x178] sm:$0xff] }
 0x21b   :  { %2583 = vperm.xlu1 %3954, %v2505_v38   ;;  %v5716_v48 = vpop.permute.xlu1 %1985 }
 0x21c   :  { %2578 = vperm.xlu0 %3953, %v2504_v22   ;;  %v5718_v33 = vpop.permute.xlu0 %1980  ;;  %v2523_v22 = vand.u32 2147483647, %v3852_v54  ;;  %v3868_v54 = vld [vmem:[%s6739_s4 + $0x168] sm:$0xff] }
 0x21f   :  { %2593 = vperm.xlu1 %3954, %v2507_v51   ;;  %v5726_v14 = vpop.permute.xlu1 %1995 }
 0x220   :  { %2588 = vperm.xlu0 %3953, %v2506_v63   ;;  %v5728_v52 = vpop.permute.xlu0 %1990 }
 0x223   :  { %2603 = vperm.xlu1 %3954, %v2509_v34   ;;  %v5736_v6 = vpop.permute.xlu1 %2005 }
 0x224   :  { %2598 = vperm.xlu0 %3953, %v2508_v27   ;;  %v5738_v24 = vpop.permute.xlu0 %2000 }
 0x227   :  { %2613 = vperm.xlu1 %3954, %v2511_v61   ;;  %v5746_v56 = vpop.permute.xlu1 %2015 }
 0x228   :  { %2608 = vperm.xlu0 %3953, %v2510_v35   ;;  %v5748_v41 = vpop.permute.xlu0 %2010 }
 0x22b   :  { %2623 = vperm.xlu1 %3954, %v2513_v2  }
 0x22c   :  { %2618 = vperm.xlu0 %3953, %v2512_v13   ;;  %v5756_v40 = vpop.permute.xlu1 %2025 }
 0x22d   :  { %v5758_v37 = vpop.permute.xlu0 %2020 }
 0x22f   :  { %2633 = vperm.xlu1 %3954, %v2515_v25  }
 0x230   :  { %2628 = vperm.xlu0 %3953, %v2514_v19   ;;  %v5766_v53 = vpop.permute.xlu1 %2035 }
 0x232   :  { %v5768_v44 = vpop.permute.xlu0 %2030 }
 0x233   :  { %2643 = vperm.xlu1 %3954, %v2517_v50  }
 0x234   :  { %2638 = vperm.xlu0 %3953, %v2516_v43  }
 0x235   :  { %v5776_v12 = vpop.permute.xlu1 %2045 }
 0x236   :  { %v5778_v4 = vpop.permute.xlu0 %2040 }
 0x237   :  { %2653 = vperm.xlu1 %3954, %v2519_v42  }
 0x238   :  { %2648 = vperm.xlu0 %3953, %v2518_v10  }
 0x239   :  { %v5786_v60 = vpop.permute.xlu1 %2055 }
 0x23a   :  { %v5788_v38 = vpop.permute.xlu0 %2050 }
 0x23b   :  { %2663 = vperm.xlu1 %3954, %v2521_v20  }
 0x23c   :  { %2658 = vperm.xlu0 %3953, %v2520_v9  }
 0x23e   :  { %v5796_v51 = vpop.permute.xlu1 %2065 }
 0x23f   :  { %v5798_v63 = vpop.permute.xlu0 %2060  ;;  %2673 = vperm.xlu1 %3954, %v2523_v22  }
 0x240   :  { %2668 = vperm.xlu0 %3953, %v2522_v1  }
 0x242   :  { %v5800_v34 = vpop.permute.xlu1 %2075 }
 0x243   :  { %v5802_v27 = vpop.permute.xlu0 %2070  ;;  %2683 = vperm.xlu1 %3954, %v2525_v21  }
 0x244   :  { %2678 = vperm.xlu0 %3953, %v2524_v47  }
 0x246   :  { %v5810_v61 = vpop.permute.xlu1 %2149 }
 0x247   :  { %v5812_v35 = vpop.permute.xlu0 %2144  ;;  %2758 = vperm.xlu1 %3954, %v3856_v55   ;;  %v3872_v55 = vld [vmem:[%s6739_s4 + $0x188] sm:$0xff] }
 0x248   :  { %2753 = vperm.xlu0 %3953, %v3855_v3   ;;  %v3871_v3 = vld [vmem:[%s6739_s4 + $0x180] sm:$0xff] }
 0x24a   :  { %v5820_v2 = vpop.permute.xlu1 %2159 }
 0x24b   :  { %v5822_v13 = vpop.permute.xlu0 %2154  ;;  %2768 = vperm.xlu1 %3954, %v3858_v16  }
 0x24c   :  { %2763 = vperm.xlu0 %3953, %v3857_v28  }
 0x24e   :  { %v5830_v25 = vpop.permute.xlu1 %2169 }
 0x24f   :  { %v5832_v19 = vpop.permute.xlu0 %2164  ;;  %2778 = vperm.xlu1 %3954, %v3860_v15   ;;  %v3874_v15 = vld [vmem:[%s6739_s4 + $0x198] sm:$0xff] }
 0x250   :  { %6960 = vst [vmem:[#allocation33_spill] sm:$0xff] %v5832_v19  ;;  %2773 = vperm.xlu0 %3953, %v3859_v30   ;;  %v3873_v30 = vld [vmem:[%s6739_s4 + $0x190] sm:$0xff]  ;;  %v6049_v19 = vld [vmem:[%s6738_s3 + $0x258] sm:$0xff] }
 0x251   :  { %6982 = vst [vmem:[#allocation49_spill] sm:$0xff] %v6049_v19  ;;  %v6137_v19 = vld [vmem:[%s6738_s3 + $0x290] sm:$0xff] }
 0x252   :  { %v5840_v50 = vpop.permute.xlu1 %2179  ;;  %6993 = vst [vmem:[#allocation27_spill] sm:$0xff] %v6137_v19 }
 0x253   :  { %v5842_v43 = vpop.permute.xlu0 %2174  ;;  %2788 = vperm.xlu1 %3954, %v3862_v59  }
 0x254   :  { %2783 = vperm.xlu0 %3953, %v3861_v49  }
 0x256   :  { %v5850_v42 = vpop.permute.xlu1 %2189 }
 0x257   :  { %6961 = vst [vmem:[#allocation34_spill] sm:$0xff] %v5850_v42  ;;  %v5852_v10 = vpop.permute.xlu0 %2184  ;;  %2798 = vperm.xlu1 %3954, %v3864_v17   ;;  %v3876_v17 = vld [vmem:[%s6739_s4 + $0x1a8] sm:$0xff]  ;;  %v6032_v42 = vld [vmem:[%s6738_s3 + $0x240] sm:$0xff] }
 0x258   :  { %6962 = vst [vmem:[#allocation35_spill] sm:$0xff] %v5852_v10  ;;  %2793 = vperm.xlu0 %3953, %v3863_v62   ;;  %v3875_v62 = vld [vmem:[%s6739_s4 + $0x1a0] sm:$0xff]  ;;  %6979 = vst [vmem:[#allocation56_spill] sm:$0xff] %v6032_v42  ;;  %v6152_v42 = vld [vmem:[%s6738_s3 + $0x2a8] sm:$0xff] }
 0x25a   :  { %v5860_v20 = vpop.permute.xlu1 %2199 }
 0x25b   :  { %v5862_v9 = vpop.permute.xlu0 %2194  ;;  %2808 = vperm.xlu1 %3954, %v3866_v32  }
 0x25c   :  { %2803 = vperm.xlu0 %3953, %v3865_v31  }
 0x25e   :  { %v5870_v22 = vpop.permute.xlu1 %2209 }
 0x25f   :  { %v5872_v1 = vpop.permute.xlu0 %2204  ;;  %2818 = vperm.xlu1 %3954, %v3868_v54   ;;  %v3878_v54 = vld [vmem:[%s6739_s4 + $0x1b8] sm:$0xff] }
 0x260   :  { %2813 = vperm.xlu0 %3953, %v3867_v57   ;;  %v3877_v57 = vld [vmem:[%s6739_s4 + $0x1b0] sm:$0xff] }
 0x262   :  { %v5880_v21 = vpop.permute.xlu1 %2219 }
 0x263   :  { %v5882_v47 = vpop.permute.xlu0 %2214  ;;  %2828 = vperm.xlu1 %3954, %v3870_v26  }
 0x264   :  { %2823 = vperm.xlu0 %3953, %v3869_v39  }
 0x266   :  { %v5890_v16 = vpop.permute.xlu1 %2229 }
 0x267   :  { %6963 = vst [vmem:[#allocation36_spill] sm:$0xff] %v5890_v16  ;;  %v5892_v28 = vpop.permute.xlu0 %2224  ;;  %2838 = vperm.xlu1 %3954, %v3872_v55   ;;  %v3880_v55 = vld [vmem:[%s6739_s4 + $0x1c8] sm:$0xff] }
 0x268   :  { %6964 = vst [vmem:[#allocation37_spill] sm:$0xff] %v5892_v28  ;;  %2833 = vperm.xlu0 %3953, %v3871_v3   ;;  %v3879_v3 = vld [vmem:[%s6739_s4 + $0x1c0] sm:$0xff]  ;;  %v3889_v28 = vld [vmem:[%s6738_s3 + $0x210] sm:$0xff]  ;;  %v5979_v16 = vld [vmem:[%s6738_s3 + $0x228] sm:$0xff] }
 0x269   :  { %v3105_v10 = vand.u32 2147483647, %v3889_v28 }
 0x26a   :  { %v5900_v59 = vpop.permute.xlu1 %2239 }
 0x26b   :  { %6965 = vst [vmem:[#allocation38_spill] sm:$0xff] %v5900_v59  ;;  %v5902_v49 = vpop.permute.xlu0 %2234  ;;  %2848 = vperm.xlu1 %3954, %v3874_v15  }
 0x26c   :  { %6966 = vst [vmem:[#allocation39_spill] sm:$0xff] %v5902_v49  ;;  %2843 = vperm.xlu0 %3953, %v3873_v30   ;;  %v6011_v49 = vld [vmem:[%s6738_s3 + $0x230] sm:$0xff] }
 0x26e   :  { %v5910_v32 = vpop.permute.xlu1 %2249 }
 0x26f   :  { %6967 = vst [vmem:[#allocation40_spill] sm:$0xff] %v5910_v32  ;;  %v5912_v31 = vpop.permute.xlu0 %2244  ;;  %2858 = vperm.xlu1 %3954, %v3876_v17   ;;  %v3882_v17 = vld [vmem:[%s6739_s4 + $0x1d8] sm:$0xff] }
 0x270   :  { %6968 = vst [vmem:[#allocation41_spill] sm:$0xff] %v5912_v31  ;;  %2853 = vperm.xlu0 %3953, %v3875_v62   ;;  %v3881_v62 = vld [vmem:[%s6739_s4 + $0x1d0] sm:$0xff] }
 0x272   :  { %v5920_v26 = vpop.permute.xlu1 %2259 }
 0x273   :  { %v5922_v39 = vpop.permute.xlu0 %2254  ;;  %2868 = vperm.xlu1 %3954, %v3878_v54  }
 0x274   :  { %2863 = vperm.xlu0 %3953, %v3877_v57  }
 0x276   :  { %v5930_v15 = vpop.permute.xlu1 %2269 }
 0x277   :  { %6969 = vst [vmem:[#allocation42_spill] sm:$0xff] %v5930_v15  ;;  %v5932_v30 = vpop.permute.xlu0 %2264  ;;  %2878 = vperm.xlu1 %3954, %v3880_v55   ;;  %v3883_v55 = vld [vmem:[%s6739_s4 + $0x1e0] sm:$0xff] }
 0x278   :  { %6970 = vst [vmem:[#allocation43_spill] sm:$0xff] %v5932_v30  ;;  %2873 = vperm.xlu0 %3953, %v3879_v3   ;;  %v3884_v30 = vld [vmem:[%s6739_s4 + $0x1e8] sm:$0xff] }
 0x27a   :  { %v5940_v54 = vpop.permute.xlu1 %2279 }
 0x27b   :  { %6971 = vst [vmem:[#allocation44_spill] sm:$0xff] %v5940_v54  ;;  %v5942_v57 = vpop.permute.xlu0 %2274  ;;  %2888 = vperm.xlu1 %3954, %v3882_v17   ;;  %v3888_v17 = vld [vmem:[%s6738_s3 + $0x208] sm:$0xff] }
 0x27c   :  { %6972 = vst [vmem:[#allocation45_spill] sm:$0xff] %v5942_v57  ;;  %2883 = vperm.xlu0 %3953, %v3881_v62   ;;  %v3886_v57 = vld [vmem:[%s6739_s4 + $0x1f8] sm:$0xff]  ;;  %v3885_v62 = vld [vmem:[%s6739_s4 + $0x1f0] sm:$0xff] }
 0x27e   :  { %v5950_v3 = vpop.permute.xlu1 %2289 }
 0x27f   :  { %6973 = vst [vmem:[#allocation46_spill] sm:$0xff] %v5950_v3  ;;  %v5952_v15 = vpop.permute.xlu0 %2284  ;;  %2898 = vperm.xlu1 %3954, %v3884_v30   ;;  %v3887_v3 = vld [vmem:[%s6738_s3 + $0x200] sm:$0xff]  ;;  %v3890_v30 = vld [vmem:[%s6738_s3 + $0x218] sm:$0xff] }
 0x280   :  { %6974 = vst [vmem:[#allocation51_spill] sm:$0xff] %v5952_v15  ;;  %2893 = vperm.xlu0 %3953, %v3883_v55   ;;  %v3104_v15 = vand.u32 2147483647, %v3888_v17  ;;  %v3103_v31 = vand.u32 2147483647, %v3887_v3 }
 0x281   :  { %v5994_v17 = vld [vmem:[%s6735_s0] ss:$0 sm:$0xff]  ;;  %v3106_v32 = vand.u32 2147483647, %v3890_v30  ;;  %v6027_v30 = vld [vmem:[%s6738_s3 + $0x248] sm:$0xff] }
 0x282   :  { %v5966_v54 = vpop.permute.xlu1 %2299  ;;  %v6002_v3 = vmul.f32 %v5994_v17, %v5648_v7  ;;  %v6015_v59 = vmul.f32 %v5994_v17, %v5659_v58  ;;  %6978 = vst [vmem:[#allocation55_spill] sm:$0xff] %v6027_v30  ;;  %v6036_v58 = vmul.f32 %v5994_v17, %v5672_v18  ;;  %v6054_v18 = vld [vmem:[%s6738_s3 + $0x250] sm:$0xff]  ;;  %v6114_v30 = vld [vmem:[%s6738_s3 + $0x288] sm:$0xff]  ;;  %v6203_v19 = vmul.f32 %v5994_v17, %v5776_v12 }
 0x283   :  { %6975 = vst [vmem:[#allocation52_spill] sm:$0xff] %v5966_v54  ;;  %v5971_v55 = vpop.permute.xlu0 %2294  ;;  %2908 = vperm.xlu1 %3954, %v3886_v57   ;;  %v5984_v54 = vld [vmem:[%s6738_s3 + $0x220] sm:$0xff]  ;;  %v5989_v57 = vld [vmem:[%s6738_s3 + $0x238] sm:$0xff]  ;;  %6983 = vst [vmem:[#allocation50_spill] sm:$0xff] %v6054_v18 }
 0x284   :  { %6976 = vst [vmem:[#allocation47_spill] sm:$0xff] %v5971_v55  ;;  %2903 = vperm.xlu0 %3953, %v3885_v62   ;;  %v5998_v55 = vmul.f32 %v5994_v17, %v5645_v11  ;;  %v6006_v62 = vmul.f32 %v5994_v17, %v5654_v46  ;;  %v6019_v11 = vmul.f32 %v5994_v17, %v5669_v45  ;;  %v3108_v46 = vand.u32 2147483647, %v5979_v16  ;;  %v6132_v18 = vld [vmem:[%s6738_s3 + $0x298] sm:$0xff] }
 0x285   :  { %6980 = vst [vmem:[#allocation59_spill] sm:$0xff] %v6036_v58  ;;  %v6040_v45 = vmul.f32 %v5994_v17, %v5684_v5  ;;  %v3107_v16 = vand.u32 2147483647, %v5984_v54  ;;  %v6058_v5 = vmul.f32 %v5994_v17, %v5686_v36  ;;  %v6066_v54 = vmul.f32 %v5994_v17, %v5698_v29  ;;  %v6077_v36 = vld [vmem:[%s6738_s3 + $0x260] sm:$0xff]  ;;  %6989 = vst [vmem:[#allocation62_spill] sm:$0xff] %v6114_v30 }
 0x286   :  { %v6021_v7 = vpop.permute.xlu1 %2533  ;;  %v6085_v29 = vmul.f32 %v5994_v17, %v5708_v23  ;;  %v6105_v23 = vmul.f32 %v5994_v17, %v5718_v33  ;;  %v2093_v33 = vmul.f32 %v5994_v17, %v5726_v14  ;;  %6992 = vst [vmem:[#allocation16_spill] sm:$0xff] %v6132_v18  ;;  %v6141_v14 = vmul.f32 %v5994_v17, %v5736_v6  ;;  %v6191_v30 = vld [vmem:[%s6738_s3 + $0x2c0] sm:$0xff] }
 0x287   :  { %6977 = vst [vmem:[#allocation48_spill] sm:$0xff] %v6021_v7  ;;  %v6042_v28 = vpop.permute.xlu0 %2528  ;;  %3142 = vperm.xlu1 %3954, %v3104_v15   ;;  %v6062_v15 = vmul.f32 %v5994_v17, %v5696_v8  ;;  %6985 = vst [vmem:[#allocation61_spill] sm:$0xff] %v6066_v54  ;;  %v6081_v8 = vmul.f32 %v5994_v17, %v5706_v0  ;;  %v6092_v54 = vld [vmem:[%s6738_s3 + $0x278] sm:$0xff]  ;;  %v6101_v0 = vmul.f32 %v5994_v17, %v5716_v48  ;;  %v6119_v48 = vld [vmem:[%s6738_s3 + $0x280] sm:$0xff] }
 0x288   :  { %6981 = vst [vmem:[#allocation60_spill] sm:$0xff] %v6042_v28  ;;  %3137 = vperm.xlu0 %3953, %v3103_v31   ;;  %v6072_v28 = vld [vmem:[%s6738_s3 + $0x268] sm:$0xff]  ;;  %6986 = vst [vmem:[#allocation54_spill] sm:$0xff] %v6092_v54  ;;  %v2097_v6 = vmul.f32 %v5994_v17, %v5746_v56  ;;  %v2099_v56 = vmul.f32 %v5994_v17, %v5756_v40  ;;  %v2101_v40 = vmul.f32 %v5994_v17, %v5766_v53 }
 0x289   :  { %6984 = vst [vmem:[#allocation53_spill] sm:$0xff] %v6062_v15  ;;  %v6097_v15 = vld [vmem:[%s6738_s3 + $0x270] sm:$0xff]  ;;  %6990 = vst [vmem:[#allocation63_spill] sm:$0xff] %v6119_v48  ;;  %v6186_v48 = vld [vmem:[%s6738_s3 + $0x2c8] sm:$0xff]  ;;  %v6207_v18 = vmul.f32 %v5994_v17, %v5778_v4  ;;  %v2104_v4 = vmul.f32 %v5994_v17, %v5788_v38  ;;  %v2308_v38 = vadd.f32 %v5842_v43, %v6058_v5 }
 0x28a   :  { %6987 = vst [vmem:[#allocation57_spill] sm:$0xff] %v6097_v15  ;;  %v6107_v31 = vpop.permute.xlu1 %2543  ;;  %v6173_v15 = vld [vmem:[%s6738_s3 + $0x2b0] sm:$0xff]  ;;  %v2317_v12 = vadd.f32 %v5880_v21, %v2093_v33  ;;  %v2303_v43 = vadd.f32 %v5810_v61, %v5998_v55  ;;  %v2314_v21 = vadd.f32 %v5872_v1, %v6105_v23  ;;  %v6999_v55 = vld [vmem:[#allocation33_spill] sm:$0xff] }
 0x28b   :  { %6988 = vst [vmem:[#allocation58_spill] sm:$0xff] %v6107_v31  ;;  %v2092_v31 = vmul.f32 %v5994_v17, %v5728_v52  ;;  %v6125_v58 = vpop.permute.xlu0 %2538  ;;  %3152 = vperm.xlu1 %3954, %v3106_v32   ;;  %v6145_v52 = vmul.f32 %v5994_v17, %v5738_v24  ;;  %v2096_v24 = vmul.f32 %v5994_v17, %v5748_v41  ;;  %v6168_v32 = vld [vmem:[%s6738_s3 + $0x2b8] sm:$0xff] }
 0x28c   :  { %6991 = vst [vmem:[#allocation15_spill] sm:$0xff] %v6125_v58  ;;  %3147 = vperm.xlu0 %3953, %v3105_v10   ;;  %v6157_v58 = vld [vmem:[%s6738_s3 + $0x2a0] sm:$0xff]  ;;  %v2098_v41 = vmul.f32 %v5994_v17, %v5758_v37  ;;  %v2100_v37 = vmul.f32 %v5994_v17, %v5768_v44  ;;  %v2304_v10 = vadd.f32 %v5822_v13, %v6015_v59  ;;  %v6998_v61 = vld [vmem:[#allocation59_spill] sm:$0xff] }
 0x28d   :  { %v2106_v44 = vmul.f32 %v5994_v17, %v5798_v63  ;;  %v2109_v13 = vmul.f32 %v5994_v17, %v5800_v34  ;;  %v2108_v59 = vmul.f32 %v5994_v17, %v5802_v27  ;;  %v2313_v63 = vadd.f32 %v5860_v20, %v6081_v8  ;;  %v7001_v8 = vld [vmem:[#allocation34_spill] sm:$0xff] }
 0x28e   :  { %v6179_v54 = vpop.permute.xlu1 %2553  ;;  %v2312_v34 = vadd.f32 %v5862_v9, %v6085_v29  ;;  %v2316_v27 = vadd.f32 %v5882_v47, %v2092_v31  ;;  %v2307_v20 = vadd.f32 %v5830_v25, %v6019_v11  ;;  %v2315_v9 = vadd.f32 %v5870_v22, %v6101_v0  ;;  %v7002_v25 = vld [vmem:[#allocation61_spill] sm:$0xff]  ;;  %v7003_v11 = vld [vmem:[#allocation35_spill] sm:$0xff] }
 0x28f   :  { %6994 = vst [vmem:[#allocation7_spill] sm:$0xff] %v6179_v54  ;;  %v6197_v54 = vpop.permute.xlu0 %2548  ;;  %3162 = vperm.xlu1 %3954, %v3108_v46   ;;  %v2305_v46 = vadd.f32 %v5820_v2, %v6006_v62  ;;  %v2325_v47 = vadd.f32 %v5920_v26, %v2101_v40  ;;  %v2310_v31 = vadd.f32 %v7003_v11, %v7002_v25  ;;  %v7004_v0 = vld [vmem:[#allocation55_spill] sm:$0xff]  ;;  %v7014_v11 = vld [vmem:[#allocation36_spill] sm:$0xff] }
 0x290   :  { %6995 = vst [vmem:[#allocation28_spill] sm:$0xff] %v6197_v54  ;;  %3157 = vperm.xlu0 %3953, %v3107_v16   ;;  %v2105_v54 = vmul.f32 %v5994_v17, %v5786_v60  ;;  %v2107_v16 = vmul.f32 %v5994_v17, %v5796_v51  ;;  %v2309_v60 = vadd.f32 %v5840_v50, %v6040_v45  ;;  %v6996_v51 = vand.u32 2147483647, %v5989_v57  ;;  %v7000_v5 = vld [vmem:[#allocation53_spill] sm:$0xff] }
 0x291   :  { %v6997_v50 = vand.u32 2147483647, %v6011_v49  ;;  %v2302_v57 = vadd.f32 %v5812_v35, %v6002_v3  ;;  %v6251_v17 = vmax.f32 %v2304_v10, %v2305_v46  ;;  %v2324_v49 = vadd.f32 %v5922_v39, %v2100_v37  ;;  %v7006_v39 = vld [vmem:[#allocation38_spill] sm:$0xff]  ;;  %v7007_v10 = vld [vmem:[#allocation39_spill] sm:$0xff]  ;;  %v7008_v37 = vld [vmem:[#allocation56_spill] sm:$0xff] }
 0x292   :  { %v6225_v2 = vpop.permute.xlu1 %2563  ;;  %v2306_v35 = vadd.f32 %v6999_v55, %v6998_v61  ;;  %v2355_v3 = vmax.f32 %v2308_v38, %v2309_v60  ;;  %v2311_v29 = vadd.f32 %v7001_v8, %v7000_v5  ;;  %v7005_v1 = vand.u32 2147483647, %v7004_v0  ;;  %v7010_v60 = vld [vmem:[#allocation40_spill] sm:$0xff]  ;;  %v7013_v5 = vld [vmem:[#allocation47_spill] sm:$0xff] }
 0x293   :  { %v6235_v62 = vpop.permute.xlu0 %2558  ;;  %3172 = vperm.xlu1 %3954, %v6996_v51   ;;  %v2369_v26 = vmax.f32 %v2312_v34, %v2313_v63  ;;  %v2383_v23 = vmax.f32 %v2316_v27, %v2317_v12  ;;  %v2321_v33 = vadd.f32 %v7006_v39, %v2097_v6  ;;  %v2320_v40 = vadd.f32 %v7007_v10, %v2096_v24  ;;  %v7011_v51 = vld [vmem:[#allocation41_spill] sm:$0xff]  ;;  %v7012_v61 = vld [vmem:[#allocation52_spill] sm:$0xff]  ;;  %v7018_v39 = vld [vmem:[#allocation46_spill] sm:$0xff] }
 0x294   :  { %3167 = vperm.xlu0 %3953, %v6997_v50   ;;  %v7009_v46 = vand.u32 2147483647, %v7008_v37  ;;  %v2323_v38 = vadd.f32 %v7010_v60, %v2099_v56  ;;  %v2322_v50 = vadd.f32 %v7011_v51, %v2098_v41  ;;  %v2333_v55 = vadd.f32 %v7012_v61, %v2109_v13  ;;  %v7015_v12 = vld [vmem:[#allocation37_spill] sm:$0xff]  ;;  %v7016_v27 = vld [vmem:[#allocation44_spill] sm:$0xff]  ;;  %v7019_v10 = vld [vmem:[#allocation51_spill] sm:$0xff] }
 0x295   :  { %v2332_v8 = vadd.f32 %v7013_v5, %v2108_v59  ;;  %v2376_v25 = vmax.f32 %v2314_v21, %v2315_v9  ;;  %v2319_v63 = vadd.f32 %v7014_v11, %v6141_v14  ;;  %v2318_v6 = vadd.f32 %v7015_v12, %v6145_v52  ;;  %v7020_v59 = vld [vmem:[#allocation49_spill] sm:$0xff] }
 0x296   :  { %v6261_v45 = vpop.permute.xlu1 %2573  ;;  %v2411_v34 = vmax.f32 %v2324_v49, %v2325_v47  ;;  %v2329_v0 = vadd.f32 %v7016_v27, %v2105_v54  ;;  %v2331_v41 = vadd.f32 %v7018_v39, %v2107_v16  ;;  %v2330_v13 = vadd.f32 %v7019_v10, %v2106_v44  ;;  %v7022_v47 = vld [vmem:[#allocation50_spill] sm:$0xff]  ;;  %v7025_v16 = vld [vmem:[#allocation43_spill] sm:$0xff] }
 0x297   :  { %v6269_v22 = vpop.permute.xlu0 %2568  ;;  %3182 = vperm.xlu1 %3954, %v7005_v1   ;;  %v7017_v1 = vld [vmem:[#allocation45_spill] sm:$0xff]  ;;  %v7021_v9 = vand.u32 2147483647, %v7020_v59  ;;  %v2348_v14 = vmax.f32 %v2306_v35, %v2307_v20  ;;  %v2362_v21 = vmax.f32 %v2310_v31, %v2311_v29  ;;  %v2397_v52 = vmax.f32 %v2320_v40, %v2321_v33  ;;  %v7024_v54 = vld [vmem:[#allocation42_spill] sm:$0xff] }
 0x298   :  { %3177 = vperm.xlu0 %3953, %v7009_v46   ;;  %v2328_v56 = vadd.f32 %v7017_v1, %v2104_v4  ;;  %v2384_v46 = vrot.slane %v2383_v23, 4  ;;  %v7023_v49 = vand.u32 2147483647, %v7022_v47  ;;  %v2404_v60 = vmax.f32 %v2322_v50, %v2323_v38 }
 0x299   :  { %v2327_v4 = vadd.f32 %v7024_v54, %v6203_v19  ;;  %v2326_v51 = vadd.f32 %v7025_v16, %v6207_v18  ;;  %v2439_v44 = vmax.f32 %v2332_v8, %v2333_v55  ;;  %v2334_v61 = vmax.f32 %v2302_v57, %v2303_v43  ;;  %v7030_v54 = vld [vmem:[#allocation57_spill] sm:$0xff] }
 0x29a   :  { %v6285_v24 = vpop.permute.xlu1 %2583  ;;  %v2356_v5 = vrot.slane %v2355_v3, 4  ;;  %v2370_v11 = vrot.slane %v2369_v26, 4  ;;  %v2377_v12 = vrot.slane %v2376_v25, 4  ;;  %v2390_v20 = vmax.f32 %v2318_v6, %v2319_v63 }
 0x29b   :  { %v6291_v37 = vpop.permute.xlu0 %2578  ;;  %3192 = vperm.xlu1 %3954, %v7021_v9   ;;  %v2412_v35 = vrot.slane %v2411_v34, 4  ;;  %v2425_v29 = vmax.f32 %v2328_v56, %v2329_v0  ;;  %v2432_v31 = vmax.f32 %v2330_v13, %v2331_v41  ;;  %v7026_v40 = vand.u32 2147483647, %v6072_v28 }
 0x29c   :  { %3187 = vperm.xlu0 %3953, %v7023_v49   ;;  %v2342_v19 = vrot.slane %v6251_v17, 4  ;;  %v2349_v38 = vrot.slane %v2348_v14, 4  ;;  %v2363_v18 = vrot.slane %v2362_v21, 4  ;;  %v2385_v50 = vmax.f32 %v2383_v23, %v2384_v46  ;;  %v7028_v23 = vld [vmem:[#allocation54_spill] sm:$0xff] }
 0x29d   :  { %v7027_v43 = vand.u32 2147483647, %v6077_v36  ;;  %v2398_v57 = vrot.slane %v2397_v52, 4  ;;  %v2405_v55 = vrot.slane %v2404_v60, 4  ;;  %v2418_v8 = vmax.f32 %v2326_v51, %v2327_v4 }
 0x29e   :  { %v6301_v27 = vpop.permute.xlu1 %2593  ;;  %v2440_v63 = vrot.slane %v2439_v44, 4  ;;  %v2335_v6 = vrot.slane %v2334_v61, 4  ;;  %v2357_v0 = vmax.f32 %v2355_v3, %v2356_v5  ;;  %v2371_v1 = vmax.f32 %v2369_v26, %v2370_v11 }
 0x29f   :  { %v6303_v33 = vpop.permute.xlu0 %2588  ;;  %3202 = vperm.xlu1 %3954, %v7026_v40   ;;  %v2378_v56 = vmax.f32 %v2376_v25, %v2377_v12  ;;  %v2391_v28 = vrot.slane %v2390_v20, 4  ;;  %v2413_v41 = vmax.f32 %v2411_v34, %v2412_v35  ;;  %v2426_v10 = vrot.slane %v2425_v29, 4 }
 0x2a0   :  { %3197 = vperm.xlu0 %3953, %v7027_v43   ;;  %v2433_v13 = vrot.slane %v2432_v31, 4  ;;  %v7029_v9 = vand.u32 2147483647, %v7028_v23  ;;  %v2343_v36 = vmax.f32 %v6251_v17, %v2342_v19  ;;  %v2350_v46 = vmax.f32 %v2348_v14, %v2349_v38 }
 0x2a1   :  { %v2364_v47 = vmax.f32 %v2362_v21, %v2363_v18  ;;  %v2386_v49 = vrot.slane %v2385_v50, 2  ;;  %v7031_v3 = vand.u32 2147483647, %v7030_v54  ;;  %v2399_v26 = vmax.f32 %v2397_v52, %v2398_v57  ;;  %v7032_v21 = vld [vmem:[#allocation62_spill] sm:$0xff] }
 0x2a2   :  { %v6310_v39 = vpop.permute.xlu1 %2603  ;;  %v2406_v25 = vmax.f32 %v2404_v60, %v2405_v55  ;;  %v2419_v4 = vrot.slane %v2418_v8, 4  ;;  %v2441_v16 = vmax.f32 %v2439_v44, %v2440_v63  ;;  %v2336_v34 = vmax.f32 %v2334_v61, %v2335_v6  ;;  %v7034_v44 = vld [vmem:[#allocation63_spill] sm:$0xff] }
 0x2a3   :  { %v6312_v59 = vpop.permute.xlu0 %2598  ;;  %3212 = vperm.xlu1 %3954, %v7029_v9   ;;  %v2358_v51 = vrot.slane %v2357_v0, 2  ;;  %v2372_v5 = vrot.slane %v2371_v1, 2  ;;  %v2379_v11 = vrot.slane %v2378_v56, 2  ;;  %v2392_v35 = vmax.f32 %v2390_v20, %v2391_v28 }
 0x2a4   :  { %3207 = vperm.xlu0 %3953, %v7031_v3   ;;  %v2414_v40 = vrot.slane %v2413_v41, 2  ;;  %v2427_v43 = vmax.f32 %v2425_v29, %v2426_v10  ;;  %v2434_v17 = vmax.f32 %v2432_v31, %v2433_v13  ;;  %v7033_v19 = vand.u32 2147483647, %v7032_v21 }
 0x2a5   :  { %v2344_v38 = vrot.slane %v2343_v36, 2  ;;  %v2351_v52 = vrot.slane %v2350_v46, 2  ;;  %v2365_v60 = vrot.slane %v2364_v47, 2  ;;  %v2387_v18 = vmax.f32 %v2385_v50, %v2386_v49  ;;  %v7036_v50 = vld [vmem:[#allocation16_spill] sm:$0xff] }
 0x2a6   :  { %v6319_v12 = vpop.permute.xlu1 %2613  ;;  %v7035_v61 = vand.u32 2147483647, %v7034_v44  ;;  %v2400_v57 = vrot.slane %v2399_v26, 2  ;;  %v2407_v55 = vrot.slane %v2406_v25, 2  ;;  %v2420_v63 = vmax.f32 %v2418_v8, %v2419_v4  ;;  %v7038_v4 = vld [vmem:[#allocation27_spill] sm:$0xff] }
 0x2a7   :  { %v6321_v14 = vpop.permute.xlu0 %2608  ;;  %3222 = vperm.xlu1 %3954, %v7033_v19   ;;  %v2442_v6 = vrot.slane %v2441_v16, 2  ;;  %v2337_v20 = vrot.slane %v2336_v34, 2  ;;  %v2359_v28 = vmax.f32 %v2357_v0, %v2358_v51  ;;  %v2373_v29 = vmax.f32 %v2371_v1, %v2372_v5 }
 0x2a8   :  { %3217 = vperm.xlu0 %3953, %v7035_v61   ;;  %v2380_v31 = vmax.f32 %v2378_v56, %v2379_v11  ;;  %v2393_v13 = vrot.slane %v2392_v35, 2  ;;  %v2415_v23 = vmax.f32 %v2413_v41, %v2414_v40  ;;  %v2428_v9 = vrot.slane %v2427_v43, 2 }
 0x2a9   :  { %v2435_v54 = vrot.slane %v2434_v17, 2  ;;  %v7037_v49 = vand.u32 2147483647, %v7036_v50  ;;  %v2345_v21 = vmax.f32 %v2343_v36, %v2344_v38  ;;  %v2352_v19 = vmax.f32 %v2350_v46, %v2351_v52 }
 0x2aa   :  { %v6327_v10 = vpop.permute.xlu1 %2623  ;;  %v2366_v44 = vmax.f32 %v2364_v47, %v2365_v60  ;;  %v2388_v8 = vrot.slane %v2387_v18, 1  ;;  %v7039_v61 = vand.u32 2147483647, %v7038_v4  ;;  %v2401_v0 = vmax.f32 %v2399_v26, %v2400_v57 }
 0x2ab   :  { %v6329_v3 = vpop.permute.xlu0 %2618  ;;  %3232 = vperm.xlu1 %3954, %v7037_v49   ;;  %v2408_v1 = vmax.f32 %v2406_v25, %v2407_v55  ;;  %v2421_v56 = vrot.slane %v2420_v63, 2  ;;  %v2443_v51 = vmax.f32 %v2441_v16, %v2442_v6  ;;  %v2338_v5 = vmax.f32 %v2336_v34, %v2337_v20 }
 0x2ac   :  { %3227 = vperm.xlu0 %3953, %v7039_v61   ;;  %v2360_v41 = vrot.slane %v2359_v28, 1  ;;  %v2374_v11 = vrot.slane %v2373_v29, 1  ;;  %v2381_v40 = vrot.slane %v2380_v31, 1  ;;  %v2394_v53 = vmax.f32 %v2392_v35, %v2393_v13 }
 0x2ad   :  { %v2416_v50 = vrot.slane %v2415_v23, 1  ;;  %v2429_v49 = vmax.f32 %v2427_v43, %v2428_v9  ;;  %v2436_v36 = vmax.f32 %v2434_v17, %v2435_v54  ;;  %v7040_v47 = vand.u32 2147483647, %v6152_v42 }
 0x2ae   :  { %v6335_v7 = vpop.permute.xlu1 %2633  ;;  %v2346_v38 = vrot.slane %v2345_v21, 1  ;;  %v2353_v26 = vrot.slane %v2352_v19, 1  ;;  %v2367_v25 = vrot.slane %v2366_v44, 1  ;;  %v2389_v52 = vmax.f32 %v2387_v18, %v2388_v8 }
 0x2af   :  { %v6337_v46 = vpop.permute.xlu0 %2628  ;;  %3242 = vperm.xlu1 %3954, %v7040_v47   ;;  %v7041_v16 = vand.u32 2147483647, %v6157_v58  ;;  %v2402_v34 = vrot.slane %v2401_v0, 1  ;;  %v2409_v60 = vrot.slane %v2408_v1, 1  ;;  %v2422_v57 = vmax.f32 %v2420_v63, %v2421_v56  ;;  %v3914_v58 = vld [vmem:[%s6738_s3 + $0x2d8] sm:$0xff] }
 0x2b0   :  { %v2444_v55 = vrot.slane %v2443_v51, 1  ;;  %v2339_v35 = vrot.slane %v2338_v5, 1  ;;  %v2361_v6 = vmax.f32 %v2359_v28, %v2360_v41  ;;  %v2375_v43 = vmax.f32 %v2373_v29, %v2374_v11 }
 0x2b1   :  { %3237 = vperm.xlu0 %3953, %v7041_v16   ;;  %v2382_v17 = vmax.f32 %v2380_v31, %v2381_v40  ;;  %v2395_v13 = vrot.slane %v2394_v53, 1  ;;  %v2417_v42 = vmax.f32 %v2415_v23, %v2416_v50  ;;  %v2430_v9 = vrot.slane %v2429_v49, 1 }
 0x2b2   :  { %v6343_v20 = vpop.permute.xlu1 %2643  ;;  %v2437_v54 = vrot.slane %v2436_v36, 1  ;;  %v7042_v18 = vand.u32 2147483647, %v6168_v32  ;;  %v2347_v63 = vmax.f32 %v2345_v21, %v2346_v38  ;;  %v2354_v8 = vmax.f32 %v2352_v19, %v2353_v26  ;;  %v3913_v32 = vld [vmem:[%s6738_s3 + $0x2d0] sm:$0xff] }
 0x2b3   :  { %v6345_v4 = vpop.permute.xlu0 %2638  ;;  %v2368_v28 = vmax.f32 %v2366_v44, %v2367_v25  ;;  %v2449_v29 = vmin.f32 %v2361_v6, %v2389_v52  ;;  %v7043_v31 = vand.u32 2147483647, %v6173_v15  ;;  %v2403_v61 = vmax.f32 %v2401_v0, %v2402_v34 }
 0x2b4   :  { %3252 = vperm.xlu1 %3954, %v7042_v18   ;;  %v2410_v23 = vmax.f32 %v2408_v1, %v2409_v60  ;;  %v2423_v56 = vrot.slane %v2422_v57, 1  ;;  %v2445_v41 = vmax.f32 %v2443_v51, %v2444_v55  ;;  %v2340_v11 = vmax.f32 %v2338_v5, %v2339_v35  ;;  %v3916_v5 = vld [vmem:[%s6738_s3 + $0x2e8] sm:$0xff] }
 0x2b5   :  { %3247 = vperm.xlu0 %3953, %v7043_v31   ;;  %v2447_v40 = vmin.f32 %v2347_v63, %v2375_v43  ;;  %v2448_v50 = vmin.f32 %v2354_v8, %v2382_v17  ;;  %v3130_v21 = vand.u32 2147483647, %v3914_v58  ;;  %v2396_v19 = vmax.f32 %v2394_v53, %v2395_v13  ;;  %v3917_v13 = vld [vmem:[%s6738_s3 + $0x2f0] sm:$0xff]  ;;  %v7046_v31 = vld [vmem:[#allocation48_spill] sm:$0xff] }
 0x2b6   :  { %v6357_v47 = vpop.permute.xlu1 %2653  ;;  %v2453_v44 = vmin.f32 %v2449_v29, %v2417_v42  ;;  %v2431_v38 = vmax.f32 %v2429_v49, %v2430_v9  ;;  %v2438_v26 = vmax.f32 %v2436_v36, %v2437_v54  ;;  %v7044_v0 = vand.u32 2147483647, %v6186_v48  ;;  %v3915_v49 = vld [vmem:[%s6738_s3 + $0x2e0] sm:$0xff]  ;;  %v3920_v29 = vld [vmem:[%s6739_s4 + $0x208] sm:$0xff] }
 0x2b7   :  { %v6359_v15 = vpop.permute.xlu0 %2648  ;;  %v2446_v1 = vmin.f32 %v2340_v11, %v2368_v28  ;;  %v7045_v51 = vand.u32 2147483647, %v6191_v30  ;;  %v3129_v25 = vand.u32 2147483647, %v3913_v32  ;;  %v2451_v52 = vmin.f32 %v2447_v40, %v2403_v61 }
 0x2b8   :  { %3262 = vperm.xlu1 %3954, %v7044_v0   ;;  %v2452_v16 = vmin.f32 %v2448_v50, %v2410_v23  ;;  %v2424_v53 = vmax.f32 %v2422_v57, %v2423_v56  ;;  %v2457_v34 = vmin.f32 %v2453_v44, %v2445_v41  ;;  %v3132_v35 = vand.u32 2147483647, %v3916_v5  ;;  %v3918_v57 = vld [vmem:[%s6738_s3 + $0x2f8] sm:$0xff]  ;;  %v3919_v23 = vld [vmem:[%s6739_s4 + $0x200] sm:$0xff] }
 0x2b9   :  { %3257 = vperm.xlu0 %3953, %v7045_v51   ;;  %v2450_v48 = vmin.f32 %v2446_v1, %v2396_v19  ;;  %v2455_v60 = vmin.f32 %v2451_v52, %v2431_v38  ;;  %v3131_v6 = vand.u32 2147483647, %v3915_v49  ;;  %v3134_v18 = vand.u32 2147483647, %v3918_v57  ;;  %v7047_v56 = vld [vmem:[#allocation60_spill] sm:$0xff]  ;;  %v7048_v19 = vld [vmem:[#allocation58_spill] sm:$0xff] }
 0x2ba   :  { %v6371_v36 = vpop.permute.xlu1 %2663  ;;  %v2456_v55 = vmin.f32 %v2452_v16, %v2438_v26  ;;  %v3133_v58 = vand.u32 2147483647, %v3917_v13  ;;  %v3921_v38 = vld [vmem:[%s6739_s4 + $0x210] sm:$0xff]  ;;  %v3924_v16 = vld [vmem:[%s6739_s4 + $0x228] sm:$0xff]  ;;  %v3923_v49 = vld [vmem:[%s6739_s4 + $0x220] sm:$0xff] }
 0x2bb   :  { %v6373_v30 = vpop.permute.xlu0 %2658  ;;  %v2454_v43 = vmin.f32 %v2450_v48, %v2424_v53  ;;  %v7049_v26 = vld [vmem:[#allocation15_spill] sm:$0xff]  ;;  %v7051_v48 = vld [vmem:[#allocation28_spill] sm:$0xff] }
 0x2bc   :  { %3272 = vperm.xlu1 %3954, %v3130_v21   ;;  %v2459_v17 = vmin.f32 %v2456_v55, %v2457_v34  ;;  %v3922_v21 = vld [vmem:[%s6739_s4 + $0x218] sm:$0xff] }
 0x2bd   :  { %3267 = vperm.xlu0 %3953, %v3129_v25   ;;  %v2458_v9 = vmin.f32 %v2454_v43, %v2455_v60  ;;  %v7050_v53 = vld [vmem:[#allocation7_spill] sm:$0xff] }
 0x2be   :  { %v6381_v42 = vpop.permute.xlu1 %2673 }
 0x2bf   :  { %v6383_v54 = vpop.permute.xlu0 %2668  ;;  %v6385_v63 = vmin.f32 %v2458_v9, %v2459_v17  ;;  %v3926_v17 = vld [vmem:[%s6739_s4 + $0x238] sm:$0xff] }
 0x2c0   :  { %3282 = vperm.xlu1 %3954, %v3132_v35  }
 0x2c1   :  { %3277 = vperm.xlu0 %3953, %v3131_v6   ;;  %v2687_v61 = vmul.f32 %v7046_v31, %v6385_v63  ;;  %v2686_v41 = vmul.f32 %v7047_v56, %v6385_v63  ;;  %v2689_v44 = vmul.f32 %v7048_v19, %v6385_v63  ;;  %v2688_v0 = vmul.f32 %v7049_v26, %v6385_v63 }
 0x2c2   :  { %v6387_v8 = vpop.permute.xlu1 %2683  ;;  %v2691_v34 = vmul.f32 %v7050_v53, %v6385_v63  ;;  %v2690_v60 = vmul.f32 %v7051_v48, %v6385_v63  ;;  %v2693_v13 = vmul.f32 %v6225_v2, %v6385_v63  ;;  %v2695_v2 = vmul.f32 %v6261_v45, %v6385_v63  ;;  %v3930_v45 = vld [vmem:[%s6739_s4 + $0x258] sm:$0xff]  ;;  %v3932_v48 = vld [vmem:[%s6739_s4 + $0x268] sm:$0xff] }
 0x2c3   :  { %v6389_v28 = vpop.permute.xlu0 %2678  ;;  %v2697_v26 = vmul.f32 %v6285_v24, %v6385_v63 }
 0x2c4   :  { %3292 = vperm.xlu1 %3954, %v3134_v18   ;;  %v3925_v18 = vld [vmem:[%s6739_s4 + $0x230] sm:$0xff] }
 0x2c5   :  { %3287 = vperm.xlu0 %3953, %v3133_v58   ;;  %v2692_v58 = vmul.f32 %v6235_v62, %v6385_v63  ;;  %v3927_v62 = vld [vmem:[%s6739_s4 + $0x240] sm:$0xff] }
 0x2c6   :  { %v2759_v32 = vpop.permute.xlu1 %2758 }
 0x2c7   :  { %v2912_v11 = vadd.f32 %v2759_v32, %v2687_v61  ;;  %v2754_v40 = vpop.permute.xlu0 %2753 }
 0x2c8   :  { %3367 = vperm.xlu1 %3954, %v3920_v29   ;;  %v2911_v50 = vadd.f32 %v2754_v40, %v2686_v41  ;;  %v3928_v41 = vld [vmem:[%s6739_s4 + $0x248] sm:$0xff]  ;;  %v2694_v40 = vmul.f32 %v6269_v22, %v6385_v63  ;;  %v3929_v22 = vld [vmem:[%s6739_s4 + $0x250] sm:$0xff] }
 0x2c9   :  { %3362 = vperm.xlu0 %3953, %v3919_v23  }
 0x2ca   :  { %v2943_v1 = vmax.f32 %v2911_v50, %v2912_v11  ;;  %v2769_v51 = vpop.permute.xlu1 %2768 }
 0x2cb   :  { %v2914_v25 = vadd.f32 %v2769_v51, %v2689_v44  ;;  %v2764_v5 = vpop.permute.xlu0 %2763 }
 0x2cc   :  { %3377 = vperm.xlu1 %3954, %v3922_v21   ;;  %v2913_v52 = vadd.f32 %v2764_v5, %v2688_v0  ;;  %v2944_v9 = vrot.slane %v2943_v1, 4 }
 0x2cd   :  { %3372 = vperm.xlu0 %3953, %v3921_v38  }
 0x2ce   :  { %v2950_v55 = vmax.f32 %v2913_v52, %v2914_v25  ;;  %v2779_v35 = vpop.permute.xlu1 %2778  ;;  %v2945_v32 = vmax.f32 %v2943_v1, %v2944_v9  ;;  %v2696_v25 = vmul.f32 %v6291_v37, %v6385_v63  ;;  %v3931_v37 = vld [vmem:[%s6739_s4 + $0x260] sm:$0xff] }
 0x2cf   :  { %v2916_v6 = vadd.f32 %v2779_v35, %v2691_v34  ;;  %v2774_v57 = vpop.permute.xlu0 %2773  ;;  %v2699_v34 = vmul.f32 %v6301_v27, %v6385_v63 }
 0x2d0   :  { %3387 = vperm.xlu1 %3954, %v3924_v16   ;;  %v2915_v43 = vadd.f32 %v2774_v57, %v2690_v60  ;;  %v2951_v11 = vrot.slane %v2950_v55, 4  ;;  %v2946_v0 = vrot.slane %v2945_v32, 2  ;;  %v2698_v57 = vmul.f32 %v6303_v33, %v6385_v63 }
 0x2d1   :  { %3382 = vperm.xlu0 %3953, %v3923_v49  }
 0x2d2   :  { %v2957_v29 = vmax.f32 %v2915_v43, %v2916_v6  ;;  %v2789_v31 = vpop.permute.xlu1 %2788  ;;  %v2952_v1 = vmax.f32 %v2950_v55, %v2951_v11  ;;  %v2947_v60 = vmax.f32 %v2945_v32, %v2946_v0  ;;  %v2700_v32 = vmul.f32 %v6312_v59, %v6385_v63  ;;  %v3936_v0 = vld [vmem:[%s6739_s4 + $0x288] sm:$0xff] }
 0x2d3   :  { %v2918_v61 = vadd.f32 %v2789_v31, %v2693_v13  ;;  %v2784_v23 = vpop.permute.xlu0 %2783 }
 0x2d4   :  { %3397 = vperm.xlu1 %3954, %v3926_v17   ;;  %v2917_v56 = vadd.f32 %v2784_v23, %v2692_v58  ;;  %v2958_v51 = vrot.slane %v2957_v29, 4  ;;  %v2953_v55 = vrot.slane %v2952_v1, 2  ;;  %v2948_v23 = vrot.slane %v2947_v60, 1 }
 0x2d5   :  { %3392 = vperm.xlu0 %3953, %v3925_v18   ;;  %v2701_v18 = vmul.f32 %v6310_v39, %v6385_v63 }
 0x2d6   :  { %v2964_v50 = vmax.f32 %v2917_v56, %v2918_v61  ;;  %v2799_v21 = vpop.permute.xlu1 %2798  ;;  %v2959_v35 = vmax.f32 %v2957_v29, %v2958_v51  ;;  %v3934_v61 = vld [vmem:[%s6739_s4 + $0x278] sm:$0xff]  ;;  %v2954_v56 = vmax.f32 %v2952_v1, %v2953_v55  ;;  %v6476_v59 = vmax.f32 %v2947_v60, %v2948_v23 }
 0x2d7   :  { %v2920_v19 = vadd.f32 %v2799_v21, %v2695_v2  ;;  %v2794_v44 = vpop.permute.xlu0 %2793  ;;  %v3933_v2 = vld [vmem:[%s6739_s4 + $0x270] sm:$0xff]  ;;  %v2703_v21 = vmul.f32 %v6319_v12, %v6385_v63  ;;  %v3935_v12 = vld [vmem:[%s6739_s4 + $0x280] sm:$0xff] }
 0x2d8   :  { %3407 = vperm.xlu1 %3954, %v3928_v41   ;;  %v2919_v38 = vadd.f32 %v2794_v44, %v2694_v40  ;;  %v2965_v6 = vrot.slane %v2964_v50, 4  ;;  %v2960_v33 = vrot.slane %v2959_v35, 2  ;;  %v2955_v1 = vrot.slane %v2954_v56, 1 }
 0x2d9   :  { %3402 = vperm.xlu0 %3953, %v3927_v62  }
 0x2da   :  { %v2971_v5 = vmax.f32 %v2919_v38, %v2920_v19  ;;  %v2809_v52 = vpop.permute.xlu1 %2808  ;;  %v2966_v41 = vmax.f32 %v2964_v50, %v2965_v6  ;;  %v2961_v51 = vmax.f32 %v2959_v35, %v2960_v33 }
 0x2db   :  { %v2922_v16 = vadd.f32 %v2809_v52, %v2697_v26  ;;  %v2804_v53 = vpop.permute.xlu0 %2803 }
 0x2dc   :  { %3417 = vperm.xlu1 %3954, %v3930_v45   ;;  %v2972_v49 = vrot.slane %v2971_v5, 4  ;;  %v2921_v24 = vadd.f32 %v2804_v53, %v2696_v25 }
 0x2dd   :  { %3412 = vperm.xlu0 %3953, %v3929_v22   ;;  %v2967_v22 = vrot.slane %v2966_v41, 2 }
 0x2de   :  { %v2973_v43 = vmax.f32 %v2971_v5, %v2972_v49  ;;  %v2978_v27 = vmax.f32 %v2921_v24, %v2922_v16  ;;  %v2819_v17 = vpop.permute.xlu1 %2818  ;;  %v2705_v49 = vmul.f32 %v6327_v10, %v6385_v63  ;;  %v2962_v10 = vrot.slane %v2961_v51, 1 }
 0x2df   :  { %v2924_v13 = vadd.f32 %v2819_v17, %v2699_v34  ;;  %v2814_v9 = vpop.permute.xlu0 %2813  ;;  %v2702_v34 = vmul.f32 %v6321_v14, %v6385_v63  ;;  %v2704_v14 = vmul.f32 %v6329_v3, %v6385_v63  ;;  %v2968_v17 = vmax.f32 %v2966_v41, %v2967_v22  ;;  %v3940_v41 = vld [vmem:[%s6739_s4 + $0x2a8] sm:$0xff] }
 0x2e0   :  { %3427 = vperm.xlu1 %3954, %v3932_v48   ;;  %v2974_v58 = vrot.slane %v2973_v43, 2  ;;  %v2979_v31 = vrot.slane %v2978_v27, 4  ;;  %v2923_v29 = vadd.f32 %v2814_v9, %v2698_v57  ;;  %v6494_v57 = vmax.f32 %v2954_v56, %v2955_v1 }
 0x2e1   :  { %3422 = vperm.xlu0 %3953, %v3931_v37   ;;  %v3938_v37 = vld [vmem:[%s6739_s4 + $0x298] sm:$0xff]  ;;  %v2709_v22 = vmul.f32 %v6343_v20, %v6385_v63 }
 0x2e2   :  { %v2975_v39 = vmax.f32 %v2973_v43, %v2974_v58  ;;  %v2980_v11 = vmax.f32 %v2978_v27, %v2979_v31  ;;  %v2985_v62 = vmax.f32 %v2923_v29, %v2924_v13  ;;  %v2829_v40 = vpop.permute.xlu1 %2828  ;;  %v3937_v27 = vld [vmem:[%s6739_s4 + $0x290] sm:$0xff] }
 0x2e3   :  { %v2926_v19 = vadd.f32 %v2829_v40, %v2701_v18  ;;  %v2824_v44 = vpop.permute.xlu0 %2823  ;;  %v2969_v40 = vrot.slane %v2968_v17, 1 }
 0x2e4   :  { %3437 = vperm.xlu1 %3954, %v3934_v61   ;;  %v2976_v38 = vrot.slane %v2975_v39, 1  ;;  %v2981_v45 = vrot.slane %v2980_v11, 2  ;;  %v2986_v50 = vrot.slane %v2985_v62, 4  ;;  %v2925_v26 = vadd.f32 %v2824_v44, %v2700_v32 }
 0x2e5   :  { %3432 = vperm.xlu0 %3953, %v3933_v2   ;;  %v2707_v2 = vmul.f32 %v6335_v7, %v6385_v63  ;;  %v2706_v32 = vmul.f32 %v6337_v46, %v6385_v63 }
 0x2e6   :  { %v6481_v25 = vmax.f32 %v2975_v39, %v2976_v38  ;;  %v2982_v5 = vmax.f32 %v2980_v11, %v2981_v45  ;;  %v2987_v52 = vmax.f32 %v2985_v62, %v2986_v50  ;;  %v2992_v16 = vmax.f32 %v2925_v26, %v2926_v19  ;;  %v2839_v53 = vpop.permute.xlu1 %2838  ;;  %v3939_v62 = vld [vmem:[%s6739_s4 + $0x2a0] sm:$0xff] }
 0x2e7   :  { %v2928_v24 = vadd.f32 %v2839_v53, %v2703_v21  ;;  %v2834_v48 = vpop.permute.xlu0 %2833  ;;  %v6510_v39 = vmax.f32 %v2961_v51, %v2962_v10  ;;  %v3942_v51 = vld [vmem:[%s6739_s4 + $0x2b8] sm:$0xff]  ;;  %v2711_v10 = vmul.f32 %v6357_v47, %v6385_v63 }
 0x2e8   :  { %3447 = vperm.xlu1 %3954, %v3936_v0   ;;  %v3055_v60 = vmin.f32 %v6476_v59, %v6481_v25  ;;  %v2983_v55 = vrot.slane %v2982_v5, 1  ;;  %v2988_v35 = vrot.slane %v2987_v52, 2  ;;  %v2993_v6 = vrot.slane %v2992_v16, 4 }
 0x2e9   :  { %3442 = vperm.xlu0 %3953, %v3935_v12   ;;  %v2927_v43 = vadd.f32 %v2834_v48, %v2702_v34  ;;  %v2708_v12 = vmul.f32 %v6345_v4, %v6385_v63 }
 0x2ea   :  { %v6499_v13 = vmax.f32 %v2982_v5, %v2983_v55  ;;  %v2989_v9 = vmax.f32 %v2987_v52, %v2988_v35  ;;  %v2994_v18 = vmax.f32 %v2992_v16, %v2993_v6  ;;  %v2849_v58 = vpop.permute.xlu1 %2848  ;;  %v3941_v52 = vld [vmem:[%s6739_s4 + $0x2b0] sm:$0xff]  ;;  %v6529_v16 = vmax.f32 %v2968_v17, %v2969_v40 }
 0x2eb   :  { %v2999_v31 = vmax.f32 %v2927_v43, %v2928_v24  ;;  %v2930_v29 = vadd.f32 %v2849_v58, %v2705_v49  ;;  %v2844_v61 = vpop.permute.xlu0 %2843  ;;  %v2710_v17 = vmul.f32 %v6359_v15, %v6385_v63  ;;  %v2713_v15 = vmul.f32 %v6371_v36, %v6385_v63 }
 0x2ec   :  { %3457 = vperm.xlu1 %3954, %v3938_v37   ;;  %v3056_v3 = vmin.f32 %v6494_v57, %v6499_v13  ;;  %v2990_v23 = vrot.slane %v2989_v9, 1  ;;  %v2995_v56 = vrot.slane %v2994_v18, 2  ;;  %v2929_v33 = vadd.f32 %v2844_v61, %v2704_v14  ;;  %v3944_v14 = vld [vmem:[%s6739_s4 + $0x2c8] sm:$0xff] }
 0x2ed   :  { %3452 = vperm.xlu0 %3953, %v3937_v27   ;;  %v3000_v11 = vrot.slane %v2999_v31, 4  ;;  %v3943_v27 = vld [vmem:[%s6739_s4 + $0x2c0] sm:$0xff]  ;;  %v2714_v57 = vmul.f32 %v6383_v54, %v6385_v63  ;;  %v3950_v54 = vld [vmem:[%s6739_s4 + $0x2f8] sm:$0xff] }
 0x2ee   :  { %v6515_v21 = vmax.f32 %v2989_v9, %v2990_v23  ;;  %v2996_v19 = vmax.f32 %v2994_v18, %v2995_v56  ;;  %v3006_v44 = vmax.f32 %v2929_v33, %v2930_v29  ;;  %v2859_v38 = vpop.permute.xlu1 %2858 }
 0x2ef   :  { %v3001_v45 = vmax.f32 %v2999_v31, %v3000_v11  ;;  %v2932_v50 = vadd.f32 %v2859_v38, %v2707_v2  ;;  %v2854_v26 = vpop.permute.xlu0 %2853  ;;  %v3946_v2 = vld [vmem:[%s6739_s4 + $0x2d8] sm:$0xff]  ;;  %v3945_v11 = vld [vmem:[%s6739_s4 + $0x2d0] sm:$0xff] }
 0x2f0   :  { %3467 = vperm.xlu1 %3954, %v3940_v41   ;;  %v3057_v7 = vmin.f32 %v6510_v39, %v6515_v21  ;;  %v2997_v46 = vrot.slane %v2996_v19, 1  ;;  %v3007_v0 = vrot.slane %v3006_v44, 4  ;;  %v2931_v1 = vadd.f32 %v2854_v26, %v2706_v32 }
 0x2f1   :  { %3462 = vperm.xlu0 %3953, %v3939_v62   ;;  %v3002_v5 = vrot.slane %v3001_v45, 2  ;;  %v2716_v39 = vmul.f32 %v6389_v28, %v6385_v63 }
 0x2f2   :  { %v6531_v53 = vmax.f32 %v2996_v19, %v2997_v46  ;;  %v3008_v34 = vmax.f32 %v3006_v44, %v3007_v0  ;;  %v3013_v49 = vmax.f32 %v2931_v1, %v2932_v50  ;;  %v2869_v24 = vpop.permute.xlu1 %2868  ;;  %v3948_v46 = vld [vmem:[%s6739_s4 + $0x2e8] sm:$0xff]  ;;  %v2715_v0 = vmul.f32 %v6381_v42, %v6385_v63  ;;  %v3947_v1 = vld [vmem:[%s6739_s4 + $0x2e0] sm:$0xff] }
 0x2f3   :  { %v3003_v48 = vmax.f32 %v3001_v45, %v3002_v5  ;;  %v2934_v55 = vadd.f32 %v2869_v24, %v2709_v22  ;;  %v2864_v35 = vpop.permute.xlu0 %2863  ;;  %v2712_v45 = vmul.f32 %v6373_v30, %v6385_v63 }
 0x2f4   :  { %3477 = vperm.xlu1 %3954, %v3942_v51   ;;  %v3058_v20 = vmin.f32 %v6529_v16, %v6531_v53  ;;  %v3009_v4 = vrot.slane %v3008_v34, 2  ;;  %v3014_v6 = vrot.slane %v3013_v49, 4  ;;  %v2933_v37 = vadd.f32 %v2864_v35, %v2708_v12  ;;  %v3949_v35 = vld [vmem:[%s6739_s4 + $0x2f0] sm:$0xff]  ;;  %s3981_s4 = smov [#allocation2]  }
 0x2f5   :  { %3472 = vperm.xlu0 %3953, %v3941_v52   ;;  %v3004_v43 = vrot.slane %v3003_v48, 1  ;;  %s3686_s27 = sshll.u32 %s3981_s4, 4  ;;  %s3687_s27 = int_to_ptr.vmem [resolvable:$true] %s3686_s27 }
 0x2f6   :  { %v3010_v9 = vmax.f32 %v3008_v34, %v3009_v4  ;;  %v3015_v18 = vmax.f32 %v3013_v49, %v3014_v6  ;;  %v3020_v58 = vmax.f32 %v2933_v37, %v2934_v55  ;;  %v2879_v31 = vpop.permute.xlu1 %2878  ;;  %s3956_s28 = scalar_lea.vmem %s3687_s27, 32  ;;  %p3961_p1 = scmp.lt.s32.totalorder %s3687_s27, %s3687_s27 }
 0x2f7   :  { %v3005_v29 = vmax.f32 %v3003_v48, %v3004_v43  ;;  %v2936_v61 = vadd.f32 %v2879_v31, %v2711_v10  ;;  %v2874_v23 = vpop.permute.xlu0 %2873  ;;  %v2717_v48 = vmul.f32 %v6387_v8, %v6385_v63  ;;  %p3957_p0 = scmp.ne.s32.totalorder %s3687_s27, %s3956_s28  ;;  %p3962_p2 = scmp.lt.s32.totalorder %s3956_s28, %s3956_s28 }
 0x2f8   :  { %3487 = vperm.xlu1 %3954, %v3944_v14   ;;  %v3011_v56 = vrot.slane %v3010_v9, 1  ;;  %v3016_v33 = vrot.slane %v3015_v18, 2  ;;  %v3021_v41 = vrot.slane %v3020_v58, 4  ;;  %v2935_v47 = vadd.f32 %v2874_v23, %v2710_v17 }
 0x2f9   :  { %3482 = vperm.xlu0 %3953, %v3943_v27   ;;  %v6553_v32 = vmin.f32 %v3055_v60, %v3005_v29  ;;  %p3963_p3 = por %p3962_p2, %p3961_p1 }
 0x2fa   :  { %v3012_v62 = vmax.f32 %v3010_v9, %v3011_v56  ;;  %v3017_v40 = vmax.f32 %v3015_v18, %v3016_v33  ;;  %v3022_v19 = vmax.f32 %v3020_v58, %v3021_v41  ;;  %v3027_v44 = vmax.f32 %v2935_v47, %v2936_v61  ;;  %v2889_v38 = vpop.permute.xlu1 %2888 }
 0x2fb   :  { %v2938_v50 = vadd.f32 %v2889_v38, %v2713_v15  ;;  %v2884_v26 = vpop.permute.xlu0 %2883  ;;  %p3964_p4 = pnand %p3963_p3, %p3957_p0 }
 0x2fc   :  { %3497 = vperm.xlu1 %3954, %v3946_v2   ;;  %v6563_v36 = vmin.f32 %v3056_v3, %v3012_v62  ;;  %v3018_v59 = vrot.slane %v3017_v40, 1  ;;  %v3023_v25 = vrot.slane %v3022_v19, 2  ;;  %v3028_v60 = vrot.slane %v3027_v44, 4 }
 0x2fd   :  { %3492 = vperm.xlu0 %3953, %v3945_v11   ;;  %v2937_v30 = vadd.f32 %v2884_v26, %v2712_v45 }
 0x2fe   :  { %v3019_v13 = vmax.f32 %v3017_v40, %v3018_v59  ;;  %v3024_v3 = vmax.f32 %v3022_v19, %v3023_v25  ;;  %v3029_v51 = vmax.f32 %v3027_v44, %v3028_v60  ;;  %v2899_v22 = vpop.permute.xlu1 %2898 }
 0x2ff   :  { %v3034_v12 = vmax.f32 %v2937_v30, %v2938_v50  ;;  %v2940_v5 = vadd.f32 %v2899_v22, %v2715_v0  ;;  %v2894_v52 = vpop.permute.xlu0 %2893 }
 0x300   :  { %3507 = vperm.xlu1 %3954, %v3948_v46   ;;  %v3061_v42 = vmin.f32 %v3057_v7, %v3019_v13  ;;  %v3025_v34 = vrot.slane %v3024_v3, 1  ;;  %v3030_v49 = vrot.slane %v3029_v51, 2  ;;  %v2939_v24 = vadd.f32 %v2894_v52, %v2714_v57 }
 0x301   :  { %3502 = vperm.xlu0 %3953, %v3947_v1   ;;  %v3035_v55 = vrot.slane %v3034_v12, 4 }
 0x302   :  { %v3026_v21 = vmax.f32 %v3024_v3, %v3025_v34  ;;  %v3031_v7 = vmax.f32 %v3029_v51, %v3030_v49  ;;  %v3041_v4 = vmax.f32 %v2939_v24, %v2940_v5  ;;  %v2909_v6 = vpop.permute.xlu1 %2908 }
 0x303   :  { %v3036_v37 = vmax.f32 %v3034_v12, %v3035_v55  ;;  %v2942_v14 = vadd.f32 %v2909_v6, %v2717_v48  ;;  %v2904_v10 = vpop.permute.xlu0 %2903 }
 0x304   :  { %3517 = vperm.xlu1 %3954, %v3950_v54   ;;  %v3062_v8 = vmin.f32 %v3058_v20, %v3026_v21  ;;  %v3032_v43 = vrot.slane %v3031_v7, 1  ;;  %v3042_v27 = vrot.slane %v3041_v4, 4  ;;  %v2941_v17 = vadd.f32 %v2904_v10, %v2716_v39 }
 0x305   :  { %3512 = vperm.xlu0 %3953, %v3949_v35   ;;  %v3037_v9 = vrot.slane %v3036_v37, 2 }
 0x306   :  { %v3033_v18 = vmax.f32 %v3031_v7, %v3032_v43  ;;  %v3043_v58 = vmax.f32 %v3041_v4, %v3042_v27  ;;  %v3048_v63 = vmax.f32 %v2941_v17, %v2942_v14  ;;  %v3143_v28 = vpop.permute.xlu1 %3142 }
 0x307   :  { %v3038_v31 = vmax.f32 %v3036_v37, %v3037_v9  ;;  %v3138_v29 = vpop.permute.xlu0 %3137 }
 0x308   :  { %v3063_v61 = vmin.f32 %v6553_v32, %v3033_v18  ;;  %v3044_v23 = vrot.slane %v3043_v58, 2  ;;  %v3049_v56 = vrot.slane %v3048_v63, 4 }
 0x309   :  { %v3039_v33 = vrot.slane %v3038_v31, 1 }
 0x30a   :  { %v3045_v41 = vmax.f32 %v3043_v58, %v3044_v23  ;;  %v3050_v47 = vmax.f32 %v3048_v63, %v3049_v56  ;;  %v3153_v16 = vpop.permute.xlu1 %3152 }
 0x30b   :  { %v3040_v53 = vmax.f32 %v3038_v31, %v3039_v33  ;;  %v3148_v20 = vpop.permute.xlu0 %3147 }
 0x30c   :  { %v3046_v2 = vrot.slane %v3045_v41, 1  ;;  %v3051_v15 = vrot.slane %v3050_v47, 2 }
 0x30d   :  { %v3064_v11 = vmin.f32 %v6563_v36, %v3040_v53 }
 0x30e   :  { %v3047_v62 = vmax.f32 %v3045_v41, %v3046_v2  ;;  %v3052_v40 = vmax.f32 %v3050_v47, %v3051_v15  ;;  %v3163_v19 = vpop.permute.xlu1 %3162 }
 0x30f   :  { %v3067_v44 = vmin.f32 %v3063_v61, %v3064_v11  ;;  %v3158_v38 = vpop.permute.xlu0 %3157 }
 0x310   :  { %v3065_v45 = vmin.f32 %v3061_v42, %v3047_v62  ;;  %v3053_v50 = vrot.slane %v3052_v40, 1 }
 0x312   :  { %v3054_v32 = vmax.f32 %v3052_v40, %v3053_v50  ;;  %v3173_v26 = vpop.permute.xlu1 %3172 }
 0x313   :  { %v3168_v59 = vpop.permute.xlu0 %3167 }
 0x314   :  { %v3066_v25 = vmin.f32 %v3062_v8, %v3054_v32 }
 0x316   :  { %v3068_v60 = vmin.f32 %v3065_v45, %v3066_v25  ;;  %v3183_v46 = vpop.permute.xlu1 %3182 }
 0x317   :  { %v3178_v0 = vpop.permute.xlu0 %3177 }
 0x318   :  { %v6593_v30 = vmin.f32 %v3067_v44, %v3068_v60 }
 0x31a   :  { %v3296_v1 = vmul.f32 %v3143_v28, %v6593_v30  ;;  %v3295_v36 = vmul.f32 %v3138_v29, %v6593_v30  ;;  %v3298_v57 = vmul.f32 %v3153_v16, %v6593_v30  ;;  %v3297_v13 = vmul.f32 %v3148_v20, %v6593_v30  ;;  %v3193_v3 = vpop.permute.xlu1 %3192 }
 0x31b   :  { %v3300_v51 = vmul.f32 %v3163_v19, %v6593_v30  ;;  %v3299_v22 = vmul.f32 %v3158_v38, %v6593_v30  ;;  %v3302_v12 = vmul.f32 %v3173_v26, %v6593_v30  ;;  %v6603_v5 = vmul.f32 %v3168_v59, %v6593_v30  ;;  %v3188_v52 = vpop.permute.xlu0 %3187 }
 0x31c   :  { %v6606_v42 = vmul.f32 %v3183_v46, %v6593_v30  ;;  %v6609_v34 = vmul.f32 %v3178_v0, %v6593_v30  ;;  %v6612_v49 = vmul.f32 %v3193_v3, %v6593_v30  ;;  %v6615_v24 = vmul.f32 %v3188_v52, %v6593_v30 }
 0x31e   :  { %v3203_v54 = vpop.permute.xlu1 %3202 }
 0x31f   :  { %v6618_v48 = vmul.f32 %v3203_v54, %v6593_v30  ;;  %v3198_v55 = vpop.permute.xlu0 %3197 }
 0x320   :  { %v6621_v35 = vmul.f32 %v3198_v55, %v6593_v30 }
 0x322   :  { %v3213_v39 = vpop.permute.xlu1 %3212 }
 0x323   :  { %v6624_v21 = vmul.f32 %v3213_v39, %v6593_v30  ;;  %v3208_v7 = vpop.permute.xlu0 %3207 }
 0x324   :  { %v6627_v4 = vmul.f32 %v3208_v7, %v6593_v30 }
 0x326   :  { %v3223_v6 = vpop.permute.xlu1 %3222 }
 0x327   :  { %v6630_v37 = vmul.f32 %v3223_v6, %v6593_v30  ;;  %v3218_v14 = vpop.permute.xlu0 %3217 }
 0x328   :  { %v6633_v10 = vmul.f32 %v3218_v14, %v6593_v30 }
 0x32a   :  { %v3233_v8 = vpop.permute.xlu1 %3232 }
 0x32b   :  { %v6636_v43 = vmul.f32 %v3233_v8, %v6593_v30  ;;  %v3228_v27 = vpop.permute.xlu0 %3227 }
 0x32c   :  { %v6639_v17 = vmul.f32 %v3228_v27, %v6593_v30 }
 0x32e   :  { %v3243_v9 = vpop.permute.xlu1 %3242 }
 0x32f   :  { %v6642_v18 = vmul.f32 %v3243_v9, %v6593_v30 }
 0x330   :  { %v3238_v58 = vpop.permute.xlu0 %3237 }
 0x331   :  { %v6645_v63 = vmul.f32 %v3238_v58, %v6593_v30 }
 0x333   :  { %v3253_v28 = vpop.permute.xlu1 %3252 }
 0x334   :  { %v6648_v31 = vmul.f32 %v3253_v28, %v6593_v30  ;;  %v3248_v29 = vpop.permute.xlu0 %3247 }
 0x335   :  { %v6651_v61 = vmul.f32 %v3248_v29, %v6593_v30 }
 0x337   :  { %v3263_v23 = vpop.permute.xlu1 %3262 }
 0x338   :  { %v6654_v56 = vmul.f32 %v3263_v23, %v6593_v30  ;;  %v3258_v33 = vpop.permute.xlu0 %3257 }
 0x339   :  { %v6657_v41 = vmul.f32 %v3258_v33, %v6593_v30 }
 0x33b   :  { %v3273_v47 = vpop.permute.xlu1 %3272 }
 0x33c   :  { %v6660_v16 = vmul.f32 %v3273_v47, %v6593_v30  ;;  %v3268_v53 = vpop.permute.xlu0 %3267 }
 0x33d   :  { %v6663_v20 = vmul.f32 %v3268_v53, %v6593_v30 }
 0x33f   :  { %v3283_v2 = vpop.permute.xlu1 %3282 }
 0x340   :  { %v6666_v15 = vmul.f32 %v3283_v2, %v6593_v30  ;;  %v3278_v11 = vpop.permute.xlu0 %3277 }
 0x341   :  { %v6669_v62 = vmul.f32 %v3278_v11, %v6593_v30 }
 0x343   :  { %v6671_v40 = vpop.permute.xlu1 %3292 }
 0x344   :  { %v6673_v19 = vpop.permute.xlu0 %3287 }
 0x347   :  { %v3368_v44 = vpop.permute.xlu1 %3367 }
 0x348   :  { %v3521_v38 = vadd.f32 %v3368_v44, %v3296_v1  ;;  %v3363_v45 = vpop.permute.xlu0 %3362 }
 0x349   :  { %v3520_v50 = vadd.f32 %v3363_v45, %v3295_v36 }
 0x34b   :  { %v3552_v32 = vmax.f32 %v3520_v50, %v3521_v38  ;;  %v3378_v26 = vpop.permute.xlu1 %3377 }
 0x34c   :  { %v3523_v59 = vadd.f32 %v3378_v26, %v3298_v57  ;;  %v3373_v25 = vpop.permute.xlu0 %3372 }
 0x34d   :  { %v3522_v60 = vadd.f32 %v3373_v25, %v3297_v13  ;;  %v3553_v55 = vrot.slane %v3552_v32, 4 }
 0x34f   :  { %v3559_v46 = vmax.f32 %v3522_v60, %v3523_v59  ;;  %v3388_v0 = vpop.permute.xlu1 %3387  ;;  %v3554_v1 = vmax.f32 %v3552_v32, %v3553_v55 }
 0x350   :  { %v3525_v3 = vadd.f32 %v3388_v0, %v3300_v51  ;;  %v3383_v52 = vpop.permute.xlu0 %3382 }
 0x351   :  { %v3524_v54 = vadd.f32 %v3383_v52, %v3299_v22  ;;  %v3560_v27 = vrot.slane %v3559_v46, 4  ;;  %v3555_v28 = vrot.slane %v3554_v1, 2 }
 0x353   :  { %v3566_v39 = vmax.f32 %v3524_v54, %v3525_v3  ;;  %v3398_v7 = vpop.permute.xlu1 %3397  ;;  %v3561_v51 = vmax.f32 %v3559_v46, %v3560_v27  ;;  %v3556_v53 = vmax.f32 %v3554_v1, %v3555_v28 }
 0x354   :  { %v3527_v6 = vadd.f32 %v3398_v7, %v3302_v12  ;;  %v3393_v14 = vpop.permute.xlu0 %3392 }
 0x355   :  { %v3526_v8 = vadd.f32 %v3393_v14, %v6603_v5  ;;  %v3567_v29 = vrot.slane %v3566_v39, 4  ;;  %v3562_v2 = vrot.slane %v3561_v51, 2  ;;  %v3557_v25 = vrot.slane %v3556_v53, 1 }
 0x357   :  { %v3573_v36 = vmax.f32 %v3526_v8, %v3527_v6  ;;  %v3408_v9 = vpop.permute.xlu1 %3407  ;;  %v3568_v11 = vmax.f32 %v3566_v39, %v3567_v29  ;;  %v6684_v14 = vmax.f32 %v3556_v53, %v3557_v25 }
 0x358   :  { %v3529_v57 = vadd.f32 %v3408_v9, %v6606_v42  ;;  %v3403_v58 = vpop.permute.xlu0 %3402 }
 0x359   :  { %v3528_v13 = vadd.f32 %v3403_v58, %v6609_v34  ;;  %v3574_v44 = vrot.slane %v3573_v36, 4  ;;  %v3569_v60 = vrot.slane %v3568_v11, 2 }
 0x35b   :  { %v3580_v22 = vmax.f32 %v3528_v13, %v3529_v57  ;;  %v3418_v23 = vpop.permute.xlu1 %3417  ;;  %v3575_v46 = vmax.f32 %v3573_v36, %v3574_v44 }
 0x35c   :  { %v3531_v33 = vadd.f32 %v3418_v23, %v6612_v49  ;;  %v3413_v12 = vpop.permute.xlu0 %3412  ;;  %v3563_v49 = vmax.f32 %v3561_v51, %v3562_v2 }
 0x35d   :  { %v3581_v47 = vrot.slane %v3580_v22, 4  ;;  %v3530_v5 = vadd.f32 %v3413_v12, %v6615_v24  ;;  %v3576_v1 = vrot.slane %v3575_v46, 2 }
 0x35e   :  { %v3564_v8 = vrot.slane %v3563_v49, 1 }
 0x35f   :  { %v3582_v38 = vmax.f32 %v3580_v22, %v3581_v47  ;;  %v3587_v42 = vmax.f32 %v3530_v5, %v3531_v33  ;;  %v3428_v45 = vpop.permute.xlu1 %3427  ;;  %v3577_v12 = vmax.f32 %v3575_v46, %v3576_v1 }
 0x360   :  { %v3533_v34 = vadd.f32 %v3428_v45, %v6618_v48  ;;  %v3423_v50 = vpop.permute.xlu0 %3422  ;;  %v6691_v22 = vmax.f32 %v3563_v49, %v3564_v8 }
 0x361   :  { %v3583_v32 = vrot.slane %v3582_v38, 2  ;;  %v3588_v26 = vrot.slane %v3587_v42, 4  ;;  %v3532_v59 = vadd.f32 %v3423_v50, %v6621_v35  ;;  %v3570_v35 = vmax.f32 %v3568_v11, %v3569_v60 }
 0x363   :  { %v3584_v0 = vmax.f32 %v3582_v38, %v3583_v32  ;;  %v3589_v24 = vmax.f32 %v3587_v42, %v3588_v26  ;;  %v3594_v3 = vmax.f32 %v3532_v59, %v3533_v34  ;;  %v3438_v52 = vpop.permute.xlu1 %3437  ;;  %v3571_v23 = vrot.slane %v3570_v35, 1 }
 0x364   :  { %v3535_v54 = vadd.f32 %v3438_v52, %v6624_v21  ;;  %v3433_v55 = vpop.permute.xlu0 %3432  ;;  %v3578_v32 = vrot.slane %v3577_v12, 1 }
 0x365   :  { %v3585_v39 = vrot.slane %v3584_v0, 1  ;;  %v3590_v7 = vrot.slane %v3589_v24, 2  ;;  %v3595_v6 = vrot.slane %v3594_v3, 4  ;;  %v3534_v48 = vadd.f32 %v3433_v55, %v6627_v4 }
 0x366   :  { %v6700_v50 = vmax.f32 %v3570_v35, %v3571_v23 }
 0x367   :  { %v6686_v27 = vmax.f32 %v3584_v0, %v3585_v39  ;;  %v3591_v36 = vmax.f32 %v3589_v24, %v3590_v7  ;;  %v3596_v9 = vmax.f32 %v3594_v3, %v3595_v6  ;;  %v3601_v57 = vmax.f32 %v3534_v48, %v3535_v54  ;;  %v3448_v58 = vpop.permute.xlu1 %3447 }
 0x368   :  { %v3537_v13 = vadd.f32 %v3448_v58, %v6630_v37  ;;  %v3443_v21 = vpop.permute.xlu0 %3442  ;;  %v6708_v54 = vmax.f32 %v3577_v12, %v3578_v32 }
 0x369   :  { %v3664_v28 = vmin.f32 %v6684_v14, %v6686_v27  ;;  %v3592_v51 = vrot.slane %v3591_v36, 1  ;;  %v3597_v29 = vrot.slane %v3596_v9, 2  ;;  %v3602_v4 = vrot.slane %v3601_v57, 4 }
 0x36a   :  { %v3536_v33 = vadd.f32 %v3443_v21, %v6633_v10 }
 0x36b   :  { %v6694_v47 = vmax.f32 %v3591_v36, %v3592_v51  ;;  %v3598_v5 = vmax.f32 %v3596_v9, %v3597_v29  ;;  %v3603_v53 = vmax.f32 %v3601_v57, %v3602_v4  ;;  %v3458_v2 = vpop.permute.xlu1 %3457 }
 0x36c   :  { %v3608_v11 = vmax.f32 %v3536_v33, %v3537_v13  ;;  %v3539_v37 = vadd.f32 %v3458_v2, %v6636_v43  ;;  %v3453_v44 = vpop.permute.xlu0 %3452 }
 0x36d   :  { %v3665_v38 = vmin.f32 %v6691_v22, %v6694_v47  ;;  %v3599_v42 = vrot.slane %v3598_v5, 1  ;;  %v3604_v45 = vrot.slane %v3603_v53, 2  ;;  %v3538_v34 = vadd.f32 %v3453_v44, %v6639_v17 }
 0x36e   :  { %v3609_v10 = vrot.slane %v3608_v11, 4 }
 0x36f   :  { %v6702_v26 = vmax.f32 %v3598_v5, %v3599_v42  ;;  %v3605_v59 = vmax.f32 %v3603_v53, %v3604_v45  ;;  %v3615_v25 = vmax.f32 %v3538_v34, %v3539_v37  ;;  %v3468_v49 = vpop.permute.xlu1 %3467 }
 0x370   :  { %v3610_v60 = vmax.f32 %v3608_v11, %v3609_v10  ;;  %v3541_v43 = vadd.f32 %v3468_v49, %v6642_v18  ;;  %v3463_v46 = vpop.permute.xlu0 %3462  ;;  %v3326_v49 = vmul.f32 %v6671_v40, %v6593_v30 }
 0x371   :  { %v3666_v0 = vmin.f32 %v6700_v50, %v6702_v26  ;;  %v3606_v24 = vrot.slane %v3605_v59, 1  ;;  %v3616_v3 = vrot.slane %v3615_v25, 4  ;;  %v3540_v17 = vadd.f32 %v3463_v46, %v6645_v63 }
 0x372   :  { %v3611_v52 = vrot.slane %v3610_v60, 2 }
 0x373   :  { %v3607_v55 = vmax.f32 %v3605_v59, %v3606_v24  ;;  %v3617_v39 = vmax.f32 %v3615_v25, %v3616_v3  ;;  %v3622_v7 = vmax.f32 %v3540_v17, %v3541_v43  ;;  %v3478_v6 = vpop.permute.xlu1 %3477 }
 0x374   :  { %v3612_v48 = vmax.f32 %v3610_v60, %v3611_v52  ;;  %v3543_v14 = vadd.f32 %v3478_v6, %v6648_v31  ;;  %v3473_v8 = vpop.permute.xlu0 %3472 }
 0x375   :  { %v3667_v18 = vmin.f32 %v6708_v54, %v3607_v55  ;;  %v3618_v35 = vrot.slane %v3617_v39, 2  ;;  %v3623_v1 = vrot.slane %v3622_v7, 4  ;;  %v3542_v27 = vadd.f32 %v3473_v8, %v6651_v61 }
 0x376   :  { %v3613_v36 = vrot.slane %v3612_v48, 1 }
 0x377   :  { %v3619_v9 = vmax.f32 %v3617_v39, %v3618_v35  ;;  %v3624_v63 = vmax.f32 %v3622_v7, %v3623_v1  ;;  %v3629_v57 = vmax.f32 %v3542_v27, %v3543_v14  ;;  %v3488_v58 = vpop.permute.xlu1 %3487 }
 0x378   :  { %v3614_v13 = vmax.f32 %v3612_v48, %v3613_v36  ;;  %v3545_v21 = vadd.f32 %v3488_v58, %v6654_v56  ;;  %v3483_v51 = vpop.permute.xlu0 %3482 }
 0x379   :  { %v3620_v29 = vrot.slane %v3619_v9, 1  ;;  %v3625_v4 = vrot.slane %v3624_v63, 2  ;;  %v3630_v22 = vrot.slane %v3629_v57, 4  ;;  %v3544_v31 = vadd.f32 %v3483_v51, %v6657_v41 }
 0x37a   :  { %v3668_v23 = vmin.f32 %v3664_v28, %v3614_v13 }
 0x37b   :  { %v3621_v33 = vmax.f32 %v3619_v9, %v3620_v29  ;;  %v3626_v12 = vmax.f32 %v3624_v63, %v3625_v4  ;;  %v3631_v47 = vmax.f32 %v3629_v57, %v3630_v22  ;;  %v3636_v5 = vmax.f32 %v3544_v31, %v3545_v21  ;;  %v3498_v61 = vpop.permute.xlu1 %3497 }
 0x37c   :  { %v3547_v53 = vadd.f32 %v3498_v61, %v6660_v16  ;;  %v3493_v2 = vpop.permute.xlu0 %3492 }
 0x37d   :  { %v3627_v11 = vrot.slane %v3626_v12, 1  ;;  %v3632_v37 = vrot.slane %v3631_v47, 2  ;;  %v3637_v44 = vrot.slane %v3636_v5, 4  ;;  %v3546_v56 = vadd.f32 %v3493_v2, %v6663_v20 }
 0x37e   :  { %v3669_v42 = vmin.f32 %v3665_v38, %v3621_v33  ;;  %v3325_v20 = vmul.f32 %v6673_v19, %v6593_v30 }
 0x37f   :  { %v3628_v45 = vmax.f32 %v3626_v12, %v3627_v11  ;;  %v3633_v34 = vmax.f32 %v3631_v47, %v3632_v37  ;;  %v3638_v50 = vmax.f32 %v3636_v5, %v3637_v44  ;;  %v3643_v10 = vmax.f32 %v3546_v56, %v3547_v53  ;;  %v3508_v41 = vpop.permute.xlu1 %3507 }
 0x380   :  { %v3549_v28 = vadd.f32 %v3508_v41, %v6666_v15  ;;  %v3503_v32 = vpop.permute.xlu0 %3502 }
 0x381   :  { %v3634_v26 = vrot.slane %v3633_v34, 1  ;;  %v3639_v59 = vrot.slane %v3638_v50, 2  ;;  %v3644_v25 = vrot.slane %v3643_v10, 4  ;;  %v3548_v16 = vadd.f32 %v3503_v32, %v6669_v62 }
 0x382   :  { %v3670_v38 = vmin.f32 %v3666_v0, %v3628_v45 }
 0x383   :  { %v3635_v60 = vmax.f32 %v3633_v34, %v3634_v26  ;;  %v3640_v43 = vmax.f32 %v3638_v50, %v3639_v59  ;;  %v3645_v46 = vmax.f32 %v3643_v10, %v3644_v25  ;;  %v3650_v24 = vmax.f32 %v3548_v16, %v3549_v28  ;;  %v3518_v3 = vpop.permute.xlu1 %3517 }
 0x384   :  { %v3551_v17 = vadd.f32 %v3518_v3, %v3326_v49  ;;  %v3513_v15 = vpop.permute.xlu0 %3512 }
 0x385   :  { %v3641_v52 = vrot.slane %v3640_v43, 1  ;;  %v3646_v54 = vrot.slane %v3645_v46, 2  ;;  %v3651_v55 = vrot.slane %v3650_v24, 4  ;;  %v3550_v39 = vadd.f32 %v3513_v15, %v3325_v20 }
 0x386   :  { %v3671_v7 = vmin.f32 %v3667_v18, %v3635_v60 }
 0x387   :  { %v3642_v62 = vmax.f32 %v3640_v43, %v3641_v52  ;;  %v3647_v6 = vmax.f32 %v3645_v46, %v3646_v54  ;;  %v3652_v48 = vmax.f32 %v3650_v24, %v3651_v55  ;;  %v3657_v40 = vmax.f32 %v3550_v39, %v3551_v17 }
 0x389   :  { %v3648_v14 = vrot.slane %v3647_v6, 1  ;;  %v3653_v8 = vrot.slane %v3652_v48, 2  ;;  %v3658_v30 = vrot.slane %v3657_v40, 4  ;;  %v3672_v19 = vmin.f32 %v3668_v23, %v3642_v62 }
 0x38b   :  { %v3649_v0 = vmax.f32 %v3647_v6, %v3648_v14  ;;  %v3654_v35 = vmax.f32 %v3652_v48, %v3653_v8  ;;  %v3659_v1 = vmax.f32 %v3657_v40, %v3658_v30 }
 0x38d   :  { %v3655_v27 = vrot.slane %v3654_v35, 1  ;;  %v3660_v36 = vrot.slane %v3659_v1, 2  ;;  %v3673_v9 = vmin.f32 %v3669_v42, %v3649_v0 }
 0x38f   :  { %v3656_v63 = vmax.f32 %v3654_v35, %v3655_v27  ;;  %v3661_v57 = vmax.f32 %v3659_v1, %v3660_v36  ;;  %v3676_v58 = vmin.f32 %v3672_v19, %v3673_v9 }
 0x391   :  { %v3662_v13 = vrot.slane %v3661_v57, 1  ;;  %v3674_v21 = vmin.f32 %v3670_v38, %v3656_v63 }
 0x393   :  { %v3663_v18 = vmax.f32 %v3661_v57, %v3662_v13 }
 0x395   :  { %v3675_v51 = vmin.f32 %v3671_v7, %v3663_v18 }
 0x397   :  { %v3677_v29 = vmin.f32 %v3674_v21, %v3675_v51 }
 0x399   :  { %v3678_v4 = vmin.f32 %v3676_v58, %v3677_v29 }
 0x39b   :  { %3679 = vst [vmem:[#allocation2 + $0x1] sm:$0x1] %v3678_v4 }
 0x39c   :  { %3967 = shalt.err (!%p3964_p4)
}
 0x39d   :  { %s3968_s2 = scalar_lea.hbm %s6740_s5, 32 }
 0x39e   :  { %p3969_p5 = scmp.ne.s32.totalorder %s6740_s5, %s3968_s2  ;;  %p3972_p6 = scmp.lt.u32.totalorder %s3968_s2, %s6740_s5 }
 0x3a0   :  { %p3974_p7 = pnand %p3972_p6, %p3969_p5 }
 0x3a2   :  { %3977 = shalt.err (!%p3974_p7)
}
 0x3a3   :  { %3689 = dma.vmem_to_hbm [thread:$0]  %s3687_s27, 32, %s6740_s5, [#allocation3]  }
 0x3a4   :  { %3978 = dma.done.wait [#allocation3], 32  }
 0x3a5   :  { %3979 = vsyncadd [#allocation3], 4294967264 }
 0x3a6   :  { %3693 = vsyncpa [#allocation3], 1 }

</bundles_post_ra>
